<compile_context>
chip_gen: v7x
topology: tpu7x:2x2x1
jax: 0.10.0
libtpu: 0.0.40
codegen_flags: <defaults>
</compile_context>

<pallas_src>
import functools

import jax
import jax.numpy as jnp
from jax.experimental import pallas as pl
from jax.experimental.pallas import tpu as pltpu


# ----------------------------------------------------------------------------
# Fused kernel: init_MLP -> {MLP_distribution, MLP_factor} -> gumbel-softmax head
# ----------------------------------------------------------------------------
def _fused_kernel(
    x_ref,                                   # [N, in_dim]        f32
    w1_ref, w2_ref, w3_ref,                  # [3,in,H1] [3,H1,H2] [3,H2,P]   bf16
    b1_ref, b2_ref, b3_ref,                  # [3,1,H1]  [3,1,H2]  [3,1,P]    f32
    noise_ref,                               # [N, edge_types]    f32
    out_ref, dist_ref,                       # [N, edge_types]    f32
    *, inv_tau, out_widths,
):
    def mlp3(lhs_bf16, idx, width):
        # bf16 x bf16 matmuls on the MXU, f32 accumulation; elementwise stays f32,
        # cast down to bf16 only for the next layer's LHS.
        h = jnp.dot(lhs_bf16, w1_ref[idx], preferred_element_type=jnp.float32) + b1_ref[idx]
        h = jnp.maximum(h, 0.0)                                            # ReLU (f32)
        h = jnp.dot(h.astype(jnp.bfloat16), w2_ref[idx],
                    preferred_element_type=jnp.float32) + b2_ref[idx]
        h = jnp.maximum(h, 0.0)                                            # ReLU (f32)
        h = jnp.dot(h.astype(jnp.bfloat16), w3_ref[idx],
                    preferred_element_type=jnp.float32) + b3_ref[idx]
        return h[:, :width]                                                # drop zero pad

    x_bf16 = x_ref[...].astype(jnp.bfloat16)
    h = mlp3(x_bf16, 0, out_widths[0])                                     # init_MLP  [N, in]
    h_bf16 = h.astype(jnp.bfloat16)

    dist_logits = mlp3(h_bf16, 1, out_widths[1])                           # [N, E]  f32
    fact_logit = mlp3(h_bf16, 2, out_widths[2])                            # [N, 1]  f32

    # gumbel_softmax(logits, tau, hard=False) == my_softmax((logits + noise) / tau, axis=-1)
    y = (dist_logits + noise_ref[...]) * inv_tau
    # my_softmax(axis=-1) on a 2D tensor with legacy F.softmax default dim
    # => softmax reduces over axis 0 (batch).  (Numerically stabilised; identical result.)
    m = jnp.max(y, axis=0, keepdims=True)
    e = jnp.exp(y - m)
    dist = e * pl.reciprocal(jnp.sum(e, axis=0, keepdims=True), approx=True)

    factor = pl.reciprocal(1.0 + jnp.exp(-fact_logit), approx=True)        # sigmoid, [N, 1]

    out_ref[...] = (factor * dist).astype(out_ref.dtype)
    dist_ref[...] = dist.astype(dist_ref.dtype)


# ----------------------------------------------------------------------------
# One-time parameter packing (hoisted out of the forward path):
#   * casts weights to bf16 ONCE,
#   * stacks the three branches (init, dist, factor) into 6 contiguous arrays,
#   * zero-pads the narrow final-layer weights/biases to a common width so they stack.
# ----------------------------------------------------------------------------
def pack_params(params):
    branches = ("init", "dist", "factor")
    w3_pad = max(params[name][-1][0].shape[1] for name in branches)

    w1s, w2s, w3s, b1s, b2s, b3s = [], [], [], [], [], []
    out_widths = []
    for name in branches:
        (w1, b1), (w2, b2), (w3, b3) = params[name]
        out_widths.append(w3.shape[1])
        pad = w3_pad - w3.shape[1]
        w1s.append(w1); b1s.append(b1)
        w2s.append(w2); b2s.append(b2)
        w3s.append(jnp.pad(w3, ((0, 0), (0, pad))))
        b3s.append(jnp.pad(b3, ((0, 0), (0, pad))))

    packed = {
        "w1": jnp.stack(w1s).astype(jnp.bfloat16),   # [3, in,  H1]
        "w2": jnp.stack(w2s).astype(jnp.bfloat16),   # [3, H1,  H2]
        "w3": jnp.stack(w3s).astype(jnp.bfloat16),   # [3, H2,  w3_pad]
        "b1": jnp.stack(b1s).astype(jnp.float32),    # [3, 1,   H1]
        "b2": jnp.stack(b2s).astype(jnp.float32),    # [3, 1,   H2]
        "b3": jnp.stack(b3s).astype(jnp.float32),    # [3, 1,   w3_pad]
    }
    return packed, tuple(out_widths)


# ----------------------------------------------------------------------------
# Forward wrapper: single fused pallas_call, no per-call param transforms.
# ----------------------------------------------------------------------------
@functools.partial(jax.jit, static_argnames=("out_widths", "tau"))
def mlp_dict_softmax_forward(x, packed, gumbel_noise, out_widths, tau=0.5):
    n = x.shape[0]
    edge_types = gumbel_noise.shape[1]

    vmem = pl.BlockSpec(memory_space=pltpu.MemorySpace.VMEM)
    kernel = functools.partial(_fused_kernel, inv_tau=1.0 / tau, out_widths=out_widths)

    out, distribution = pl.pallas_call(
        kernel,
        out_shape=(
            jax.ShapeDtypeStruct((n, edge_types), jnp.float32),
            jax.ShapeDtypeStruct((n, edge_types), jnp.float32),
        ),
        in_specs=[vmem] * 8,   # x, 6 packed param stacks, noise
        out_specs=(vmem, vmem),
        compiler_params=pltpu.CompilerParams(vmem_limit_bytes=12 * 1024 * 1024),
    )(x, packed["w1"], packed["w2"], packed["w3"],
      packed["b1"], packed["b2"], packed["b3"], gumbel_noise)
    return out, distribution


# ----------------------------------------------------------------------------
# Deterministic parameter construction (synthetic; mirrors nn.Linear shapes,
# stored as [in_features, out_features] so the kernel computes y = x @ W + b)
# ----------------------------------------------------------------------------
def init_mlp_params(key, dims, scale=0.05):
    params = []
    for i in range(len(dims) - 1):
        key, kw, kb = jax.random.split(key, 3)
        w = scale * jax.random.normal(kw, (dims[i], dims[i + 1]), jnp.float32)
        b = scale * jax.random.normal(kb, (1, dims[i + 1]), jnp.float32)
        params.append((w, b))
    return params


# Pure-JAX f32 reference (same math as the PyTorch module, fixed gumbel noise).
def _ref_forward(x, params, gumbel_noise, tau):
    def mlp(v, layers):
        for i, (w, b) in enumerate(layers):
            v = v @ w + b
            if i != len(layers) - 1:
                v = jnp.maximum(v, 0.0)
        return v

    h = mlp(x, params["init"])
    logits = mlp(h, params["dist"])
    y = (logits + gumbel_noise) / tau
    e = jnp.exp(y - jnp.max(y, axis=0, keepdims=True))
    dist = e / jnp.sum(e, axis=0, keepdims=True)          # batch-axis softmax (see note)
    factor = jax.nn.sigmoid(mlp(h, params["factor"]))
    return factor * dist, dist


if __name__ == "__main__":
    N = 8            # batch ("batch_size x num_features" as required by gumbel_softmax)
    input_dim = 32
    edge_types = 10  # bottleneck_dim
    hidden = (1024, 512)  # module default hidden_size
    tau = 0.5
    eps = 1e-10

    key = jax.random.PRNGKey(0)
    kx, kn, kp1, kp2, kp3 = jax.random.split(key, 5)

    x = jax.random.normal(kx, (N, input_dim), dtype=jnp.float32)

    params = {
        "init":   init_mlp_params(kp1, (input_dim, *hidden, input_dim)),
        "dist":   init_mlp_params(kp2, (input_dim, *hidden, edge_types)),
        "factor": init_mlp_params(kp3, (input_dim, *hidden, 1)),
    }
    packed, out_widths = pack_params(params)   # one-time bf16 cast + stacking (hoisted)

    # Gumbel(0,1) noise, matching sample_gumbel: -log(eps - log(U + eps)), U ~ Uniform[0,1)
    U = jax.random.uniform(kn, (N, edge_types), dtype=jnp.float32)
    gumbel_noise = -jnp.log(eps - jnp.log(U + eps))

    out, distribution = mlp_dict_softmax_forward(x, packed, gumbel_noise, out_widths, tau=tau)
    jax.block_until_ready((out, distribution))

    assert out.shape == (N, edge_types) and distribution.shape == (N, edge_types)
    assert bool(jnp.all(jnp.isfinite(out))) and bool(jnp.all(jnp.isfinite(distribution)))

    # Loose tolerance check vs f32 reference (bf16 weight streaming + approx reciprocal).
    out_ref, dist_ref = _ref_forward(x, params, gumbel_noise, tau)
    assert bool(jnp.allclose(distribution, dist_ref, atol=5e-2, rtol=5e-2))
    assert bool(jnp.allclose(out, out_ref, atol=5e-2, rtol=5e-2))

    print("KERNEL_OK")
</pallas_src>

<mosaic_0001>
module attributes {stable_mosaic.version = 11 : i64} {
  func.func @_fused_kernel(%arg0: memref<8x32xf32, #tpu.memory_space<vmem>>, %arg1: memref<3x32x1024xbf16, #tpu.memory_space<vmem>>, %arg2: memref<3x1024x512xbf16, #tpu.memory_space<vmem>>, %arg3: memref<3x512x32xbf16, #tpu.memory_space<vmem>>, %arg4: memref<3x1x1024xf32, #tpu.memory_space<vmem>>, %arg5: memref<3x1x512xf32, #tpu.memory_space<vmem>>, %arg6: memref<3x1x32xf32, #tpu.memory_space<vmem>>, %arg7: memref<8x10xf32, #tpu.memory_space<vmem>>, %arg8: memref<8x10xf32, #tpu.memory_space<vmem>>, %arg9: memref<8x10xf32, #tpu.memory_space<vmem>>) attributes {dimension_semantics = [], scalar_prefetch = 0 : i64, scratch_operands = 0 : i64, tpu.core_type = #tpu.core_type<tc>} {
    %c0 = arith.constant 0 : index
    %c0_0 = arith.constant 0 : index
    %0 = vector.load %arg0[%c0, %c0_0] : memref<8x32xf32, #tpu.memory_space<vmem>>, vector<8x32xf32>
    %1 = arith.truncf %0 : vector<8x32xf32> to vector<8x32xbf16>
    %c0_1 = arith.constant 0 : index
    %c0_2 = arith.constant 0 : index
    %c0_3 = arith.constant 0 : index
    %2 = vector.load %arg1[%c0_1, %c0_2, %c0_3] : memref<3x32x1024xbf16, #tpu.memory_space<vmem>>, vector<1x32x1024xbf16>
    %3 = vector.shape_cast %2 : vector<1x32x1024xbf16> to vector<32x1024xbf16>
    %cst = arith.constant dense<0.000000e+00> : vector<8x1024xf32>
    %4 = tpu.matmul %1, %3, %cst {dimension_numbers = #tpu.dot_dimension_numbers<[1], [0], [0], [1], [0, 0, 1, 1], [], []>} : vector<8x32xbf16>, vector<32x1024xbf16>, vector<8x1024xf32> -> vector<8x1024xf32>
    %c0_4 = arith.constant 0 : index
    %c0_5 = arith.constant 0 : index
    %c0_6 = arith.constant 0 : index
    %5 = vector.load %arg4[%c0_4, %c0_5, %c0_6] : memref<3x1x1024xf32, #tpu.memory_space<vmem>>, vector<1x1x1024xf32>
    %6 = vector.shape_cast %5 : vector<1x1x1024xf32> to vector<1x1024xf32>
    %7 = vector.broadcast %6 : vector<1x1024xf32> to vector<8x1024xf32>
    %8 = arith.addf %4, %7 : vector<8x1024xf32>
    %cst_7 = arith.constant 0.000000e+00 : f32
    %9 = vector.broadcast %cst_7 : f32 to vector<8x1024xf32>
    %10 = arith.maximumf %8, %9 : vector<8x1024xf32>
    %11 = arith.truncf %10 : vector<8x1024xf32> to vector<8x1024xbf16>
    %c0_8 = arith.constant 0 : index
    %c0_9 = arith.constant 0 : index
    %c0_10 = arith.constant 0 : index
    %12 = vector.load %arg2[%c0_8, %c0_9, %c0_10] : memref<3x1024x512xbf16, #tpu.memory_space<vmem>>, vector<1x1024x512xbf16>
    %13 = vector.shape_cast %12 : vector<1x1024x512xbf16> to vector<1024x512xbf16>
    %cst_11 = arith.constant dense<0.000000e+00> : vector<8x512xf32>
    %14 = tpu.matmul %11, %13, %cst_11 {dimension_numbers = #tpu.dot_dimension_numbers<[1], [0], [0], [1], [0, 0, 1, 1], [], []>} : vector<8x1024xbf16>, vector<1024x512xbf16>, vector<8x512xf32> -> vector<8x512xf32>
    %c0_12 = arith.constant 0 : index
    %c0_13 = arith.constant 0 : index
    %c0_14 = arith.constant 0 : index
    %15 = vector.load %arg5[%c0_12, %c0_13, %c0_14] : memref<3x1x512xf32, #tpu.memory_space<vmem>>, vector<1x1x512xf32>
    %16 = vector.shape_cast %15 : vector<1x1x512xf32> to vector<1x512xf32>
    %17 = vector.broadcast %16 : vector<1x512xf32> to vector<8x512xf32>
    %18 = arith.addf %14, %17 : vector<8x512xf32>
    %cst_15 = arith.constant 0.000000e+00 : f32
    %19 = vector.broadcast %cst_15 : f32 to vector<8x512xf32>
    %20 = arith.maximumf %18, %19 : vector<8x512xf32>
    %21 = arith.truncf %20 : vector<8x512xf32> to vector<8x512xbf16>
    %c0_16 = arith.constant 0 : index
    %c0_17 = arith.constant 0 : index
    %c0_18 = arith.constant 0 : index
    %22 = vector.load %arg3[%c0_16, %c0_17, %c0_18] : memref<3x512x32xbf16, #tpu.memory_space<vmem>>, vector<1x512x32xbf16>
    %23 = vector.shape_cast %22 : vector<1x512x32xbf16> to vector<512x32xbf16>
    %cst_19 = arith.constant dense<0.000000e+00> : vector<8x32xf32>
    %24 = tpu.matmul %21, %23, %cst_19 {dimension_numbers = #tpu.dot_dimension_numbers<[1], [0], [0], [1], [0, 0, 1, 1], [], []>} : vector<8x512xbf16>, vector<512x32xbf16>, vector<8x32xf32> -> vector<8x32xf32>
    %c0_20 = arith.constant 0 : index
    %c0_21 = arith.constant 0 : index
    %c0_22 = arith.constant 0 : index
    %25 = vector.load %arg6[%c0_20, %c0_21, %c0_22] : memref<3x1x32xf32, #tpu.memory_space<vmem>>, vector<1x1x32xf32>
    %26 = vector.shape_cast %25 : vector<1x1x32xf32> to vector<1x32xf32>
    %27 = vector.broadcast %26 : vector<1x32xf32> to vector<8x32xf32>
    %28 = arith.addf %24, %27 : vector<8x32xf32>
    %29 = arith.truncf %28 : vector<8x32xf32> to vector<8x32xbf16>
    %c1 = arith.constant 1 : index
    %c0_23 = arith.constant 0 : index
    %c0_24 = arith.constant 0 : index
    %30 = vector.load %arg1[%c1, %c0_23, %c0_24] : memref<3x32x1024xbf16, #tpu.memory_space<vmem>>, vector<1x32x1024xbf16>
    %31 = vector.shape_cast %30 : vector<1x32x1024xbf16> to vector<32x1024xbf16>
    %cst_25 = arith.constant dense<0.000000e+00> : vector<8x1024xf32>
    %32 = tpu.matmul %29, %31, %cst_25 {dimension_numbers = #tpu.dot_dimension_numbers<[1], [0], [0], [1], [0, 0, 1, 1], [], []>} : vector<8x32xbf16>, vector<32x1024xbf16>, vector<8x1024xf32> -> vector<8x1024xf32>
    %c1_26 = arith.constant 1 : index
    %c0_27 = arith.constant 0 : index
    %c0_28 = arith.constant 0 : index
    %33 = vector.load %arg4[%c1_26, %c0_27, %c0_28] : memref<3x1x1024xf32, #tpu.memory_space<vmem>>, vector<1x1x1024xf32>
    %34 = vector.shape_cast %33 : vector<1x1x1024xf32> to vector<1x1024xf32>
    %35 = vector.broadcast %34 : vector<1x1024xf32> to vector<8x1024xf32>
    %36 = arith.addf %32, %35 : vector<8x1024xf32>
    %cst_29 = arith.constant 0.000000e+00 : f32
    %37 = vector.broadcast %cst_29 : f32 to vector<8x1024xf32>
    %38 = arith.maximumf %36, %37 : vector<8x1024xf32>
    %39 = arith.truncf %38 : vector<8x1024xf32> to vector<8x1024xbf16>
    %c1_30 = arith.constant 1 : index
    %c0_31 = arith.constant 0 : index
    %c0_32 = arith.constant 0 : index
    %40 = vector.load %arg2[%c1_30, %c0_31, %c0_32] : memref<3x1024x512xbf16, #tpu.memory_space<vmem>>, vector<1x1024x512xbf16>
    %41 = vector.shape_cast %40 : vector<1x1024x512xbf16> to vector<1024x512xbf16>
    %cst_33 = arith.constant dense<0.000000e+00> : vector<8x512xf32>
    %42 = tpu.matmul %39, %41, %cst_33 {dimension_numbers = #tpu.dot_dimension_numbers<[1], [0], [0], [1], [0, 0, 1, 1], [], []>} : vector<8x1024xbf16>, vector<1024x512xbf16>, vector<8x512xf32> -> vector<8x512xf32>
    %c1_34 = arith.constant 1 : index
    %c0_35 = arith.constant 0 : index
    %c0_36 = arith.constant 0 : index
    %43 = vector.load %arg5[%c1_34, %c0_35, %c0_36] : memref<3x1x512xf32, #tpu.memory_space<vmem>>, vector<1x1x512xf32>
    %44 = vector.shape_cast %43 : vector<1x1x512xf32> to vector<1x512xf32>
    %45 = vector.broadcast %44 : vector<1x512xf32> to vector<8x512xf32>
    %46 = arith.addf %42, %45 : vector<8x512xf32>
    %cst_37 = arith.constant 0.000000e+00 : f32
    %47 = vector.broadcast %cst_37 : f32 to vector<8x512xf32>
    %48 = arith.maximumf %46, %47 : vector<8x512xf32>
    %49 = arith.truncf %48 : vector<8x512xf32> to vector<8x512xbf16>
    %c1_38 = arith.constant 1 : index
    %c0_39 = arith.constant 0 : index
    %c0_40 = arith.constant 0 : index
    %50 = vector.load %arg3[%c1_38, %c0_39, %c0_40] : memref<3x512x32xbf16, #tpu.memory_space<vmem>>, vector<1x512x32xbf16>
    %51 = vector.shape_cast %50 : vector<1x512x32xbf16> to vector<512x32xbf16>
    %cst_41 = arith.constant dense<0.000000e+00> : vector<8x32xf32>
    %52 = tpu.matmul %49, %51, %cst_41 {dimension_numbers = #tpu.dot_dimension_numbers<[1], [0], [0], [1], [0, 0, 1, 1], [], []>} : vector<8x512xbf16>, vector<512x32xbf16>, vector<8x32xf32> -> vector<8x32xf32>
    %c1_42 = arith.constant 1 : index
    %c0_43 = arith.constant 0 : index
    %c0_44 = arith.constant 0 : index
    %53 = vector.load %arg6[%c1_42, %c0_43, %c0_44] : memref<3x1x32xf32, #tpu.memory_space<vmem>>, vector<1x1x32xf32>
    %54 = vector.shape_cast %53 : vector<1x1x32xf32> to vector<1x32xf32>
    %55 = vector.broadcast %54 : vector<1x32xf32> to vector<8x32xf32>
    %56 = arith.addf %52, %55 : vector<8x32xf32>
    %57 = vector.extract_strided_slice %56 {offsets = [0, 0], sizes = [8, 10], strides = [1, 1]} : vector<8x32xf32> to vector<8x10xf32>
    %c2 = arith.constant 2 : index
    %c0_45 = arith.constant 0 : index
    %c0_46 = arith.constant 0 : index
    %58 = vector.load %arg1[%c2, %c0_45, %c0_46] : memref<3x32x1024xbf16, #tpu.memory_space<vmem>>, vector<1x32x1024xbf16>
    %59 = vector.shape_cast %58 : vector<1x32x1024xbf16> to vector<32x1024xbf16>
    %cst_47 = arith.constant dense<0.000000e+00> : vector<8x1024xf32>
    %60 = tpu.matmul %29, %59, %cst_47 {dimension_numbers = #tpu.dot_dimension_numbers<[1], [0], [0], [1], [0, 0, 1, 1], [], []>} : vector<8x32xbf16>, vector<32x1024xbf16>, vector<8x1024xf32> -> vector<8x1024xf32>
    %c2_48 = arith.constant 2 : index
    %c0_49 = arith.constant 0 : index
    %c0_50 = arith.constant 0 : index
    %61 = vector.load %arg4[%c2_48, %c0_49, %c0_50] : memref<3x1x1024xf32, #tpu.memory_space<vmem>>, vector<1x1x1024xf32>
    %62 = vector.shape_cast %61 : vector<1x1x1024xf32> to vector<1x1024xf32>
    %63 = vector.broadcast %62 : vector<1x1024xf32> to vector<8x1024xf32>
    %64 = arith.addf %60, %63 : vector<8x1024xf32>
    %cst_51 = arith.constant 0.000000e+00 : f32
    %65 = vector.broadcast %cst_51 : f32 to vector<8x1024xf32>
    %66 = arith.maximumf %64, %65 : vector<8x1024xf32>
    %67 = arith.truncf %66 : vector<8x1024xf32> to vector<8x1024xbf16>
    %c2_52 = arith.constant 2 : index
    %c0_53 = arith.constant 0 : index
    %c0_54 = arith.constant 0 : index
    %68 = vector.load %arg2[%c2_52, %c0_53, %c0_54] : memref<3x1024x512xbf16, #tpu.memory_space<vmem>>, vector<1x1024x512xbf16>
    %69 = vector.shape_cast %68 : vector<1x1024x512xbf16> to vector<1024x512xbf16>
    %cst_55 = arith.constant dense<0.000000e+00> : vector<8x512xf32>
    %70 = tpu.matmul %67, %69, %cst_55 {dimension_numbers = #tpu.dot_dimension_numbers<[1], [0], [0], [1], [0, 0, 1, 1], [], []>} : vector<8x1024xbf16>, vector<1024x512xbf16>, vector<8x512xf32> -> vector<8x512xf32>
    %c2_56 = arith.constant 2 : index
    %c0_57 = arith.constant 0 : index
    %c0_58 = arith.constant 0 : index
    %71 = vector.load %arg5[%c2_56, %c0_57, %c0_58] : memref<3x1x512xf32, #tpu.memory_space<vmem>>, vector<1x1x512xf32>
    %72 = vector.shape_cast %71 : vector<1x1x512xf32> to vector<1x512xf32>
    %73 = vector.broadcast %72 : vector<1x512xf32> to vector<8x512xf32>
    %74 = arith.addf %70, %73 : vector<8x512xf32>
    %cst_59 = arith.constant 0.000000e+00 : f32
    %75 = vector.broadcast %cst_59 : f32 to vector<8x512xf32>
    %76 = arith.maximumf %74, %75 : vector<8x512xf32>
    %77 = arith.truncf %76 : vector<8x512xf32> to vector<8x512xbf16>
    %c2_60 = arith.constant 2 : index
    %c0_61 = arith.constant 0 : index
    %c0_62 = arith.constant 0 : index
    %78 = vector.load %arg3[%c2_60, %c0_61, %c0_62] : memref<3x512x32xbf16, #tpu.memory_space<vmem>>, vector<1x512x32xbf16>
    %79 = vector.shape_cast %78 : vector<1x512x32xbf16> to vector<512x32xbf16>
    %cst_63 = arith.constant dense<0.000000e+00> : vector<8x32xf32>
    %80 = tpu.matmul %77, %79, %cst_63 {dimension_numbers = #tpu.dot_dimension_numbers<[1], [0], [0], [1], [0, 0, 1, 1], [], []>} : vector<8x512xbf16>, vector<512x32xbf16>, vector<8x32xf32> -> vector<8x32xf32>
    %c2_64 = arith.constant 2 : index
    %c0_65 = arith.constant 0 : index
    %c0_66 = arith.constant 0 : index
    %81 = vector.load %arg6[%c2_64, %c0_65, %c0_66] : memref<3x1x32xf32, #tpu.memory_space<vmem>>, vector<1x1x32xf32>
    %82 = vector.shape_cast %81 : vector<1x1x32xf32> to vector<1x32xf32>
    %83 = vector.broadcast %82 : vector<1x32xf32> to vector<8x32xf32>
    %84 = arith.addf %80, %83 : vector<8x32xf32>
    %85 = vector.extract_strided_slice %84 {offsets = [0, 0], sizes = [8, 1], strides = [1, 1]} : vector<8x32xf32> to vector<8x1xf32>
    %c0_67 = arith.constant 0 : index
    %c0_68 = arith.constant 0 : index
    %86 = vector.load %arg7[%c0_67, %c0_68] : memref<8x10xf32, #tpu.memory_space<vmem>>, vector<8x10xf32>
    %87 = arith.addf %57, %86 : vector<8x10xf32>
    %cst_69 = arith.constant 2.000000e+00 : f32
    %88 = vector.broadcast %cst_69 : f32 to vector<8x10xf32>
    %89 = arith.mulf %87, %88 : vector<8x10xf32>
    %cst_70 = arith.constant dense<0xFF800000> : vector<10xf32>
    %90 = vector.multi_reduction <maximumf>, %89, %cst_70 [0] : vector<8x10xf32> to vector<10xf32>
    %91 = vector.shape_cast %90 : vector<10xf32> to vector<1x10xf32>
    %92 = vector.broadcast %91 : vector<1x10xf32> to vector<8x10xf32>
    %93 = arith.subf %89, %92 : vector<8x10xf32>
    %94 = math.exp %93 : vector<8x10xf32>
    %cst_71 = arith.constant dense<0.000000e+00> : vector<10xf32>
    %95 = vector.multi_reduction <add>, %94, %cst_71 [0] : vector<8x10xf32> to vector<10xf32>
    %96 = vector.shape_cast %95 : vector<10xf32> to vector<1x10xf32>
    %97 = tpu.reciprocal %96 {approx = true} : vector<1x10xf32> -> vector<1x10xf32>
    %98 = vector.broadcast %97 : vector<1x10xf32> to vector<8x10xf32>
    %99 = arith.mulf %94, %98 : vector<8x10xf32>
    %cst_72 = arith.constant 0.000000e+00 : f32
    %100 = vector.broadcast %cst_72 : f32 to vector<8x1xf32>
    %101 = arith.subf %100, %85 : vector<8x1xf32>
    %102 = math.exp %101 : vector<8x1xf32>
    %cst_73 = arith.constant 1.000000e+00 : f32
    %103 = vector.broadcast %cst_73 : f32 to vector<8x1xf32>
    %104 = arith.addf %103, %102 : vector<8x1xf32>
    %105 = tpu.reciprocal %104 {approx = true} : vector<8x1xf32> -> vector<8x1xf32>
    %106 = vector.broadcast %105 : vector<8x1xf32> to vector<8x10xf32>
    %107 = arith.mulf %106, %99 : vector<8x10xf32>
    %c0_74 = arith.constant 0 : index
    %c0_75 = arith.constant 0 : index
    %108 = vector.load %arg8[%c0_74, %c0_75] : memref<8x10xf32, #tpu.memory_space<vmem>>, vector<8x10xf32>
    tpu.vector_store %arg8[%c0_74, %c0_75], %107 {strides = array<i32>} : memref<8x10xf32, #tpu.memory_space<vmem>>, vector<8x10xf32>,
    %c0_76 = arith.constant 0 : index
    %c0_77 = arith.constant 0 : index
    %109 = vector.load %arg9[%c0_76, %c0_77] : memref<8x10xf32, #tpu.memory_space<vmem>>, vector<8x10xf32>
    tpu.vector_store %arg9[%c0_76, %c0_77], %99 {strides = array<i32>} : memref<8x10xf32, #tpu.memory_space<vmem>>, vector<8x10xf32>,
    return
  }
}

</mosaic_0001>

<bundles_post_ra>
// kernel: mlp_dict_softmax_forward.1
= control target key start
LH: loop header
LB: loop body
LE: loop exit
PB: predicated region body
PF: predicated region fallthrough
CT: control target
= control target key end

     0   :  { %15 = vsyncpa [#allocation3], 0  ;;  %s11282_s0 = inlined_call_operand.hbm [shape: f32[8,32], index: 0, kind: input, shape index: {}]   ;;  %s11283_s1 = inlined_call_operand.hbm [shape: bf16[3,32,1024], index: 1, kind: input, shape index: {}]   ;;  %s11284_s2 = inlined_call_operand.hbm [shape: bf16[3,1024,512], index: 2, kind: input, shape index: {}]   ;;  %s11285_s3 = inlined_call_operand.vmem [shape: bf16[3,512,32], index: 3, kind: input, shape index: {}]   ;;  %s11286_s4 = inlined_call_operand.hbm [shape: f32[3,1,1024], index: 4, kind: input, shape index: {}]   ;;  %s11287_s5 = inlined_call_operand.hbm [shape: f32[3,1,512], index: 5, kind: input, shape index: {}]   ;;  %s11288_s6 = inlined_call_operand.hbm [shape: f32[3,1,32], index: 6, kind: input, shape index: {}]   ;;  %s11289_s7 = inlined_call_operand.hbm [shape: f32[8,10], index: 7, kind: input, shape index: {}]   ;;  %s11290_s8 = inlined_call_operand.hbm [shape: f32[8,10], index: 8, kind: output, shape index: {0}]   ;;  %s11291_s9 = inlined_call_operand.hbm [shape: f32[8,10], index: 9, kind: output, shape index: {1}]  }
   0x1   :  { %16 = vsyncpa [#allocation6], 0 }
   0x2   :  { %17 = vsyncpa [#allocation9], 0 }
   0x3   :  { %18 = vsyncpa [#allocation12], 0 }
   0x4   :  { %19 = vsyncpa [#allocation4], 0 }
   0x5   :  { %20 = vsyncpa [#allocation16], 0  ;;  %s10638_s30 = smov [#allocation5]   ;;  %s10428_s13 = scalar_lea.hbm %s11283_s1, 6144 }
   0x6   :  { %s36_s10 = sshll.u32 %s10638_s30, 4  ;;  %p10429_p0 = scmp.ne.s32.totalorder %s11283_s1, %s10428_s13  ;;  %s37_s10 = int_to_ptr.vmem [resolvable:$true] %s36_s10 }
   0x7   :  { %p10432_p1 = scmp.lt.u32.totalorder %s10428_s13, %s11283_s1 }
   0x9   :  { %p10434_p2 = pnand %p10432_p1, %p10429_p0 }
   0xb   :  { %10437 = shalt.err (!%p10434_p2)
}
   0xc   :  { %s10438_s18 = scalar_lea.vmem %s37_s10, 6144  ;;  %p10443_p4 = scmp.lt.s32.totalorder %s37_s10, %s37_s10 }
   0xd   :  { %p10439_p3 = scmp.ne.s32.totalorder %s37_s10, %s10438_s18  ;;  %p10444_p5 = scmp.lt.s32.totalorder %s10438_s18, %s10438_s18 }
   0xf   :  { %p10445_p6 = por %p10444_p5, %p10443_p4 }
  0x11   :  { %p10446_p7 = pnand %p10445_p6, %p10439_p3 }
  0x13   :  { %10449 = shalt.err (!%p10446_p7)
}
  0x14   :  { %s10639_s19 = smov 512   ;;  %s10640_s20 = smov 32  }
  0x15   :  { %42 = dma.hbm_to_vmem [thread:$0]  %s11283_s1, 6144, %s37_s10, [#allocation6], %s10639_s19, %s10639_s19, %s10640_s20  }
  0x16   :  { %s10641_s23 = smov [#allocation8]   ;;  %s10450_s27 = scalar_lea.hbm %s11286_s4, 384 }
  0x17   :  { %s62_s24 = sshll.u32 %s10641_s23, 4  ;;  %p10451_p8 = scmp.ne.s32.totalorder %s11286_s4, %s10450_s27  ;;  %s63_s24 = int_to_ptr.vmem [resolvable:$true] %s62_s24 }
  0x18   :  { %p10454_p9 = scmp.lt.u32.totalorder %s10450_s27, %s11286_s4 }
  0x1a   :  { %p10456_p10 = pnand %p10454_p9, %p10451_p8 }
  0x1c   :  { %10459 = shalt.err (!%p10456_p10)
}
  0x1d   :  { %s10460_s12 = scalar_lea.vmem %s63_s24, 384  ;;  %p10465_p12 = scmp.lt.s32.totalorder %s63_s24, %s63_s24 }
  0x1e   :  { %p10461_p11 = scmp.ne.s32.totalorder %s63_s24, %s10460_s12  ;;  %p10466_p13 = scmp.lt.s32.totalorder %s10460_s12, %s10460_s12 }
  0x20   :  { %p10467_p0 = por %p10466_p13, %p10465_p12 }
  0x22   :  { %p10468_p1 = pnand %p10467_p0, %p10461_p11 }
  0x24   :  { %10471 = shalt.err (!%p10468_p1)
}
  0x25   :  { %s10642_s1 = smov 128   ;;  %s10643_s10 = smov 8  }
  0x26   :  { %68 = dma.hbm_to_vmem [thread:$0]  %s11286_s4, 384, %s63_s24, [#allocation9], %s10642_s1, %s10642_s1, %s10643_s10  }
  0x27   :  { %s10644_s15 = smov [#allocation11]   ;;  %s10472_s19 = scalar_lea.hbm %s11288_s6, 48 }
  0x28   :  { %s86_s16 = sshll.u32 %s10644_s15, 4  ;;  %p10473_p2 = scmp.ne.s32.totalorder %s11288_s6, %s10472_s19  ;;  %s87_s16 = int_to_ptr.vmem [resolvable:$true] %s86_s16 }
  0x29   :  { %p10476_p3 = scmp.lt.u32.totalorder %s10472_s19, %s11288_s6 }
  0x2b   :  { %p10478_p4 = pnand %p10476_p3, %p10473_p2 }
  0x2d   :  { %10481 = shalt.err (!%p10478_p4)
}
  0x2e   :  { %s10482_s25 = scalar_lea.vmem %s87_s16, 48  ;;  %s10486_s4 = scalar_lea.vmem %s87_s16, 64 }
  0x2f   :  { %p10483_p5 = scmp.ne.s32.totalorder %s87_s16, %s10482_s25  ;;  %p10487_p6 = scmp.lt.s32.totalorder %s87_s16, %s87_s16 }
  0x30   :  { %p10488_p7 = scmp.lt.s32.totalorder %s10486_s4, %s10482_s25 }
  0x32   :  { %p10489_p8 = por %p10488_p7, %p10487_p6 }
  0x34   :  { %p10490_p9 = pnand %p10489_p8, %p10483_p5 }
  0x36   :  { %10493 = shalt.err (!%p10490_p9)
}
  0x37   :  { %s10645_s24 = smov 16   ;;  %s10646_s26 = smov 1  }
  0x38   :  { %92 = dma.hbm_to_vmem [thread:$0]  %s11288_s6, 48, %s87_s16, [#allocation12], %s10645_s24, %s10645_s24, %s10646_s26  }
  0x39   :  { %s10647_s29 = smov [#allocation2]   ;;  %s10648_s11 = smov [#allocation7]  }
  0x3a   :  { %s27_s30 = sshll.u32 %s10647_s29, 4  ;;  %s48_s12 = sshll.u32 %s10648_s11, 4  ;;  %s28_s30 = int_to_ptr.vmem [resolvable:$true] %s27_s30  ;;  %s49_s12 = int_to_ptr.vmem [resolvable:$true] %s48_s12 }
  0x3b   :  { %s10494_s13 = scalar_lea.hbm %s11282_s0, 128 }
  0x3c   :  { %p10495_p10 = scmp.ne.s32.totalorder %s11282_s0, %s10494_s13  ;;  %p10498_p11 = scmp.lt.u32.totalorder %s10494_s13, %s11282_s0 }
  0x3e   :  { %p10500_p12 = pnand %p10498_p11, %p10495_p10 }
  0x40   :  { %10503 = shalt.err (!%p10500_p12)
}
  0x41   :  { %s10504_s6 = scalar_lea.vmem %s28_s30, 128  ;;  %p10509_p0 = scmp.lt.s32.totalorder %s28_s30, %s28_s30 }
  0x42   :  { %p10505_p13 = scmp.ne.s32.totalorder %s28_s30, %s10504_s6  ;;  %p10510_p1 = scmp.lt.s32.totalorder %s10504_s6, %s10504_s6 }
  0x44   :  { %p10511_p2 = por %p10510_p1, %p10509_p0 }
  0x46   :  { %p10512_p3 = pnand %p10511_p2, %p10505_p13 }
  0x48   :  { %10515 = shalt.err (!%p10512_p3)
}
  0x49   :  { %30 = dma.hbm_to_vmem [thread:$0]  %s11282_s0, 128, %s28_s30, [#allocation3]  }
  0x4a   :  { %s10516_s22 = scalar_lea.hbm %s11284_s2, 98304 }
  0x4b   :  { %p10517_p4 = scmp.ne.s32.totalorder %s11284_s2, %s10516_s22  ;;  %p10520_p5 = scmp.lt.u32.totalorder %s10516_s22, %s11284_s2 }
  0x4d   :  { %p10522_p6 = pnand %p10520_p5, %p10517_p4 }
  0x4f   :  { %10525 = shalt.err (!%p10522_p6)
}
  0x50   :  { %s10526_s27 = scalar_lea.vmem %s49_s12, 98304  ;;  %p10531_p8 = scmp.lt.s32.totalorder %s49_s12, %s49_s12 }
  0x51   :  { %p10527_p7 = scmp.ne.s32.totalorder %s49_s12, %s10526_s27  ;;  %p10532_p9 = scmp.lt.s32.totalorder %s10526_s27, %s10526_s27 }
  0x53   :  { %p10533_p10 = por %p10532_p9, %p10531_p8 }
  0x55   :  { %p10534_p11 = pnand %p10533_p10, %p10527_p7 }
  0x57   :  { %10537 = shalt.err (!%p10534_p11)
}
  0x58   :  { %s10649_s0 = smov 256   ;;  %s10650_s30 = smov [#allocation10]  }
  0x59   :  { %54 = dma.hbm_to_vmem [thread:$0]  %s11284_s2, 98304, %s49_s12, [#allocation6], %s10649_s0, %s10649_s0, %s10645_s24  }
  0x5a   :  { %s74_s11 = sshll.u32 %s10650_s30, 4  ;;  %s10538_s13 = scalar_lea.hbm %s11287_s5, 192  ;;  %s75_s11 = int_to_ptr.vmem [resolvable:$true] %s74_s11 }
  0x5b   :  { %p10539_p12 = scmp.ne.s32.totalorder %s11287_s5, %s10538_s13  ;;  %p10542_p13 = scmp.lt.u32.totalorder %s10538_s13, %s11287_s5 }
  0x5d   :  { %p10544_p0 = pnand %p10542_p13, %p10539_p12 }
  0x5f   :  { %10547 = shalt.err (!%p10544_p0)
}
  0x60   :  { %s10548_s6 = scalar_lea.vmem %s75_s11, 192  ;;  %p10553_p2 = scmp.lt.s32.totalorder %s75_s11, %s75_s11 }
  0x61   :  { %p10549_p1 = scmp.ne.s32.totalorder %s75_s11, %s10548_s6  ;;  %p10554_p3 = scmp.lt.s32.totalorder %s10548_s6, %s10548_s6 }
  0x63   :  { %p10555_p4 = por %p10554_p3, %p10553_p2 }
  0x65   :  { %p10556_p5 = pnand %p10555_p4, %p10549_p1 }
  0x67   :  { %10559 = shalt.err (!%p10556_p5)
}
  0x68   :  { %s10651_s2 = smov 64   ;;  %s10652_s24 = smov 4  }
  0x69   :  { %80 = dma.hbm_to_vmem [thread:$0]  %s11287_s5, 192, %s75_s11, [#allocation9], %s10651_s2, %s10651_s2, %s10652_s24  }
  0x6a   :  { %s10653_s19 = smov [#allocation13]   ;;  %s10560_s23 = scalar_lea.hbm %s11289_s7, 128 }
  0x6b   :  { %s99_s20 = sshll.u32 %s10653_s19, 4  ;;  %p10561_p6 = scmp.ne.s32.totalorder %s11289_s7, %s10560_s23  ;;  %s100_s20 = int_to_ptr.vmem [resolvable:$true] %s99_s20 }
  0x6c   :  { %p10564_p7 = scmp.lt.u32.totalorder %s10560_s23, %s11289_s7 }
  0x6e   :  { %p10566_p8 = pnand %p10564_p7, %p10561_p6 }
  0x70   :  { %10569 = shalt.err (!%p10566_p8)
}
  0x71   :  { %s10570_s0 = scalar_lea.vmem %s100_s20, 128  ;;  %p10575_p10 = scmp.lt.s32.totalorder %s100_s20, %s100_s20 }
  0x72   :  { %p10571_p9 = scmp.ne.s32.totalorder %s100_s20, %s10570_s0  ;;  %p10576_p11 = scmp.lt.s32.totalorder %s10570_s0, %s10570_s0 }
  0x74   :  { %p10577_p12 = por %p10576_p11, %p10575_p10 }
  0x76   :  { %p10578_p13 = pnand %p10577_p12, %p10571_p9 }
  0x78   :  { %10581 = shalt.err (!%p10578_p13)
}
  0x79   :  { %102 = dma.hbm_to_vmem [thread:$0]  %s11289_s7, 128, %s100_s20, [#allocation12]  }
  0x7a   :  { %10626 = dma.done.wait [#allocation3], 128  }
  0x7b   :  { %10627 = vsyncadd [#allocation3], 4294967168 }
  0x7c   :  { %10628 = dma.done.wait [#allocation6], 104448  }
  0x7d   :  { %10629 = vsyncadd [#allocation6], 4294862848 }
  0x7e   :  { %10630 = dma.done.wait [#allocation9], 576  }
  0x7f   :  { %10631 = vsyncadd [#allocation9], 4294966720 }
  0x80   :  { %10632 = dma.done.wait [#allocation12], 176  }
  0x81   :  { %10633 = vsyncadd [#allocation12], 4294967120  ;;  %v10654_v0 = vmov 0   ;;  %v127_v1 = vld [vmem:[#allocation5] sm:$0xff]  ;;  %v128_v7 = vld [vmem:[#allocation5 + $0x8] sm:$0xff]  ;;  %vm265_vm0 = vcmask 261120  }
  0x82   :  { %301 = vmatprep.mubr.bf16.mxu0 %v10654_v0  ;;  %342 = vmatprep.mubr.bf16.mxu1 %v10654_v0  ;;  %v131_v2 = vld [vmem:[#allocation5 + $0x20] sm:$0xff]  ;;  %v132_v9 = vld [vmem:[#allocation5 + $0x28] sm:$0xff]  ;;  %v129_v15 = vld [vmem:[#allocation5 + $0x10] sm:$0xff]  ;;  %vm7815_vm1 = vcmask 80896  }
  0x83   :  { %9170 = vset.pattern.permute.xlu0 %v10654_v0  ;;  %v135_v3 = vld [vmem:[#allocation5 + $0x40] sm:$0xff]  ;;  %v7881_v4 = vcombine.high %v127_v1, %v131_v2  ;;  %v7880_v5 = vcombine.low %v127_v1, %v131_v2  ;;  %v136_v10 = vld [vmem:[#allocation5 + $0x48] sm:$0xff]  ;;  %v7883_v12 = vcombine.high %v128_v7, %v132_v9  ;;  %v7882_v13 = vcombine.low %v128_v7, %v132_v9  ;;  %v133_v16 = vld [vmem:[#allocation5 + $0x30] sm:$0xff] }
  0x84   :  { %v139_v6 = vld [vmem:[#allocation5 + $0x60] sm:$0xff]  ;;  %v140_v11 = vld [vmem:[#allocation5 + $0x68] sm:$0xff]  ;;  %v125_v18 = vld [vmem:[#allocation2] sm:$0xff]  ;;  %v7885_v21 = vcombine.high %v129_v15, %v133_v16  ;;  %v7884_v28 = vcombine.low %v129_v15, %v133_v16 }
  0x85   :  { %v7889_v8 = vcombine.high %v135_v3, %v139_v6  ;;  %269 = vmatprep.subr.bf16.mxu0 %v7881_v4  ;;  %v7891_v14 = vcombine.high %v136_v10, %v140_v11  ;;  %v7888_v17 = vcombine.low %v135_v3, %v139_v6  ;;  %v130_v19 = vld [vmem:[#allocation5 + $0x18] sm:$0xff]  ;;  %310 = vmatprep.subr.bf16.mxu1 %v7883_v12  ;;  %v137_v23 = vld [vmem:[#allocation5 + $0x50] sm:$0xff] }
  0x86   :  { %270 = vmatpush1.bf16.msra.mxu0 %v7880_v5  ;;  %v134_v20 = vld [vmem:[#allocation5 + $0x38] sm:$0xff]  ;;  %311 = vmatpush1.bf16.msra.mxu1 %v7882_v13  ;;  %v7890_v22 = vcombine.low %v136_v10, %v140_v11  ;;  %v141_v24 = vld [vmem:[#allocation5 + $0x70] sm:$0xff]  ;;  %v126_v25 = vpack.c.bf16 %v125_v18, %v125_v18 }
  0x87   :  { %271 = vmatprep.subr.bf16.mxu0 %v7889_v8  ;;  %312 = vmatprep.subr.bf16.mxu1 %v7891_v14  ;;  %v7887_v26 = vcombine.high %v130_v19, %v134_v20  ;;  %v138_v27 = vld [vmem:[#allocation5 + $0x58] sm:$0xff]  ;;  %v7893_v30 = vcombine.high %v137_v23, %v141_v24  ;;  %v7886_v31 = vcombine.low %v130_v19, %v134_v20  ;;  %v9173_v34 = vld [vmem:[#allocation7 + $0x4] ss:$16 sps:$4 sm:$0xff]   ;;  %v9171_v37 = vld [vmem:[#allocation7] ss:$16 sps:$4 sm:$0xff]  }
  0x88   :  { %v142_v29 = vld [vmem:[#allocation5 + $0x78] sm:$0xff]  ;;  %v7892_v33 = vcombine.low %v137_v23, %v141_v24  ;;  %v9179_v38 = vld [vmem:[#allocation7 + $0x24] ss:$16 sps:$4 sm:$0xff]   ;;  %v9177_v41 = vld [vmem:[#allocation7 + $0x20] ss:$16 sps:$4 sm:$0xff]  }
  0x89   :  { %v7895_v32 = vcombine.high %v138_v27, %v142_v29  ;;  %v7894_v35 = vcombine.low %v138_v27, %v142_v29  ;;  %v9176_v36 = vld [vmem:[#allocation7 + $0xc] ss:$16 sps:$4 sm:$0xff]   ;;  %v9174_v39 = vld [vmem:[#allocation7 + $0x8] ss:$16 sps:$4 sm:$0xff]   ;;  %v9185_v42 = vld [vmem:[#allocation7 + $0x44] ss:$16 sps:$4 sm:$0xff]  }
  0x8a   :  { %272 = vmatpush1.bf16.msra.mxu0 %v7888_v17  ;;  %313 = vmatpush1.bf16.msra.mxu1 %v7890_v22  ;;  %v9182_v40 = vld [vmem:[#allocation7 + $0x2c] ss:$16 sps:$4 sm:$0xff]   ;;  %v9180_v43 = vld [vmem:[#allocation7 + $0x28] ss:$16 sps:$4 sm:$0xff]   ;;  %v9183_v45 = vld [vmem:[#allocation7 + $0x40] ss:$16 sps:$4 sm:$0xff]  }
  0x8b   :  { %351 = vmatprep.subr.bf16.mxu0 %v7885_v21  ;;  %392 = vmatprep.subr.bf16.mxu1 %v7887_v26  ;;  %v9188_v44 = vld [vmem:[#allocation7 + $0x4c] ss:$16 sps:$4 sm:$0xff]   ;;  %v9191_v46 = vld [vmem:[#allocation7 + $0x64] ss:$16 sps:$4 sm:$0xff]   ;;  %v9186_v47 = vld [vmem:[#allocation7 + $0x48] ss:$16 sps:$4 sm:$0xff]  }
  0x8c   :  { %v9194_v48 = vld [vmem:[#allocation7 + $0x6c] ss:$16 sps:$4 sm:$0xff]   ;;  %v9189_v49 = vld [vmem:[#allocation7 + $0x60] ss:$16 sps:$4 sm:$0xff]   ;;  %v9197_v50 = vld [vmem:[#allocation7 + $0x84] ss:$16 sps:$4 sm:$0xff]  }
  0x8d   :  { %7896 = vmatmul.mubr.msk.bf16.vlgmr.msra.gmra.mrb[0].mxu0 %vm265_vm0, %v126_v25  ;;  %7897 = vmatmul.mubr.msk.bf16.vlgmr.msra.gmra.mrb[0].mxu1 %vm265_vm0, %v126_v25  ;;  %v9192_v51 = vld [vmem:[#allocation7 + $0x68] ss:$16 sps:$4 sm:$0xff]   ;;  %v9200_v52 = vld [vmem:[#allocation7 + $0x8c] ss:$16 sps:$4 sm:$0xff]   ;;  %v9195_v53 = vld [vmem:[#allocation7 + $0x80] ss:$16 sps:$4 sm:$0xff]  }
  0x8e   :  { %352 = vmatpush1.bf16.msra.mxu0 %v7884_v28  ;;  %383 = vmatprep.mubr.bf16.mxu0 %v10654_v0  ;;  %v9203_v54 = vld [vmem:[#allocation7 + $0xa4] ss:$16 sps:$4 sm:$0xff]   ;;  %v9198_v55 = vld [vmem:[#allocation7 + $0x88] ss:$16 sps:$4 sm:$0xff]   ;;  %v9206_v56 = vld [vmem:[#allocation7 + $0xac] ss:$16 sps:$4 sm:$0xff]  }
  0x8f   :  { %353 = vmatprep.subr.bf16.mxu0 %v7893_v30  ;;  %393 = vmatpush1.bf16.msra.mxu1 %v7886_v31  ;;  %v9201_v57 = vld [vmem:[#allocation7 + $0xa0] ss:$16 sps:$4 sm:$0xff]   ;;  %v9209_v58 = vld [vmem:[#allocation7 + $0xc4] ss:$16 sps:$4 sm:$0xff]   ;;  %v9204_v59 = vld [vmem:[#allocation7 + $0xa8] ss:$16 sps:$4 sm:$0xff]  }
  0x90   :  { %424 = vmatprep.mubr.bf16.mxu1 %v10654_v0  ;;  %394 = vmatprep.subr.bf16.mxu1 %v7895_v32  ;;  %v9212_v60 = vld [vmem:[#allocation7 + $0xcc] ss:$16 sps:$4 sm:$0xff]   ;;  %v9207_v61 = vld [vmem:[#allocation7 + $0xc0] ss:$16 sps:$4 sm:$0xff]   ;;  %v9210_v62 = vld [vmem:[#allocation7 + $0xc8] ss:$16 sps:$4 sm:$0xff]  }
  0x91   :  { %v9215_v63 = vld [vmem:[#allocation7 + $0xe4] ss:$16 sps:$4 sm:$0xff]   ;;  %v9213_v1 = vld [vmem:[#allocation7 + $0xe0] ss:$16 sps:$4 sm:$0xff]   ;;  %v9218_v2 = vld [vmem:[#allocation7 + $0xec] ss:$16 sps:$4 sm:$0xff]  }
  0x92   :  { %354 = vmatpush1.bf16.msra.mxu0 %v7892_v33  ;;  %v9221_v3 = vld [vmem:[#allocation7 + $0x104] ss:$16 sps:$4 sm:$0xff]   ;;  %v9216_v4 = vld [vmem:[#allocation7 + $0xe8] ss:$16 sps:$4 sm:$0xff]   ;;  %v9224_v5 = vld [vmem:[#allocation7 + $0x10c] ss:$16 sps:$4 sm:$0xff]  }
  0x93   :  { %2007 = vmatprep.subr.bf16.mxu0 %v9173_v34  ;;  %395 = vmatpush1.bf16.msra.mxu1 %v7894_v35  ;;  %v9219_v6 = vld [vmem:[#allocation7 + $0x100] ss:$16 sps:$4 sm:$0xff]   ;;  %v9227_v7 = vld [vmem:[#allocation7 + $0x124] ss:$16 sps:$4 sm:$0xff]   ;;  %v9222_v8 = vld [vmem:[#allocation7 + $0x108] ss:$16 sps:$4 sm:$0xff]  }
  0x94   :  { %2171 = vmatprep.subr.bf16.mxu1 %v9176_v36  ;;  %v9230_v9 = vld [vmem:[#allocation7 + $0x12c] ss:$16 sps:$4 sm:$0xff]   ;;  %v9225_v10 = vld [vmem:[#allocation7 + $0x120] ss:$16 sps:$4 sm:$0xff]   ;;  %v9233_v11 = vld [vmem:[#allocation7 + $0x144] ss:$16 sps:$4 sm:$0xff]  }
  0x95   :  { %7898 = vmatmul.mubr.msk.bf16.vlgmr.msra.gmra.mrb[4].mxu0 %vm265_vm0, %v126_v25  ;;  %v9228_v12 = vld [vmem:[#allocation7 + $0x128] ss:$16 sps:$4 sm:$0xff]   ;;  %v9236_v13 = vld [vmem:[#allocation7 + $0x14c] ss:$16 sps:$4 sm:$0xff]   ;;  %v9231_v14 = vld [vmem:[#allocation7 + $0x140] ss:$16 sps:$4 sm:$0xff]  }
  0x96   :  { %2008 = vmatpush1.bf16.msra.mxu0 %v9171_v37  ;;  %7899 = vmatmul.mubr.msk.bf16.vlgmr.msra.gmra.mrb[4].mxu1 %vm265_vm0, %v126_v25  ;;  %v9239_v15 = vld [vmem:[#allocation7 + $0x164] ss:$16 sps:$4 sm:$0xff]   ;;  %v9234_v16 = vld [vmem:[#allocation7 + $0x148] ss:$16 sps:$4 sm:$0xff]   ;;  %v9242_v17 = vld [vmem:[#allocation7 + $0x16c] ss:$16 sps:$4 sm:$0xff]  }
  0x97   :  { %2009 = vmatprep.subr.bf16.mxu0 %v9179_v38  ;;  %2172 = vmatpush1.bf16.msra.mxu1 %v9174_v39  ;;  %v9237_v18 = vld [vmem:[#allocation7 + $0x160] ss:$16 sps:$4 sm:$0xff]   ;;  %v9245_v19 = vld [vmem:[#allocation7 + $0x184] ss:$16 sps:$4 sm:$0xff]   ;;  %v9240_v20 = vld [vmem:[#allocation7 + $0x168] ss:$16 sps:$4 sm:$0xff]   ;;  %v145_v38 = vlaneseq }
  0x98   :  { %2173 = vmatprep.subr.bf16.mxu1 %v9182_v40  ;;  %v9248_v21 = vld [vmem:[#allocation7 + $0x18c] ss:$16 sps:$4 sm:$0xff]   ;;  %v9243_v22 = vld [vmem:[#allocation7 + $0x180] ss:$16 sps:$4 sm:$0xff]   ;;  %v9251_v23 = vld [vmem:[#allocation7 + $0x1a4] ss:$16 sps:$4 sm:$0xff]  }
  0x99   :  { %v9246_v24 = vld [vmem:[#allocation7 + $0x188] ss:$16 sps:$4 sm:$0xff]   ;;  %v9254_v25 = vld [vmem:[#allocation7 + $0x1ac] ss:$16 sps:$4 sm:$0xff]   ;;  %v9249_v26 = vld [vmem:[#allocation7 + $0x1a0] ss:$16 sps:$4 sm:$0xff]  }
  0x9a   :  { %2010 = vmatpush1.bf16.msra.mxu0 %v9177_v41  ;;  %v9252_v27 = vld [vmem:[#allocation7 + $0x1a8] ss:$16 sps:$4 sm:$0xff]   ;;  %v9257_v28 = vld [vmem:[#allocation7 + $0x1c4] ss:$16 sps:$4 sm:$0xff]   ;;  %v9260_v29 = vld [vmem:[#allocation7 + $0x1cc] ss:$16 sps:$4 sm:$0xff]  }
  0x9b   :  { %2011 = vmatprep.subr.bf16.mxu0 %v9185_v42  ;;  %2174 = vmatpush1.bf16.msra.mxu1 %v9180_v43  ;;  %v9255_v30 = vld [vmem:[#allocation7 + $0x1c0] ss:$16 sps:$4 sm:$0xff]   ;;  %v9258_v31 = vld [vmem:[#allocation7 + $0x1c8] ss:$16 sps:$4 sm:$0xff]   ;;  %v9263_v32 = vld [vmem:[#allocation7 + $0x1e4] ss:$16 sps:$4 sm:$0xff]  }
  0x9c   :  { %2175 = vmatprep.subr.bf16.mxu1 %v9188_v44  ;;  %v9266_v33 = vld [vmem:[#allocation7 + $0x1ec] ss:$16 sps:$4 sm:$0xff]   ;;  %v9261_v34 = vld [vmem:[#allocation7 + $0x1e0] ss:$16 sps:$4 sm:$0xff]   ;;  %v9264_v35 = vld [vmem:[#allocation7 + $0x1e8] ss:$16 sps:$4 sm:$0xff]  }
  0x9d   :  { %v9269_v36 = vld [vmem:[#allocation7 + $0x204] ss:$16 sps:$4 sm:$0xff]   ;;  %v9272_v37 = vld [vmem:[#allocation7 + $0x20c] ss:$16 sps:$4 sm:$0xff]   ;;  %v10803_v39 = vshrl.u32 %v145_v38, 7 }
  0x9e   :  { %2012 = vmatpush1.bf16.msra.mxu0 %v9183_v45  ;;  %v10808_v41 = vld [vmem:[#allocation8] sm:$0xff]  ;;  %v9312_v38 = vld [vmem:[#allocation7 + $0x2e8] ss:$16 sps:$4 sm:$0xff]  }
  0x9f   :  { %2013 = vmatprep.subr.bf16.mxu0 %v9191_v46  ;;  %2176 = vmatpush1.bf16.msra.mxu1 %v9186_v47  ;;  %v10806_v40 = vsub.s32 0, %v10803_v39  ;;  %v10811_v42 = vsub.s32 1, %v10803_v39  ;;  %v10814_v43 = vsub.s32 3, %v10803_v39 }
  0xa0   :  { %2177 = vmatprep.subr.bf16.mxu1 %v9194_v48 }
  0xa1   :  { %v148_v44 = vrot.slane %v10808_v41, %v10806_v40  ;;  %v152_v45 = vrot.slane %v10808_v41, %v10811_v42  ;;  %v160_v47 = vrot.slane %v10808_v41, %v10814_v43 }
  0xa2   :  { %2014 = vmatpush1.bf16.msra.mxu0 %v9189_v49 }
  0xa3   :  { %2015 = vmatprep.subr.bf16.mxu0 %v9197_v50  ;;  %2178 = vmatpush1.bf16.msra.mxu1 %v9192_v51 }
  0xa4   :  { %2179 = vmatprep.subr.bf16.mxu1 %v9200_v52 }
  0xa6   :  { %2016 = vmatpush1.bf16.msra.mxu0 %v9195_v53 }
  0xa7   :  { %2017 = vmatprep.subr.bf16.mxu0 %v9203_v54  ;;  %2180 = vmatpush1.bf16.msra.mxu1 %v9198_v55 }
  0xa8   :  { %2181 = vmatprep.subr.bf16.mxu1 %v9206_v56 }
  0xaa   :  { %2018 = vmatpush1.bf16.msra.mxu0 %v9201_v57  ;;  %v9267_v57 = vld [vmem:[#allocation7 + $0x200] ss:$16 sps:$4 sm:$0xff]  }
  0xab   :  { %2019 = vmatprep.subr.bf16.mxu0 %v9209_v58  ;;  %2182 = vmatpush1.bf16.msra.mxu1 %v9204_v59  ;;  %v9270_v58 = vld [vmem:[#allocation7 + $0x208] ss:$16 sps:$4 sm:$0xff]  }
  0xac   :  { %2183 = vmatprep.subr.bf16.mxu1 %v9212_v60 }
  0xae   :  { %2020 = vmatpush1.bf16.msra.mxu0 %v9207_v61 }
  0xaf   :  { %2021 = vmatprep.subr.bf16.mxu0 %v9215_v63  ;;  %2184 = vmatpush1.bf16.msra.mxu1 %v9210_v62 }
  0xb0   :  { %2185 = vmatprep.subr.bf16.mxu1 %v9218_v2  ;;  %v9275_v2 = vld [vmem:[#allocation7 + $0x224] ss:$16 sps:$4 sm:$0xff]  }
  0xb2   :  { %2022 = vmatpush1.bf16.msra.mxu0 %v9213_v1 }
  0xb3   :  { %2023 = vmatprep.subr.bf16.mxu0 %v9221_v3  ;;  %2186 = vmatpush1.bf16.msra.mxu1 %v9216_v4  ;;  %v9278_v3 = vld [vmem:[#allocation7 + $0x22c] ss:$16 sps:$4 sm:$0xff]  }
  0xb4   :  { %2187 = vmatprep.subr.bf16.mxu1 %v9224_v5 }
  0xb6   :  { %2024 = vmatpush1.bf16.msra.mxu0 %v9219_v6 }
  0xb7   :  { %2025 = vmatprep.subr.bf16.mxu0 %v9227_v7  ;;  %2188 = vmatpush1.bf16.msra.mxu1 %v9222_v8  ;;  %v9273_v7 = vld [vmem:[#allocation7 + $0x220] ss:$16 sps:$4 sm:$0xff]   ;;  %v9276_v8 = vld [vmem:[#allocation7 + $0x228] ss:$16 sps:$4 sm:$0xff]  }
  0xb8   :  { %2189 = vmatprep.subr.bf16.mxu1 %v9230_v9 }
  0xba   :  { %2026 = vmatpush1.bf16.msra.mxu0 %v9225_v10  ;;  %v9281_v10 = vld [vmem:[#allocation7 + $0x244] ss:$16 sps:$4 sm:$0xff]  }
  0xbb   :  { %2027 = vmatprep.subr.bf16.mxu0 %v9233_v11  ;;  %2190 = vmatpush1.bf16.msra.mxu1 %v9228_v12  ;;  %v9284_v11 = vld [vmem:[#allocation7 + $0x24c] ss:$16 sps:$4 sm:$0xff]  }
  0xbc   :  { %2191 = vmatprep.subr.bf16.mxu1 %v9236_v13  ;;  %v9279_v13 = vld [vmem:[#allocation7 + $0x240] ss:$16 sps:$4 sm:$0xff]  }
  0xbe   :  { %2028 = vmatpush1.bf16.msra.mxu0 %v9231_v14  ;;  %v9282_v14 = vld [vmem:[#allocation7 + $0x248] ss:$16 sps:$4 sm:$0xff]  }
  0xbf   :  { %2029 = vmatprep.subr.bf16.mxu0 %v9239_v15  ;;  %2192 = vmatpush1.bf16.msra.mxu1 %v9234_v16  ;;  %v9287_v15 = vld [vmem:[#allocation7 + $0x264] ss:$16 sps:$4 sm:$0xff]   ;;  %v9290_v16 = vld [vmem:[#allocation7 + $0x26c] ss:$16 sps:$4 sm:$0xff]  }
  0xc0   :  { %2193 = vmatprep.subr.bf16.mxu1 %v9242_v17  ;;  %v9285_v17 = vld [vmem:[#allocation7 + $0x260] ss:$16 sps:$4 sm:$0xff]  }
  0xc2   :  { %2030 = vmatpush1.bf16.msra.mxu0 %v9237_v18  ;;  %v9288_v18 = vld [vmem:[#allocation7 + $0x268] ss:$16 sps:$4 sm:$0xff]  }
  0xc3   :  { %2031 = vmatprep.subr.bf16.mxu0 %v9245_v19  ;;  %2194 = vmatpush1.bf16.msra.mxu1 %v9240_v20  ;;  %v9293_v19 = vld [vmem:[#allocation7 + $0x284] ss:$16 sps:$4 sm:$0xff]   ;;  %v9296_v20 = vld [vmem:[#allocation7 + $0x28c] ss:$16 sps:$4 sm:$0xff]  }
  0xc4   :  { %2195 = vmatprep.subr.bf16.mxu1 %v9248_v21  ;;  %v9291_v21 = vld [vmem:[#allocation7 + $0x280] ss:$16 sps:$4 sm:$0xff]  }
  0xc6   :  { %2032 = vmatpush1.bf16.msra.mxu0 %v9243_v22  ;;  %v9294_v22 = vld [vmem:[#allocation7 + $0x288] ss:$16 sps:$4 sm:$0xff]  }
  0xc7   :  { %2033 = vmatprep.subr.bf16.mxu0 %v9251_v23  ;;  %2196 = vmatpush1.bf16.msra.mxu1 %v9246_v24  ;;  %v9299_v23 = vld [vmem:[#allocation7 + $0x2a4] ss:$16 sps:$4 sm:$0xff]   ;;  %v9302_v24 = vld [vmem:[#allocation7 + $0x2ac] ss:$16 sps:$4 sm:$0xff]  }
  0xc8   :  { %2197 = vmatprep.subr.bf16.mxu1 %v9254_v25  ;;  %v9297_v25 = vld [vmem:[#allocation7 + $0x2a0] ss:$16 sps:$4 sm:$0xff]  }
  0xca   :  { %2034 = vmatpush1.bf16.msra.mxu0 %v9249_v26  ;;  %v9300_v26 = vld [vmem:[#allocation7 + $0x2a8] ss:$16 sps:$4 sm:$0xff]  }
  0xcb   :  { %2198 = vmatpush1.bf16.msra.mxu1 %v9252_v27  ;;  %2035 = vmatprep.subr.bf16.mxu0 %v9257_v28  ;;  %v9305_v28 = vld [vmem:[#allocation7 + $0x2c4] ss:$16 sps:$4 sm:$0xff]  }
  0xcc   :  { %2199 = vmatprep.subr.bf16.mxu1 %v9260_v29  ;;  %v9308_v29 = vld [vmem:[#allocation7 + $0x2cc] ss:$16 sps:$4 sm:$0xff]  }
  0xce   :  { %2036 = vmatpush1.bf16.msra.mxu0 %v9255_v30 }
  0xcf   :  { %2200 = vmatpush1.bf16.msra.mxu1 %v9258_v31  ;;  %2037 = vmatprep.subr.bf16.mxu0 %v9263_v32 }
  0xd0   :  { %2201 = vmatprep.subr.bf16.mxu1 %v9266_v33  ;;  %v9303_v33 = vld [vmem:[#allocation7 + $0x2c0] ss:$16 sps:$4 sm:$0xff]  }
  0xd2   :  { %2038 = vmatpush1.bf16.msra.mxu0 %v9261_v34  ;;  %v9306_v34 = vld [vmem:[#allocation7 + $0x2c8] ss:$16 sps:$4 sm:$0xff]  }
  0xd3   :  { %2202 = vmatpush1.bf16.msra.mxu1 %v9264_v35  ;;  %2048 = vmatprep.subr.bf16.mxu0 %v9269_v36  ;;  %v9311_v35 = vld [vmem:[#allocation7 + $0x2e4] ss:$16 sps:$4 sm:$0xff]   ;;  %v9314_v36 = vld [vmem:[#allocation7 + $0x2ec] ss:$16 sps:$4 sm:$0xff]  }
  0xd4   :  { %2212 = vmatprep.subr.bf16.mxu1 %v9272_v37  ;;  %v9309_v37 = vld [vmem:[#allocation7 + $0x2e0] ss:$16 sps:$4 sm:$0xff]  }
 0x160   :  { %v303_v46 = vpop.f32.mrb[0].mxu0  ;;  %v10822_v52 = vpop.f32.mrb[0].mxu1 }
 0x161   :  { %v304_v48 = vadd.f32 %v303_v46, %v148_v44  ;;  %v305_v49 = vpop.f32.mrb[1].mxu0  ;;  %v346_v55 = vpop.f32.mrb[1].mxu1  ;;  %v9317_v44 = vld [vmem:[#allocation7 + $0x304] ss:$16 sps:$4 sm:$0xff]   ;;  %v9315_v46 = vld [vmem:[#allocation7 + $0x300] ss:$16 sps:$4 sm:$0xff]  }
 0x162   :  { %v306_v50 = vadd.f32 %v305_v49, %v152_v45  ;;  %v307_v51 = vpop.f32.mrb[2].mxu0  ;;  %v347_v59 = vadd.f32 %v346_v55, %v160_v47  ;;  %v348_v60 = vpop.f32.mrb[2].mxu1  ;;  %v9320_v45 = vld [vmem:[#allocation7 + $0x30c] ss:$16 sps:$4 sm:$0xff]   ;;  %v9318_v47 = vld [vmem:[#allocation7 + $0x308] ss:$16 sps:$4 sm:$0xff]  }
 0x163   :  { %v433_v53 = vmax.f32 %v304_v48, 0.0  ;;  %v308_v54 = vpop.f32.mrb[3].mxu0  ;;  %v349_v61 = vpop.f32.mrb[3].mxu1  ;;  %v9323_v48 = vld [vmem:[#allocation7 + $0x324] ss:$16 sps:$4 sm:$0xff]  }
 0x164   :  { %v434_v56 = vmax.f32 %v306_v50, 0.0  ;;  %v436_v63 = vmax.f32 %v347_v59, 0.0  ;;  %v9326_v49 = vld [vmem:[#allocation7 + $0x32c] ss:$16 sps:$4 sm:$0xff]   ;;  %v9321_v50 = vld [vmem:[#allocation7 + $0x320] ss:$16 sps:$4 sm:$0xff]  }
 0x165   :  { %v441_v1 = vpack.c.bf16 %v433_v53, %v433_v53  ;;  %v9324_v51 = vld [vmem:[#allocation7 + $0x328] ss:$16 sps:$4 sm:$0xff]   ;;  %v9329_v53 = vld [vmem:[#allocation7 + $0x344] ss:$16 sps:$4 sm:$0xff]   ;;  %v9332_v54 = vld [vmem:[#allocation7 + $0x34c] ss:$16 sps:$4 sm:$0xff]  }
 0x166   :  { %v442_v62 = vpack.c.bf16 %v434_v56, %v434_v56  ;;  %v444_v4 = vpack.c.bf16 %v436_v63, %v436_v63  ;;  %v9327_v55 = vld [vmem:[#allocation7 + $0x340] ss:$16 sps:$4 sm:$0xff]   ;;  %v9330_v56 = vld [vmem:[#allocation7 + $0x348] ss:$16 sps:$4 sm:$0xff]   ;;  %v9341_v61 = vld [vmem:[#allocation7 + $0x384] ss:$16 sps:$4 sm:$0xff]  }
 0x167   :  { %v9333_v59 = vld [vmem:[#allocation7 + $0x360] ss:$16 sps:$4 sm:$0xff]   ;;  %v9336_v60 = vld [vmem:[#allocation7 + $0x368] ss:$16 sps:$4 sm:$0xff]   ;;  %v10833_v63 = vsub.s32 2, %v10803_v39 }
 0x168   :  { %2039 = vmatprep.mubr.bf16.mxu0 %v442_v62  ;;  %2203 = vmatprep.mubr.bf16.mxu1 %v442_v62  ;;  %v10824_v5 = vpop.f32.mrb[4].mxu0  ;;  %v9344_v62 = vld [vmem:[#allocation7 + $0x38c] ss:$16 sps:$4 sm:$0xff]  }
 0x169   :  { %2040 = vmatmul.mubr.bf16.vlgmr.msra.gmra.mrb[8].mxu0 %v441_v1  ;;  %2204 = vmatmul.mubr.bf16.vlgmr.msra.gmra.mrb[8].mxu1 %v441_v1  ;;  %v10826_v6 = vpop.f32.mrb[5].mxu0  ;;  %v10828_v27 = vpop.f32.mrb[4].mxu1  ;;  %v9339_v1 = vld [vmem:[#allocation7 + $0x380] ss:$16 sps:$4 sm:$0xff]  }
 0x16a   :  { %2049 = vmatpush1.bf16.msra.mxu0 %v9267_v57  ;;  %2213 = vmatpush1.bf16.msra.mxu1 %v9270_v58  ;;  %v389_v9 = vpop.f32.mrb[6].mxu0  ;;  %v10830_v30 = vpop.f32.mrb[5].mxu1  ;;  %v9335_v57 = vld [vmem:[#allocation7 + $0x364] ss:$16 sps:$4 sm:$0xff]   ;;  %v9338_v58 = vld [vmem:[#allocation7 + $0x36c] ss:$16 sps:$4 sm:$0xff]  }
 0x16b   :  { %2050 = vmatprep.subr.bf16.mxu0 %v9275_v2  ;;  %2214 = vmatprep.subr.bf16.mxu1 %v9278_v3  ;;  %v390_v12 = vpop.f32.mrb[7].mxu0  ;;  %v430_v31 = vpop.f32.mrb[6].mxu1  ;;  %v9342_v2 = vld [vmem:[#allocation7 + $0x388] ss:$16 sps:$4 sm:$0xff]   ;;  %v9347_v3 = vld [vmem:[#allocation7 + $0x3a4] ss:$16 sps:$4 sm:$0xff]  }
 0x16c   :  { %2080 = vmatprep.mubr.bf16.mxu0 %v444_v4  ;;  %2244 = vmatprep.mubr.bf16.mxu1 %v444_v4  ;;  %v431_v32 = vpop.f32.mrb[7].mxu1  ;;  %v9350_v4 = vld [vmem:[#allocation7 + $0x3ac] ss:$16 sps:$4 sm:$0xff]   ;;  %v9345_v9 = vld [vmem:[#allocation7 + $0x3a0] ss:$16 sps:$4 sm:$0xff]  }
 0x16d   :  { %v9353_v12 = vld [vmem:[#allocation7 + $0x3c4] ss:$16 sps:$4 sm:$0xff]   ;;  %v9372_v32 = vld [vmem:[#allocation7 + $0x428] ss:$16 sps:$4 sm:$0xff]  }
 0x16e   :  { %2051 = vmatpush1.bf16.msra.mxu0 %v9273_v7  ;;  %2215 = vmatpush1.bf16.msra.mxu1 %v9276_v8  ;;  %v156_v7 = vrot.slane %v10808_v41, %v10833_v63  ;;  %v10838_v8 = vsub.s32 5, %v10803_v39 }
 0x16f   :  { %2052 = vmatprep.subr.bf16.mxu0 %v9281_v10  ;;  %2216 = vmatprep.subr.bf16.mxu1 %v9284_v11  ;;  %v9348_v10 = vld [vmem:[#allocation7 + $0x3a8] ss:$16 sps:$4 sm:$0xff]  }
 0x170   :  { %v345_v11 = vadd.f32 %v10822_v52, %v156_v7  ;;  %v9360_v52 = vld [vmem:[#allocation7 + $0x3e8] ss:$16 sps:$4 sm:$0xff]   ;;  %v9419_v7 = vld [vmem:[#allocation7 + $0x524] ss:$16 sps:$4 sm:$0xff]  }
 0x172   :  { %2053 = vmatpush1.bf16.msra.mxu0 %v9279_v13  ;;  %2217 = vmatpush1.bf16.msra.mxu1 %v9282_v14  ;;  %v9356_v13 = vld [vmem:[#allocation7 + $0x3cc] ss:$16 sps:$4 sm:$0xff]   ;;  %v168_v14 = vrot.slane %v10808_v41, %v10838_v8 }
 0x173   :  { %2054 = vmatprep.subr.bf16.mxu0 %v9287_v15  ;;  %2218 = vmatprep.subr.bf16.mxu1 %v9290_v16  ;;  %v9351_v15 = vld [vmem:[#allocation7 + $0x3c0] ss:$16 sps:$4 sm:$0xff]   ;;  %v9354_v16 = vld [vmem:[#allocation7 + $0x3c8] ss:$16 sps:$4 sm:$0xff]  }
 0x176   :  { %2055 = vmatpush1.bf16.msra.mxu0 %v9285_v17  ;;  %2219 = vmatpush1.bf16.msra.mxu1 %v9288_v18  ;;  %v9359_v17 = vld [vmem:[#allocation7 + $0x3e4] ss:$16 sps:$4 sm:$0xff]   ;;  %v435_v18 = vmax.f32 %v345_v11, 0.0  ;;  %v9420_v11 = vld [vmem:[#allocation7 + $0x528] ss:$16 sps:$4 sm:$0xff]  }
 0x177   :  { %2056 = vmatprep.subr.bf16.mxu0 %v9293_v19  ;;  %2220 = vmatprep.subr.bf16.mxu1 %v9296_v20  ;;  %v9362_v19 = vld [vmem:[#allocation7 + $0x3ec] ss:$16 sps:$4 sm:$0xff]   ;;  %v388_v20 = vadd.f32 %v10826_v6, %v168_v14  ;;  %v9369_v6 = vld [vmem:[#allocation7 + $0x420] ss:$16 sps:$4 sm:$0xff]  }
 0x178   :  { %v9423_v14 = vld [vmem:[#allocation7 + $0x540] ss:$16 sps:$4 sm:$0xff]  }
 0x179   :  { %v438_v41 = vmax.f32 %v388_v20, 0.0  ;;  %v9437_v20 = vld [vmem:[#allocation7 + $0x584] ss:$16 sps:$4 sm:$0xff]  }
 0x17a   :  { %2057 = vmatpush1.bf16.msra.mxu0 %v9291_v21  ;;  %2221 = vmatpush1.bf16.msra.mxu1 %v9294_v22  ;;  %v9357_v21 = vld [vmem:[#allocation7 + $0x3e0] ss:$16 sps:$4 sm:$0xff]   ;;  %v9365_v22 = vld [vmem:[#allocation7 + $0x404] ss:$16 sps:$4 sm:$0xff]  }
 0x17b   :  { %2058 = vmatprep.subr.bf16.mxu0 %v9299_v23  ;;  %2222 = vmatprep.subr.bf16.mxu1 %v9302_v24  ;;  %v9368_v23 = vld [vmem:[#allocation7 + $0x40c] ss:$16 sps:$4 sm:$0xff]   ;;  %v9363_v24 = vld [vmem:[#allocation7 + $0x400] ss:$16 sps:$4 sm:$0xff]   ;;  %v446_v31 = vpack.c.bf16 %v438_v41, %v438_v41 }
 0x17c   :  { %v9446_v41 = vld [vmem:[#allocation7 + $0x5ac] ss:$16 sps:$4 sm:$0xff]  }
 0x17e   :  { %2059 = vmatpush1.bf16.msra.mxu0 %v9297_v25  ;;  %2223 = vmatpush1.bf16.msra.mxu1 %v9300_v26  ;;  %v9366_v25 = vld [vmem:[#allocation7 + $0x408] ss:$16 sps:$4 sm:$0xff]   ;;  %v443_v26 = vpack.c.bf16 %v435_v18, %v435_v18  ;;  %v9429_v18 = vld [vmem:[#allocation7 + $0x560] ss:$16 sps:$4 sm:$0xff]  }
 0x17f   :  { %2060 = vmatprep.subr.bf16.mxu0 %v9305_v28  ;;  %2224 = vmatprep.subr.bf16.mxu1 %v9308_v29  ;;  %v9371_v28 = vld [vmem:[#allocation7 + $0x424] ss:$16 sps:$4 sm:$0xff]   ;;  %v9374_v29 = vld [vmem:[#allocation7 + $0x42c] ss:$16 sps:$4 sm:$0xff]  }
 0x182   :  { %2061 = vmatpush1.bf16.msra.mxu0 %v9303_v33  ;;  %2225 = vmatpush1.bf16.msra.mxu1 %v9306_v34  ;;  %v9377_v33 = vld [vmem:[#allocation7 + $0x444] ss:$16 sps:$4 sm:$0xff]   ;;  %v9380_v34 = vld [vmem:[#allocation7 + $0x44c] ss:$16 sps:$4 sm:$0xff]  }
 0x183   :  { %2062 = vmatprep.subr.bf16.mxu0 %v9311_v35  ;;  %2226 = vmatprep.subr.bf16.mxu1 %v9314_v36  ;;  %v9375_v35 = vld [vmem:[#allocation7 + $0x440] ss:$16 sps:$4 sm:$0xff]   ;;  %v9378_v36 = vld [vmem:[#allocation7 + $0x448] ss:$16 sps:$4 sm:$0xff]  }
 0x186   :  { %2063 = vmatpush1.bf16.msra.mxu0 %v9309_v37  ;;  %2227 = vmatpush1.bf16.msra.mxu1 %v9312_v38  ;;  %v9383_v37 = vld [vmem:[#allocation7 + $0x464] ss:$16 sps:$4 sm:$0xff]   ;;  %v9386_v38 = vld [vmem:[#allocation7 + $0x46c] ss:$16 sps:$4 sm:$0xff]  }
 0x187   :  { %2064 = vmatprep.subr.bf16.mxu0 %v9317_v44  ;;  %2228 = vmatprep.subr.bf16.mxu1 %v9320_v45  ;;  %v9381_v44 = vld [vmem:[#allocation7 + $0x460] ss:$16 sps:$4 sm:$0xff]   ;;  %v9384_v45 = vld [vmem:[#allocation7 + $0x468] ss:$16 sps:$4 sm:$0xff]  }
 0x18a   :  { %2065 = vmatpush1.bf16.msra.mxu0 %v9315_v46  ;;  %2229 = vmatpush1.bf16.msra.mxu1 %v9318_v47  ;;  %v9389_v46 = vld [vmem:[#allocation7 + $0x484] ss:$16 sps:$4 sm:$0xff]   ;;  %v9392_v47 = vld [vmem:[#allocation7 + $0x48c] ss:$16 sps:$4 sm:$0xff]  }
 0x18b   :  { %2066 = vmatprep.subr.bf16.mxu0 %v9323_v48  ;;  %2230 = vmatprep.subr.bf16.mxu1 %v9326_v49  ;;  %v9387_v48 = vld [vmem:[#allocation7 + $0x480] ss:$16 sps:$4 sm:$0xff]   ;;  %v9390_v49 = vld [vmem:[#allocation7 + $0x488] ss:$16 sps:$4 sm:$0xff]  }
 0x18e   :  { %2067 = vmatpush1.bf16.msra.mxu0 %v9321_v50  ;;  %2231 = vmatpush1.bf16.msra.mxu1 %v9324_v51  ;;  %v9395_v50 = vld [vmem:[#allocation7 + $0x4a4] ss:$16 sps:$4 sm:$0xff]   ;;  %v9398_v51 = vld [vmem:[#allocation7 + $0x4ac] ss:$16 sps:$4 sm:$0xff]  }
 0x18f   :  { %2068 = vmatprep.subr.bf16.mxu0 %v9329_v53  ;;  %2232 = vmatprep.subr.bf16.mxu1 %v9332_v54  ;;  %v9393_v53 = vld [vmem:[#allocation7 + $0x4a0] ss:$16 sps:$4 sm:$0xff]   ;;  %v9396_v54 = vld [vmem:[#allocation7 + $0x4a8] ss:$16 sps:$4 sm:$0xff]  }
 0x192   :  { %2069 = vmatpush1.bf16.msra.mxu0 %v9327_v55  ;;  %2233 = vmatpush1.bf16.msra.mxu1 %v9330_v56  ;;  %v9401_v55 = vld [vmem:[#allocation7 + $0x4c4] ss:$16 sps:$4 sm:$0xff]   ;;  %v9404_v56 = vld [vmem:[#allocation7 + $0x4cc] ss:$16 sps:$4 sm:$0xff]  }
 0x193   :  { %2070 = vmatprep.subr.bf16.mxu0 %v9335_v57  ;;  %2234 = vmatprep.subr.bf16.mxu1 %v9338_v58  ;;  %v9399_v57 = vld [vmem:[#allocation7 + $0x4c0] ss:$16 sps:$4 sm:$0xff]   ;;  %v9402_v58 = vld [vmem:[#allocation7 + $0x4c8] ss:$16 sps:$4 sm:$0xff]  }
 0x196   :  { %2071 = vmatpush1.bf16.msra.mxu0 %v9333_v59  ;;  %2235 = vmatpush1.bf16.msra.mxu1 %v9336_v60  ;;  %v9407_v59 = vld [vmem:[#allocation7 + $0x4e4] ss:$16 sps:$4 sm:$0xff]   ;;  %v9410_v60 = vld [vmem:[#allocation7 + $0x4ec] ss:$16 sps:$4 sm:$0xff]  }
 0x197   :  { %2072 = vmatprep.subr.bf16.mxu0 %v9341_v61  ;;  %2236 = vmatprep.subr.bf16.mxu1 %v9344_v62  ;;  %v9405_v61 = vld [vmem:[#allocation7 + $0x4e0] ss:$16 sps:$4 sm:$0xff]   ;;  %v9408_v62 = vld [vmem:[#allocation7 + $0x4e8] ss:$16 sps:$4 sm:$0xff]  }
 0x19a   :  { %2073 = vmatpush1.bf16.msra.mxu0 %v9339_v1  ;;  %2237 = vmatpush1.bf16.msra.mxu1 %v9342_v2  ;;  %v9413_v1 = vld [vmem:[#allocation7 + $0x504] ss:$16 sps:$4 sm:$0xff]   ;;  %v9416_v2 = vld [vmem:[#allocation7 + $0x50c] ss:$16 sps:$4 sm:$0xff]  }
 0x19b   :  { %2074 = vmatprep.subr.bf16.mxu0 %v9347_v3  ;;  %2238 = vmatprep.subr.bf16.mxu1 %v9350_v4  ;;  %v9411_v3 = vld [vmem:[#allocation7 + $0x500] ss:$16 sps:$4 sm:$0xff]   ;;  %v9414_v4 = vld [vmem:[#allocation7 + $0x508] ss:$16 sps:$4 sm:$0xff]  }
 0x19e   :  { %2075 = vmatpush1.bf16.msra.mxu0 %v9345_v9  ;;  %2239 = vmatpush1.bf16.msra.mxu1 %v9348_v10  ;;  %v9422_v9 = vld [vmem:[#allocation7 + $0x52c] ss:$16 sps:$4 sm:$0xff]   ;;  %v9417_v10 = vld [vmem:[#allocation7 + $0x520] ss:$16 sps:$4 sm:$0xff]  }
 0x19f   :  { %2076 = vmatprep.subr.bf16.mxu0 %v9353_v12  ;;  %2240 = vmatprep.subr.bf16.mxu1 %v9356_v13  ;;  %v9425_v12 = vld [vmem:[#allocation7 + $0x544] ss:$16 sps:$4 sm:$0xff]   ;;  %v9428_v13 = vld [vmem:[#allocation7 + $0x54c] ss:$16 sps:$4 sm:$0xff]  }
 0x1a2   :  { %2077 = vmatpush1.bf16.msra.mxu0 %v9351_v15  ;;  %2241 = vmatpush1.bf16.msra.mxu1 %v9354_v16  ;;  %v9426_v15 = vld [vmem:[#allocation7 + $0x548] ss:$16 sps:$4 sm:$0xff]   ;;  %v9431_v16 = vld [vmem:[#allocation7 + $0x564] ss:$16 sps:$4 sm:$0xff]  }
 0x1a3   :  { %2078 = vmatprep.subr.bf16.mxu0 %v9359_v17  ;;  %2242 = vmatprep.subr.bf16.mxu1 %v9362_v19  ;;  %v9434_v17 = vld [vmem:[#allocation7 + $0x56c] ss:$16 sps:$4 sm:$0xff]   ;;  %v9432_v19 = vld [vmem:[#allocation7 + $0x568] ss:$16 sps:$4 sm:$0xff]  }
 0x1a6   :  { %2079 = vmatpush1.bf16.msra.mxu0 %v9357_v21  ;;  %2243 = vmatpush1.bf16.msra.mxu1 %v9360_v52  ;;  %v9440_v21 = vld [vmem:[#allocation7 + $0x58c] ss:$16 sps:$4 sm:$0xff]   ;;  %v9435_v52 = vld [vmem:[#allocation7 + $0x580] ss:$16 sps:$4 sm:$0xff]  }
 0x1a7   :  { %2089 = vmatprep.subr.bf16.mxu0 %v9365_v22  ;;  %2253 = vmatprep.subr.bf16.mxu1 %v9368_v23  ;;  %v9438_v22 = vld [vmem:[#allocation7 + $0x588] ss:$16 sps:$4 sm:$0xff]   ;;  %v9443_v23 = vld [vmem:[#allocation7 + $0x5a4] ss:$16 sps:$4 sm:$0xff]  }
 0x1a9   :  { %2081 = vmatmul.mubr.bf16.vlgmr.msra.gmra.mrb[8].mxu0 %v443_v26  ;;  %2245 = vmatmul.mubr.bf16.vlgmr.msra.gmra.mrb[8].mxu1 %v443_v26  ;;  %v9444_v26 = vld [vmem:[#allocation7 + $0x5a8] ss:$16 sps:$4 sm:$0xff]  }
 0x1aa   :  { %2090 = vmatpush1.bf16.msra.mxu0 %v9363_v24  ;;  %2254 = vmatpush1.bf16.msra.mxu1 %v9366_v25  ;;  %v10845_v24 = vsub.s32 4, %v10803_v39  ;;  %v9441_v25 = vld [vmem:[#allocation7 + $0x5a0] ss:$16 sps:$4 sm:$0xff]  }
 0x1ab   :  { %2091 = vmatprep.subr.bf16.mxu0 %v9371_v28  ;;  %2255 = vmatprep.subr.bf16.mxu1 %v9374_v29  ;;  %v10848_v28 = vsub.s32 7, %v10803_v39  ;;  %v10850_v29 = vld [vmem:[#allocation8] sm:$0xff] }
 0x1ac   :  { %2121 = vmatprep.mubr.bf16.mxu0 %v446_v31  ;;  %2285 = vmatprep.mubr.bf16.mxu1 %v446_v31  ;;  %v164_v31 = vrot.slane %v10850_v29, %v10845_v24 }
 0x1ae   :  { %2092 = vmatpush1.bf16.msra.mxu0 %v9369_v6  ;;  %2256 = vmatpush1.bf16.msra.mxu1 %v9372_v32  ;;  %v9449_v6 = vld [vmem:[#allocation7 + $0x5c4] ss:$16 sps:$4 sm:$0xff]   ;;  %v9452_v32 = vld [vmem:[#allocation7 + $0x5cc] ss:$16 sps:$4 sm:$0xff]  }
 0x1af   :  { %2093 = vmatprep.subr.bf16.mxu0 %v9377_v33  ;;  %2257 = vmatprep.subr.bf16.mxu1 %v9380_v34  ;;  %v9447_v33 = vld [vmem:[#allocation7 + $0x5c0] ss:$16 sps:$4 sm:$0xff]   ;;  %v9450_v34 = vld [vmem:[#allocation7 + $0x5c8] ss:$16 sps:$4 sm:$0xff]  }
 0x1b2   :  { %2094 = vmatpush1.bf16.msra.mxu0 %v9375_v35  ;;  %2258 = vmatpush1.bf16.msra.mxu1 %v9378_v36  ;;  %v176_v35 = vrot.slane %v10850_v29, %v10848_v28  ;;  %v386_v36 = vadd.f32 %v10824_v5, %v164_v31  ;;  %v9515_v31 = vld [vmem:[#allocation7 + $0x724] ss:$16 sps:$4 sm:$0xff]  }
 0x1b3   :  { %2095 = vmatprep.subr.bf16.mxu0 %v9383_v37  ;;  %2259 = vmatprep.subr.bf16.mxu1 %v9386_v38  ;;  %v9455_v37 = vld [vmem:[#allocation7 + $0x5e4] ss:$16 sps:$4 sm:$0xff]   ;;  %v9458_v38 = vld [vmem:[#allocation7 + $0x5ec] ss:$16 sps:$4 sm:$0xff]  }
 0x1b6   :  { %2096 = vmatpush1.bf16.msra.mxu0 %v9381_v44  ;;  %2260 = vmatpush1.bf16.msra.mxu1 %v9384_v45  ;;  %v9453_v44 = vld [vmem:[#allocation7 + $0x5e0] ss:$16 sps:$4 sm:$0xff]   ;;  %v9456_v45 = vld [vmem:[#allocation7 + $0x5e8] ss:$16 sps:$4 sm:$0xff]  }
 0x1b7   :  { %2097 = vmatprep.subr.bf16.mxu0 %v9389_v46  ;;  %2261 = vmatprep.subr.bf16.mxu1 %v9392_v47  ;;  %v429_v46 = vadd.f32 %v10830_v30, %v176_v35  ;;  %v437_v47 = vmax.f32 %v386_v36, 0.0  ;;  %v9521_v35 = vld [vmem:[#allocation7 + $0x744] ss:$16 sps:$4 sm:$0xff]   ;;  %v9524_v36 = vld [vmem:[#allocation7 + $0x74c] ss:$16 sps:$4 sm:$0xff]  }
 0x1b9   :  { %v440_v5 = vmax.f32 %v429_v46, 0.0  ;;  %v9525_v46 = vld [vmem:[#allocation7 + $0x760] ss:$16 sps:$4 sm:$0xff]  }
 0x1ba   :  { %2098 = vmatpush1.bf16.msra.mxu0 %v9387_v48  ;;  %2262 = vmatpush1.bf16.msra.mxu1 %v9390_v49  ;;  %v9461_v48 = vld [vmem:[#allocation7 + $0x604] ss:$16 sps:$4 sm:$0xff]   ;;  %v9464_v49 = vld [vmem:[#allocation7 + $0x60c] ss:$16 sps:$4 sm:$0xff]  }
 0x1bb   :  { %2099 = vmatprep.subr.bf16.mxu0 %v9395_v50  ;;  %2263 = vmatprep.subr.bf16.mxu1 %v9398_v51  ;;  %v9459_v50 = vld [vmem:[#allocation7 + $0x600] ss:$16 sps:$4 sm:$0xff]   ;;  %v9462_v51 = vld [vmem:[#allocation7 + $0x608] ss:$16 sps:$4 sm:$0xff]   ;;  %v448_v30 = vpack.c.bf16 %v440_v5, %v440_v5  ;;  %v9539_v5 = vld [vmem:[#allocation7 + $0x7a4] ss:$16 sps:$4 sm:$0xff]  }
 0x1be   :  { %2100 = vmatpush1.bf16.msra.mxu0 %v9393_v53  ;;  %2264 = vmatpush1.bf16.msra.mxu1 %v9396_v54  ;;  %v445_v53 = vpack.c.bf16 %v437_v47, %v437_v47  ;;  %v9467_v54 = vld [vmem:[#allocation7 + $0x624] ss:$16 sps:$4 sm:$0xff]   ;;  %v9528_v47 = vld [vmem:[#allocation7 + $0x768] ss:$16 sps:$4 sm:$0xff]  }
 0x1bf   :  { %2101 = vmatprep.subr.bf16.mxu0 %v9401_v55  ;;  %2265 = vmatprep.subr.bf16.mxu1 %v9404_v56  ;;  %v9470_v55 = vld [vmem:[#allocation7 + $0x62c] ss:$16 sps:$4 sm:$0xff]   ;;  %v9465_v56 = vld [vmem:[#allocation7 + $0x620] ss:$16 sps:$4 sm:$0xff]  }
 0x1c2   :  { %2102 = vmatpush1.bf16.msra.mxu0 %v9399_v57  ;;  %2266 = vmatpush1.bf16.msra.mxu1 %v9402_v58  ;;  %v9468_v57 = vld [vmem:[#allocation7 + $0x628] ss:$16 sps:$4 sm:$0xff]   ;;  %v9473_v58 = vld [vmem:[#allocation7 + $0x644] ss:$16 sps:$4 sm:$0xff]  }
 0x1c3   :  { %2103 = vmatprep.subr.bf16.mxu0 %v9407_v59  ;;  %2267 = vmatprep.subr.bf16.mxu1 %v9410_v60  ;;  %v9476_v59 = vld [vmem:[#allocation7 + $0x64c] ss:$16 sps:$4 sm:$0xff]   ;;  %v9471_v60 = vld [vmem:[#allocation7 + $0x640] ss:$16 sps:$4 sm:$0xff]  }
 0x1c6   :  { %2104 = vmatpush1.bf16.msra.mxu0 %v9405_v61  ;;  %2268 = vmatpush1.bf16.msra.mxu1 %v9408_v62  ;;  %v9474_v61 = vld [vmem:[#allocation7 + $0x648] ss:$16 sps:$4 sm:$0xff]   ;;  %v9479_v62 = vld [vmem:[#allocation7 + $0x664] ss:$16 sps:$4 sm:$0xff]  }
 0x1c7   :  { %2105 = vmatprep.subr.bf16.mxu0 %v9413_v1  ;;  %2269 = vmatprep.subr.bf16.mxu1 %v9416_v2  ;;  %v9482_v1 = vld [vmem:[#allocation7 + $0x66c] ss:$16 sps:$4 sm:$0xff]   ;;  %v9477_v2 = vld [vmem:[#allocation7 + $0x660] ss:$16 sps:$4 sm:$0xff]  }
 0x1ca   :  { %2106 = vmatpush1.bf16.msra.mxu0 %v9411_v3  ;;  %2270 = vmatpush1.bf16.msra.mxu1 %v9414_v4  ;;  %v9480_v3 = vld [vmem:[#allocation7 + $0x668] ss:$16 sps:$4 sm:$0xff]   ;;  %v9485_v4 = vld [vmem:[#allocation7 + $0x684] ss:$16 sps:$4 sm:$0xff]  }
 0x1cb   :  { %2107 = vmatprep.subr.bf16.mxu0 %v9419_v7  ;;  %2271 = vmatprep.subr.bf16.mxu1 %v9422_v9  ;;  %v9488_v7 = vld [vmem:[#allocation7 + $0x68c] ss:$16 sps:$4 sm:$0xff]   ;;  %v9483_v9 = vld [vmem:[#allocation7 + $0x680] ss:$16 sps:$4 sm:$0xff]  }
 0x1ce   :  { %2108 = vmatpush1.bf16.msra.mxu0 %v9417_v10  ;;  %2272 = vmatpush1.bf16.msra.mxu1 %v9420_v11  ;;  %v9486_v10 = vld [vmem:[#allocation7 + $0x688] ss:$16 sps:$4 sm:$0xff]   ;;  %v9491_v11 = vld [vmem:[#allocation7 + $0x6a4] ss:$16 sps:$4 sm:$0xff]  }
 0x1cf   :  { %2109 = vmatprep.subr.bf16.mxu0 %v9425_v12  ;;  %2273 = vmatprep.subr.bf16.mxu1 %v9428_v13  ;;  %v9494_v12 = vld [vmem:[#allocation7 + $0x6ac] ss:$16 sps:$4 sm:$0xff]   ;;  %v9489_v13 = vld [vmem:[#allocation7 + $0x6a0] ss:$16 sps:$4 sm:$0xff]  }
 0x1d2   :  { %2110 = vmatpush1.bf16.msra.mxu0 %v9423_v14  ;;  %2274 = vmatpush1.bf16.msra.mxu1 %v9426_v15  ;;  %v9492_v14 = vld [vmem:[#allocation7 + $0x6a8] ss:$16 sps:$4 sm:$0xff]   ;;  %v9497_v15 = vld [vmem:[#allocation7 + $0x6c4] ss:$16 sps:$4 sm:$0xff]  }
 0x1d3   :  { %2111 = vmatprep.subr.bf16.mxu0 %v9431_v16  ;;  %2275 = vmatprep.subr.bf16.mxu1 %v9434_v17  ;;  %v9500_v16 = vld [vmem:[#allocation7 + $0x6cc] ss:$16 sps:$4 sm:$0xff]   ;;  %v9495_v17 = vld [vmem:[#allocation7 + $0x6c0] ss:$16 sps:$4 sm:$0xff]  }
 0x1d6   :  { %2112 = vmatpush1.bf16.msra.mxu0 %v9429_v18  ;;  %2276 = vmatpush1.bf16.msra.mxu1 %v9432_v19  ;;  %v9498_v18 = vld [vmem:[#allocation7 + $0x6c8] ss:$16 sps:$4 sm:$0xff]   ;;  %v9503_v19 = vld [vmem:[#allocation7 + $0x6e4] ss:$16 sps:$4 sm:$0xff]  }
 0x1d7   :  { %2113 = vmatprep.subr.bf16.mxu0 %v9437_v20  ;;  %2277 = vmatprep.subr.bf16.mxu1 %v9440_v21  ;;  %v9506_v20 = vld [vmem:[#allocation7 + $0x6ec] ss:$16 sps:$4 sm:$0xff]   ;;  %v9501_v21 = vld [vmem:[#allocation7 + $0x6e0] ss:$16 sps:$4 sm:$0xff]  }
 0x1da   :  { %2114 = vmatpush1.bf16.msra.mxu0 %v9435_v52  ;;  %2278 = vmatpush1.bf16.msra.mxu1 %v9438_v22  ;;  %v9504_v52 = vld [vmem:[#allocation7 + $0x6e8] ss:$16 sps:$4 sm:$0xff]   ;;  %v9509_v22 = vld [vmem:[#allocation7 + $0x704] ss:$16 sps:$4 sm:$0xff]  }
 0x1db   :  { %2115 = vmatprep.subr.bf16.mxu0 %v9443_v23  ;;  %2279 = vmatprep.subr.bf16.mxu1 %v9446_v41  ;;  %v9512_v23 = vld [vmem:[#allocation7 + $0x70c] ss:$16 sps:$4 sm:$0xff]   ;;  %v9507_v41 = vld [vmem:[#allocation7 + $0x700] ss:$16 sps:$4 sm:$0xff]  }
 0x1de   :  { %2116 = vmatpush1.bf16.msra.mxu0 %v9441_v25  ;;  %2280 = vmatpush1.bf16.msra.mxu1 %v9444_v26  ;;  %v9510_v25 = vld [vmem:[#allocation7 + $0x708] ss:$16 sps:$4 sm:$0xff]   ;;  %v10859_v26 = vsub.s32 6, %v10803_v39 }
 0x1df   :  { %2117 = vmatprep.subr.bf16.mxu0 %v9449_v6  ;;  %2281 = vmatprep.subr.bf16.mxu1 %v9452_v32  ;;  %v9518_v6 = vld [vmem:[#allocation7 + $0x72c] ss:$16 sps:$4 sm:$0xff]   ;;  %v9513_v32 = vld [vmem:[#allocation7 + $0x720] ss:$16 sps:$4 sm:$0xff]   ;;  %v9522_v39 = vld [vmem:[#allocation7 + $0x748] ss:$16 sps:$4 sm:$0xff]  }
 0x1e2   :  { %2118 = vmatpush1.bf16.msra.mxu0 %v9447_v33  ;;  %2282 = vmatpush1.bf16.msra.mxu1 %v9450_v34  ;;  %v9516_v33 = vld [vmem:[#allocation7 + $0x728] ss:$16 sps:$4 sm:$0xff]   ;;  %v172_v34 = vrot.slane %v10850_v29, %v10859_v26  ;;  %v9533_v29 = vld [vmem:[#allocation7 + $0x784] ss:$16 sps:$4 sm:$0xff]  }
 0x1e3   :  { %2119 = vmatprep.subr.bf16.mxu0 %v9455_v37  ;;  %2283 = vmatprep.subr.bf16.mxu1 %v9458_v38  ;;  %v9519_v37 = vld [vmem:[#allocation7 + $0x740] ss:$16 sps:$4 sm:$0xff]  }
 0x1e4   :  { %v427_v38 = vadd.f32 %v10828_v27, %v172_v34  ;;  %v9537_v27 = vld [vmem:[#allocation7 + $0x7a0] ss:$16 sps:$4 sm:$0xff]   ;;  %v9582_v34 = vld [vmem:[%s11285_s3 + $0xb0] sm:$0xff]  }
 0x1e6   :  { %2120 = vmatpush1.bf16.msra.mxu0 %v9453_v44  ;;  %2284 = vmatpush1.bf16.msra.mxu1 %v9456_v45  ;;  %v9527_v44 = vld [vmem:[#allocation7 + $0x764] ss:$16 sps:$4 sm:$0xff]   ;;  %v9530_v45 = vld [vmem:[#allocation7 + $0x76c] ss:$16 sps:$4 sm:$0xff]  }
 0x1e7   :  { %2130 = vmatprep.subr.bf16.mxu0 %v9461_v48  ;;  %2294 = vmatprep.subr.bf16.mxu1 %v9464_v49  ;;  %v439_v48 = vmax.f32 %v427_v38, 0.0  ;;  %v9536_v49 = vld [vmem:[#allocation7 + $0x78c] ss:$16 sps:$4 sm:$0xff]   ;;  %v705_v38 = vld [vmem:[#allocation10] sm:$0xf] }
 0x1e9   :  { %2122 = vmatmul.mubr.bf16.vlgmr.msra.gmra.mrb[8].mxu0 %v445_v53  ;;  %2286 = vmatmul.mubr.bf16.vlgmr.msra.gmra.mrb[8].mxu1 %v445_v53  ;;  %v9542_v53 = vld [vmem:[#allocation7 + $0x7ac] ss:$16 sps:$4 sm:$0xff]  }
 0x1ea   :  { %2131 = vmatpush1.bf16.msra.mxu0 %v9459_v50  ;;  %2295 = vmatpush1.bf16.msra.mxu1 %v9462_v51  ;;  %v9531_v50 = vld [vmem:[#allocation7 + $0x780] ss:$16 sps:$4 sm:$0xff]   ;;  %v9534_v51 = vld [vmem:[#allocation7 + $0x788] ss:$16 sps:$4 sm:$0xff]  }
 0x1eb   :  { %2132 = vmatprep.subr.bf16.mxu0 %v9467_v54  ;;  %2296 = vmatprep.subr.bf16.mxu1 %v9470_v55  ;;  %v9540_v54 = vld [vmem:[#allocation7 + $0x7a8] ss:$16 sps:$4 sm:$0xff]   ;;  %v9545_v55 = vld [vmem:[#allocation7 + $0x7c4] ss:$16 sps:$4 sm:$0xff]  }
 0x1ec   :  { %2162 = vmatprep.mubr.bf16.mxu0 %v448_v30  ;;  %2326 = vmatprep.mubr.bf16.mxu1 %v448_v30  ;;  %v9546_v30 = vld [vmem:[#allocation7 + $0x7c8] ss:$16 sps:$4 sm:$0xff]  }
 0x1ee   :  { %2133 = vmatpush1.bf16.msra.mxu0 %v9465_v56  ;;  %2297 = vmatpush1.bf16.msra.mxu1 %v9468_v57  ;;  %v9548_v56 = vld [vmem:[#allocation7 + $0x7cc] ss:$16 sps:$4 sm:$0xff]   ;;  %v9543_v57 = vld [vmem:[#allocation7 + $0x7c0] ss:$16 sps:$4 sm:$0xff]  }
 0x1ef   :  { %2134 = vmatprep.subr.bf16.mxu0 %v9473_v58  ;;  %2298 = vmatprep.subr.bf16.mxu1 %v9476_v59  ;;  %v9551_v58 = vld [vmem:[#allocation7 + $0x7e4] ss:$16 sps:$4 sm:$0xff]   ;;  %v9554_v59 = vld [vmem:[#allocation7 + $0x7ec] ss:$16 sps:$4 sm:$0xff]  }
 0x1f2   :  { %2135 = vmatpush1.bf16.msra.mxu0 %v9471_v60  ;;  %2299 = vmatpush1.bf16.msra.mxu1 %v9474_v61  ;;  %v9549_v60 = vld [vmem:[#allocation7 + $0x7e0] ss:$16 sps:$4 sm:$0xff]   ;;  %v9552_v61 = vld [vmem:[#allocation7 + $0x7e8] ss:$16 sps:$4 sm:$0xff]  }
 0x1f3   :  { %2136 = vmatprep.subr.bf16.mxu0 %v9479_v62  ;;  %2300 = vmatprep.subr.bf16.mxu1 %v9482_v1  ;;  %v9555_v62 = vld [vmem:[%s11285_s3 + $0x40] sm:$0xff]  }
 0x1f4   :  { %v9556_v1 = vld [vmem:[%s11285_s3 + $0xc0] sm:$0xff]  }
 0x1f6   :  { %2137 = vmatpush1.bf16.msra.mxu0 %v9477_v2  ;;  %2301 = vmatpush1.bf16.msra.mxu1 %v9480_v3  ;;  %v9557_v2 = vld [vmem:[%s11285_s3] sm:$0xff]  }
 0x1f7   :  { %2138 = vmatprep.subr.bf16.mxu0 %v9485_v4  ;;  %2302 = vmatprep.subr.bf16.mxu1 %v9488_v7  ;;  %v9558_v3 = vld [vmem:[%s11285_s3 + $0x80] sm:$0xff]   ;;  %v447_v4 = vpack.c.bf16 %v439_v48, %v439_v48  ;;  %v9559_v7 = vld [vmem:[%s11285_s3 + $0x48] sm:$0xff]  }
 0x1fa   :  { %2139 = vmatpush1.bf16.msra.mxu0 %v9483_v9  ;;  %2303 = vmatpush1.bf16.msra.mxu1 %v9486_v10  ;;  %v9560_v9 = vld [vmem:[%s11285_s3 + $0xc8] sm:$0xff]  }
 0x1fb   :  { %2140 = vmatprep.subr.bf16.mxu0 %v9491_v11  ;;  %2304 = vmatprep.subr.bf16.mxu1 %v9494_v12  ;;  %v9561_v10 = vld [vmem:[%s11285_s3 + $0x8] sm:$0xff]   ;;  %v9563_v12 = vld [vmem:[%s11285_s3 + $0x50] sm:$0xff]  }
 0x1fc   :  { %v9562_v11 = vld [vmem:[%s11285_s3 + $0x88] sm:$0xff]  }
 0x1fe   :  { %2141 = vmatpush1.bf16.msra.mxu0 %v9489_v13  ;;  %2305 = vmatpush1.bf16.msra.mxu1 %v9492_v14  ;;  %v9564_v13 = vld [vmem:[%s11285_s3 + $0xd0] sm:$0xff]  }
 0x1ff   :  { %2142 = vmatprep.subr.bf16.mxu0 %v9497_v15  ;;  %2306 = vmatprep.subr.bf16.mxu1 %v9500_v16  ;;  %v9565_v14 = vld [vmem:[%s11285_s3 + $0x10] sm:$0xff]   ;;  %v9567_v16 = vld [vmem:[%s11285_s3 + $0x58] sm:$0xff]  }
 0x200   :  { %v9566_v15 = vld [vmem:[%s11285_s3 + $0x90] sm:$0xff]  }
 0x202   :  { %2143 = vmatpush1.bf16.msra.mxu0 %v9495_v17  ;;  %2307 = vmatpush1.bf16.msra.mxu1 %v9498_v18  ;;  %v9568_v17 = vld [vmem:[%s11285_s3 + $0xd8] sm:$0xff]  }
 0x203   :  { %2144 = vmatprep.subr.bf16.mxu0 %v9503_v19  ;;  %2308 = vmatprep.subr.bf16.mxu1 %v9506_v20  ;;  %v9569_v18 = vld [vmem:[%s11285_s3 + $0x18] sm:$0xff]   ;;  %v9571_v20 = vld [vmem:[%s11285_s3 + $0x60] sm:$0xff]  }
 0x204   :  { %v9570_v19 = vld [vmem:[%s11285_s3 + $0x98] sm:$0xff]  }
 0x206   :  { %2145 = vmatpush1.bf16.msra.mxu0 %v9501_v21  ;;  %2309 = vmatpush1.bf16.msra.mxu1 %v9504_v52  ;;  %v9572_v21 = vld [vmem:[%s11285_s3 + $0xe0] sm:$0xff]  }
 0x207   :  { %2146 = vmatprep.subr.bf16.mxu0 %v9509_v22  ;;  %2310 = vmatprep.subr.bf16.mxu1 %v9512_v23  ;;  %v9573_v52 = vld [vmem:[%s11285_s3 + $0x20] sm:$0xff]   ;;  %v9575_v23 = vld [vmem:[%s11285_s3 + $0x68] sm:$0xff]  }
 0x208   :  { %v9574_v22 = vld [vmem:[%s11285_s3 + $0xa0] sm:$0xff]  }
 0x20a   :  { %2147 = vmatpush1.bf16.msra.mxu0 %v9507_v41  ;;  %2311 = vmatpush1.bf16.msra.mxu1 %v9510_v25  ;;  %v9576_v41 = vld [vmem:[%s11285_s3 + $0xe8] sm:$0xff]  }
 0x20b   :  { %2148 = vmatprep.subr.bf16.mxu0 %v9515_v31  ;;  %2312 = vmatprep.subr.bf16.mxu1 %v9518_v6  ;;  %v9577_v25 = vld [vmem:[%s11285_s3 + $0x28] sm:$0xff]   ;;  %v9579_v6 = vld [vmem:[%s11285_s3 + $0x70] sm:$0xff]  }
 0x20c   :  { %v9578_v31 = vld [vmem:[%s11285_s3 + $0xa8] sm:$0xff]  }
 0x20e   :  { %2149 = vmatpush1.bf16.msra.mxu0 %v9513_v32  ;;  %2313 = vmatpush1.bf16.msra.mxu1 %v9516_v33  ;;  %v9580_v32 = vld [vmem:[%s11285_s3 + $0xf0] sm:$0xff]  }
 0x20f   :  { %2150 = vmatprep.subr.bf16.mxu0 %v9521_v35  ;;  %2314 = vmatprep.subr.bf16.mxu1 %v9524_v36  ;;  %v9581_v33 = vld [vmem:[%s11285_s3 + $0x30] sm:$0xff]   ;;  %v9583_v35 = vld [vmem:[%s11285_s3 + $0x78] sm:$0xff]  }
 0x210   :  { %v9584_v36 = vld [vmem:[%s11285_s3 + $0xf8] sm:$0xff]  }
 0x212   :  { %2151 = vmatpush1.bf16.msra.mxu0 %v9519_v37  ;;  %2315 = vmatpush1.bf16.msra.mxu1 %v9522_v39  ;;  %v9585_v37 = vld [vmem:[%s11285_s3 + $0x38] sm:$0xff]  }
 0x213   :  { %2152 = vmatprep.subr.bf16.mxu0 %v9527_v44  ;;  %2316 = vmatprep.subr.bf16.mxu1 %v9530_v45  ;;  %v9586_v39 = vld [vmem:[%s11285_s3 + $0xb8] sm:$0xff]   ;;  %v710_v44 = vrot.slane %v705_v38, %v10806_v40  ;;  %v718_v45 = vrot.slane %v705_v38, %v10833_v63 }
 0x216   :  { %2153 = vmatpush1.bf16.msra.mxu0 %v9525_v46  ;;  %2317 = vmatpush1.bf16.msra.mxu1 %v9528_v47  ;;  %v714_v46 = vrot.slane %v705_v38, %v10811_v42  ;;  %v722_v47 = vrot.slane %v705_v38, %v10814_v43 }
 0x217   :  { %2154 = vmatprep.subr.bf16.mxu0 %v9533_v29  ;;  %2318 = vmatprep.subr.bf16.mxu1 %v9536_v49 }
 0x21a   :  { %2155 = vmatpush1.bf16.msra.mxu0 %v9531_v50  ;;  %2319 = vmatpush1.bf16.msra.mxu1 %v9534_v51 }
 0x21b   :  { %2156 = vmatprep.subr.bf16.mxu0 %v9539_v5  ;;  %2320 = vmatprep.subr.bf16.mxu1 %v9542_v53 }
 0x21e   :  { %2157 = vmatpush1.bf16.msra.mxu0 %v9537_v27  ;;  %2321 = vmatpush1.bf16.msra.mxu1 %v9540_v54 }
 0x21f   :  { %2158 = vmatprep.subr.bf16.mxu0 %v9545_v55  ;;  %2322 = vmatprep.subr.bf16.mxu1 %v9548_v56 }
 0x222   :  { %2159 = vmatpush1.bf16.msra.mxu0 %v9543_v57  ;;  %2323 = vmatpush1.bf16.msra.mxu1 %v9546_v30 }
 0x223   :  { %2160 = vmatprep.subr.bf16.mxu0 %v9551_v58  ;;  %2324 = vmatprep.subr.bf16.mxu1 %v9554_v59 }
 0x226   :  { %2161 = vmatpush1.bf16.msra.mxu0 %v9549_v60  ;;  %2325 = vmatpush1.bf16.msra.mxu1 %v9552_v61 }
 0x227   :  { %8935 = vmatprep.subr.bf16.mxu0 %v9555_v62  ;;  %8957 = vmatprep.subr.bf16.mxu1 %v9556_v1 }
 0x229   :  { %2163 = vmatmul.mubr.bf16.vlgmr.msra.gmra.mrb[8].mxu0 %v447_v4  ;;  %2327 = vmatmul.mubr.bf16.vlgmr.msra.gmra.mrb[8].mxu1 %v447_v4  ;;  %v2692_v4 = vld [vmem:[#allocation5 + $0xa0] sm:$0xff] }
 0x22a   :  { %8936 = vmatpush3.bf16.msra.mxu0 %v9557_v2  ;;  %8958 = vmatpush3.bf16.msra.mxu1 %v9558_v3  ;;  %v2688_v3 = vld [vmem:[#allocation5 + $0x80] sm:$0xff] }
 0x22b   :  { %8937 = vmatprep.subr.bf16.mxu0 %v9559_v7  ;;  %8959 = vmatprep.subr.bf16.mxu1 %v9560_v9  ;;  %v2689_v7 = vld [vmem:[#allocation5 + $0x88] sm:$0xff]  ;;  %v8190_v9 = vcombine.high %v2688_v3, %v2692_v4 }
 0x22e   :  { %8938 = vmatpush3.bf16.msra.mxu0 %v9561_v10  ;;  %8960 = vmatpush3.bf16.msra.mxu1 %v9562_v11  ;;  %v2693_v10 = vld [vmem:[#allocation5 + $0xa8] sm:$0xff]  ;;  %v8189_v11 = vcombine.low %v2688_v3, %v2692_v4  ;;  %v9599_v4 = vld [vmem:[#allocation7 + $0x840] ss:$16 sps:$4 sm:$0xff]  }
 0x22f   :  { %8939 = vmatprep.subr.bf16.mxu0 %v9563_v12  ;;  %8961 = vmatprep.subr.bf16.mxu1 %v9564_v13  ;;  %v8191_v12 = vcombine.low %v2689_v7, %v2693_v10  ;;  %v8192_v13 = vcombine.high %v2689_v7, %v2693_v10  ;;  %v9604_v3 = vld [vmem:[#allocation7 + $0x84c] ss:$16 sps:$4 sm:$0xff]   ;;  %v9602_v7 = vld [vmem:[#allocation7 + $0x848] ss:$16 sps:$4 sm:$0xff]  }
 0x230   :  { %v9610_v10 = vld [vmem:[#allocation7 + $0x86c] ss:$16 sps:$4 sm:$0xff]  }
 0x232   :  { %8940 = vmatpush3.bf16.msra.mxu0 %v9565_v14  ;;  %8962 = vmatpush3.bf16.msra.mxu1 %v9566_v15  ;;  %v2696_v14 = vld [vmem:[#allocation5 + $0xc0] sm:$0xff] }
 0x233   :  { %8941 = vmatprep.subr.bf16.mxu0 %v9567_v16  ;;  %8963 = vmatprep.subr.bf16.mxu1 %v9568_v17  ;;  %v2700_v15 = vld [vmem:[#allocation5 + $0xe0] sm:$0xff]  ;;  %v2697_v16 = vld [vmem:[#allocation5 + $0xc8] sm:$0xff] }
 0x234   :  { %v8198_v17 = vcombine.high %v2696_v14, %v2700_v15 }
 0x236   :  { %8942 = vmatpush3.bf16.msra.mxu0 %v9569_v18  ;;  %8964 = vmatpush3.bf16.msra.mxu1 %v9570_v19  ;;  %v2701_v18 = vld [vmem:[#allocation5 + $0xe8] sm:$0xff]  ;;  %v8197_v19 = vcombine.low %v2696_v14, %v2700_v15  ;;  %v9611_v15 = vld [vmem:[#allocation7 + $0x880] ss:$16 sps:$4 sm:$0xff]  }
 0x237   :  { %8943 = vmatprep.subr.bf16.mxu0 %v9571_v20  ;;  %8965 = vmatprep.subr.bf16.mxu1 %v9572_v21  ;;  %v8199_v20 = vcombine.low %v2697_v16, %v2701_v18  ;;  %v8200_v21 = vcombine.high %v2697_v16, %v2701_v18  ;;  %v9616_v14 = vld [vmem:[#allocation7 + $0x88c] ss:$16 sps:$4 sm:$0xff]   ;;  %v9614_v16 = vld [vmem:[#allocation7 + $0x888] ss:$16 sps:$4 sm:$0xff]  }
 0x238   :  { %v9622_v18 = vld [vmem:[#allocation7 + $0x8ac] ss:$16 sps:$4 sm:$0xff]  }
 0x23a   :  { %8944 = vmatpush3.bf16.msra.mxu0 %v9573_v52  ;;  %8966 = vmatpush3.bf16.msra.mxu1 %v9574_v22  ;;  %v2690_v52 = vld [vmem:[#allocation5 + $0x90] sm:$0xff] }
 0x23b   :  { %8945 = vmatprep.subr.bf16.mxu0 %v9575_v23  ;;  %8967 = vmatprep.subr.bf16.mxu1 %v9576_v41  ;;  %v2694_v22 = vld [vmem:[#allocation5 + $0xb0] sm:$0xff]  ;;  %v2691_v23 = vld [vmem:[#allocation5 + $0x98] sm:$0xff] }
 0x23c   :  { %v8194_v41 = vcombine.high %v2690_v52, %v2694_v22 }
 0x23e   :  { %8946 = vmatpush3.bf16.msra.mxu0 %v9577_v25  ;;  %8968 = vmatpush3.bf16.msra.mxu1 %v9578_v31  ;;  %v2695_v25 = vld [vmem:[#allocation5 + $0xb8] sm:$0xff]  ;;  %v8193_v31 = vcombine.low %v2690_v52, %v2694_v22  ;;  %v9623_v22 = vld [vmem:[#allocation7 + $0x8c0] ss:$16 sps:$4 sm:$0xff]  }
 0x23f   :  { %8947 = vmatprep.subr.bf16.mxu0 %v9579_v6  ;;  %8969 = vmatprep.subr.bf16.mxu1 %v9580_v32  ;;  %v8195_v6 = vcombine.low %v2691_v23, %v2695_v25  ;;  %v8196_v32 = vcombine.high %v2691_v23, %v2695_v25  ;;  %v9628_v52 = vld [vmem:[#allocation7 + $0x8cc] ss:$16 sps:$4 sm:$0xff]   ;;  %v9626_v23 = vld [vmem:[#allocation7 + $0x8c8] ss:$16 sps:$4 sm:$0xff]  }
 0x240   :  { %v9634_v25 = vld [vmem:[#allocation7 + $0x8ec] ss:$16 sps:$4 sm:$0xff]  }
 0x242   :  { %8948 = vmatpush3.bf16.msra.mxu0 %v9581_v33  ;;  %8970 = vmatpush3.bf16.msra.mxu1 %v9582_v34 }
 0x243   :  { %8949 = vmatprep.subr.bf16.mxu0 %v9583_v35  ;;  %8971 = vmatprep.subr.bf16.mxu1 %v9584_v36  ;;  %v8156_v35 = vld [vmem:[#allocation11] ss:$0 sm:$0xff] }
 0x246   :  { %8950 = vmatpush3.bf16.msra.mxu0 %v9585_v37  ;;  %8972 = vmatpush3.bf16.msra.mxu1 %v9586_v39 }
 0x247   :  { %2830 = vmatprep.subr.bf16.mxu0 %v8190_v9  ;;  %2871 = vmatprep.subr.bf16.mxu1 %v8192_v13  ;;  %v9607_v9 = vld [vmem:[#allocation7 + $0x864] ss:$16 sps:$4 sm:$0xff]  }
 0x248   :  { %v9613_v13 = vld [vmem:[#allocation7 + $0x884] ss:$16 sps:$4 sm:$0xff]  }
 0x2fc   :  { %v2164_v48 = vpop.f32.mrb[8].mxu0  ;;  %v2328_v29 = vpop.f32.mrb[8].mxu1 }
 0x2fd   :  { %v9067_v49 = vadd.f32 %v2164_v48, %v710_v44  ;;  %v9069_v50 = vadd.f32 %v2328_v29, %v718_v45  ;;  %v2166_v51 = vpop.f32.mrb[9].mxu0  ;;  %v2330_v5 = vpop.f32.mrb[9].mxu1  ;;  %v2698_v29 = vld [vmem:[#allocation5 + $0xd0] sm:$0xff] }
 0x2fe   :  { %v9068_v53 = vadd.f32 %v2166_v51, %v714_v46  ;;  %v9070_v27 = vadd.f32 %v2330_v5, %v722_v47  ;;  %v2168_v54 = vpop.f32.mrb[10].mxu0  ;;  %v2332_v55 = vpop.f32.mrb[10].mxu1  ;;  %v2703_v51 = vld [vmem:[#allocation5 + $0xf8] sm:$0xff] }
 0x2ff   :  { %v2335_v56 = vmax.f32 %v9067_v49, 0.0  ;;  %v2337_v57 = vmax.f32 %v9069_v50, 0.0  ;;  %v2169_v30 = vpop.f32.mrb[11].mxu0  ;;  %v2333_v58 = vpop.f32.mrb[11].mxu1  ;;  %v2702_v49 = vld [vmem:[#allocation5 + $0xf0] sm:$0xff]  ;;  %v2699_v50 = vld [vmem:[#allocation5 + $0xd8] sm:$0xff] }
 0x300   :  { %v2336_v59 = vmax.f32 %v9068_v53, 0.0  ;;  %v2338_v60 = vmax.f32 %v9070_v27, 0.0  ;;  %v8202_v27 = vcombine.high %v2698_v29, %v2702_v49  ;;  %v8204_v54 = vcombine.high %v2699_v50, %v2703_v51  ;;  %v9592_v30 = vld [vmem:[#allocation7 + $0x80c] ss:$16 sps:$4 sm:$0xff]   ;;  %v9587_v58 = vld [vmem:[#allocation7 + $0x800] ss:$16 sps:$4 sm:$0xff]  }
 0x301   :  { %v2339_v1 = vpack.c.bf16 %v2335_v56, %v2335_v56  ;;  %v2341_v2 = vpack.c.bf16 %v2337_v57, %v2337_v57  ;;  %v8201_v55 = vcombine.low %v2698_v29, %v2702_v49  ;;  %v8203_v56 = vcombine.low %v2699_v50, %v2703_v51  ;;  %v9589_v57 = vld [vmem:[#allocation7 + $0x804] ss:$16 sps:$4 sm:$0xff]   ;;  %v9658_v29 = vld [vmem:[#allocation7 + $0x96c] ss:$16 sps:$4 sm:$0xff]   ;;  %v9653_v49 = vld [vmem:[#allocation7 + $0x960] ss:$16 sps:$4 sm:$0xff]  }
 0x302   :  { %v2340_v61 = vpack.c.bf16 %v2336_v59, %v2336_v59  ;;  %v2342_v62 = vpack.c.bf16 %v2338_v60, %v2338_v60  ;;  %v9590_v59 = vld [vmem:[#allocation7 + $0x808] ss:$16 sps:$4 sm:$0xff]   ;;  %v9595_v60 = vld [vmem:[#allocation7 + $0x824] ss:$16 sps:$4 sm:$0xff]  }
 0x303   :  { %v9656_v50 = vld [vmem:[#allocation7 + $0x968] ss:$16 sps:$4 sm:$0xff]   ;;  %v9661_v51 = vld [vmem:[#allocation7 + $0x984] ss:$16 sps:$4 sm:$0xff]  }
 0x304   :  { %2638 = vmatprep.mubr.bf16.mxu0 %v2340_v61  ;;  %2678 = vmatprep.mubr.bf16.mxu1 %v2342_v62  ;;  %v9598_v61 = vld [vmem:[#allocation7 + $0x82c] ss:$16 sps:$4 sm:$0xff]   ;;  %v9593_v62 = vld [vmem:[#allocation7 + $0x820] ss:$16 sps:$4 sm:$0xff]  }
 0x305   :  { %2639 = vmatmul.mubr.bf16.vlgmr.msra.gmra.mrb[12].mxu0 %v2339_v1  ;;  %2679 = vmatmul.mubr.bf16.vlgmr.msra.gmra.mrb[12].mxu1 %v2341_v2  ;;  %v9596_v1 = vld [vmem:[#allocation7 + $0x828] ss:$16 sps:$4 sm:$0xff]   ;;  %v9601_v2 = vld [vmem:[#allocation7 + $0x844] ss:$16 sps:$4 sm:$0xff]  }
 0x306   :  { %2862 = vmatprep.mubr.bf16.mxu0 %v10654_v0  ;;  %2903 = vmatprep.mubr.bf16.mxu1 %v10654_v0 }
 0x307   :  { %2831 = vmatpush1.bf16.msra.mxu0 %v8189_v11  ;;  %2872 = vmatpush1.bf16.msra.mxu1 %v8191_v12  ;;  %v9605_v11 = vld [vmem:[#allocation7 + $0x860] ss:$16 sps:$4 sm:$0xff]   ;;  %v9608_v12 = vld [vmem:[#allocation7 + $0x868] ss:$16 sps:$4 sm:$0xff]  }
 0x308   :  { %2832 = vmatprep.subr.bf16.mxu0 %v8198_v17  ;;  %2873 = vmatprep.subr.bf16.mxu1 %v8200_v21  ;;  %v9619_v17 = vld [vmem:[#allocation7 + $0x8a4] ss:$16 sps:$4 sm:$0xff]  }
 0x309   :  { %v9625_v21 = vld [vmem:[#allocation7 + $0x8c4] ss:$16 sps:$4 sm:$0xff]  }
 0x30b   :  { %2833 = vmatpush1.bf16.msra.mxu0 %v8197_v19  ;;  %2874 = vmatpush1.bf16.msra.mxu1 %v8199_v20  ;;  %v9617_v19 = vld [vmem:[#allocation7 + $0x8a0] ss:$16 sps:$4 sm:$0xff]   ;;  %v9620_v20 = vld [vmem:[#allocation7 + $0x8a8] ss:$16 sps:$4 sm:$0xff]  }
 0x30c   :  { %2912 = vmatprep.subr.bf16.mxu0 %v8194_v41  ;;  %2953 = vmatprep.subr.bf16.mxu1 %v8196_v32  ;;  %v9631_v41 = vld [vmem:[#allocation7 + $0x8e4] ss:$16 sps:$4 sm:$0xff]  }
 0x30d   :  { %v9637_v32 = vld [vmem:[#allocation7 + $0x904] ss:$16 sps:$4 sm:$0xff]  }
 0x3d8   :  { %v8951_v33 = vpop.f32.mrb[12].mxu0  ;;  %v8973_v34 = vpop.f32.mrb[12].mxu1 }
 0x3d9   :  { %v8952_v36 = vpop.f32.mrb[13].mxu0  ;;  %v8974_v37 = vpop.f32.mrb[13].mxu1 }
 0x3da   :  { %v8953_v39 = vadd.f32 %v8952_v36, %v8951_v33  ;;  %v8975_v38 = vadd.f32 %v8974_v37, %v8973_v34  ;;  %v8954_v44 = vpop.f32.mrb[14].mxu0  ;;  %v8976_v45 = vpop.f32.mrb[14].mxu1  ;;  %v9640_v33 = vld [vmem:[#allocation7 + $0x90c] ss:$16 sps:$4 sm:$0xff]   ;;  %v9635_v34 = vld [vmem:[#allocation7 + $0x900] ss:$16 sps:$4 sm:$0xff]  }
 0x3db   :  { %v8955_v46 = vpop.f32.mrb[15].mxu0  ;;  %v8977_v47 = vpop.f32.mrb[15].mxu1  ;;  %v9643_v36 = vld [vmem:[#allocation7 + $0x924] ss:$16 sps:$4 sm:$0xff]   ;;  %v9646_v37 = vld [vmem:[#allocation7 + $0x92c] ss:$16 sps:$4 sm:$0xff]  }
 0x3dc   :  { %v2641_v48 = vadd.f32 %v8953_v39, %v8156_v35  ;;  %v9638_v35 = vld [vmem:[#allocation7 + $0x908] ss:$16 sps:$4 sm:$0xff]   ;;  %v9641_v39 = vld [vmem:[#allocation7 + $0x920] ss:$16 sps:$4 sm:$0xff]   ;;  %v9649_v44 = vld [vmem:[#allocation7 + $0x944] ss:$16 sps:$4 sm:$0xff]  }
 0x3dd   :  { %v9652_v45 = vld [vmem:[#allocation7 + $0x94c] ss:$16 sps:$4 sm:$0xff]   ;;  %v9647_v46 = vld [vmem:[#allocation7 + $0x940] ss:$16 sps:$4 sm:$0xff]   ;;  %v9650_v47 = vld [vmem:[#allocation7 + $0x948] ss:$16 sps:$4 sm:$0xff]  }
 0x3de   :  { %v2681_v5 = vadd.f32 %v8975_v38, %v2641_v48  ;;  %v9644_v38 = vld [vmem:[#allocation7 + $0x928] ss:$16 sps:$4 sm:$0xff]   ;;  %v9655_v48 = vld [vmem:[#allocation7 + $0x964] ss:$16 sps:$4 sm:$0xff]  }
 0x3e0   :  { %v10966_v53 = vpack.c.bf16 %v2681_v5, %v2681_v5  ;;  %v9664_v5 = vld [vmem:[#allocation7 + $0x98c] ss:$16 sps:$4 sm:$0xff]  }
 0x3e2   :  { %8205 = vmatmul.mubr.msk.bf16.vlgmr.msra.gmra.mrb[16].mxu0 %vm265_vm0, %v10966_v53  ;;  %8206 = vmatmul.mubr.msk.bf16.vlgmr.msra.gmra.mrb[16].mxu1 %vm265_vm0, %v10966_v53 }
 0x3e3   :  { %2913 = vmatpush1.bf16.msra.mxu0 %v8193_v31  ;;  %2954 = vmatpush1.bf16.msra.mxu1 %v8195_v6  ;;  %v9629_v31 = vld [vmem:[#allocation7 + $0x8e0] ss:$16 sps:$4 sm:$0xff]   ;;  %v9632_v6 = vld [vmem:[#allocation7 + $0x8e8] ss:$16 sps:$4 sm:$0xff]  }
 0x3e4   :  { %2914 = vmatprep.subr.bf16.mxu0 %v8202_v27  ;;  %2955 = vmatprep.subr.bf16.mxu1 %v8204_v54  ;;  %v9659_v27 = vld [vmem:[#allocation7 + $0x980] ss:$16 sps:$4 sm:$0xff]   ;;  %v9662_v54 = vld [vmem:[#allocation7 + $0x988] ss:$16 sps:$4 sm:$0xff]  }
 0x3e5   :  { %2944 = vmatprep.mubr.bf16.mxu0 %v10654_v0  ;;  %2985 = vmatprep.mubr.bf16.mxu1 %v10654_v0 }
 0x3e7   :  { %2915 = vmatpush1.bf16.msra.mxu0 %v8201_v55  ;;  %2956 = vmatpush1.bf16.msra.mxu1 %v8203_v56  ;;  %v9667_v55 = vld [vmem:[#allocation7 + $0x9a4] ss:$16 sps:$4 sm:$0xff]   ;;  %v9670_v56 = vld [vmem:[#allocation7 + $0x9ac] ss:$16 sps:$4 sm:$0xff]  }
 0x3e8   :  { %4570 = vmatprep.subr.bf16.mxu0 %v9589_v57  ;;  %4734 = vmatprep.subr.bf16.mxu1 %v9592_v30  ;;  %v9665_v57 = vld [vmem:[#allocation7 + $0x9a0] ss:$16 sps:$4 sm:$0xff]   ;;  %v9668_v30 = vld [vmem:[#allocation7 + $0x9a8] ss:$16 sps:$4 sm:$0xff]  }
 0x3ea   :  { %8207 = vmatmul.mubr.msk.bf16.vlgmr.msra.gmra.mrb[20].mxu0 %vm265_vm0, %v10966_v53  ;;  %8208 = vmatmul.mubr.msk.bf16.vlgmr.msra.gmra.mrb[20].mxu1 %vm265_vm0, %v10966_v53 }
 0x3eb   :  { %4571 = vmatpush1.bf16.msra.mxu0 %v9587_v58  ;;  %4735 = vmatpush1.bf16.msra.mxu1 %v9590_v59  ;;  %v9673_v58 = vld [vmem:[#allocation7 + $0x9c4] ss:$16 sps:$4 sm:$0xff]   ;;  %v9676_v59 = vld [vmem:[#allocation7 + $0x9cc] ss:$16 sps:$4 sm:$0xff]  }
 0x3ec   :  { %4572 = vmatprep.subr.bf16.mxu0 %v9595_v60  ;;  %4736 = vmatprep.subr.bf16.mxu1 %v9598_v61  ;;  %v9671_v60 = vld [vmem:[#allocation7 + $0x9c0] ss:$16 sps:$4 sm:$0xff]   ;;  %v9674_v61 = vld [vmem:[#allocation7 + $0x9c8] ss:$16 sps:$4 sm:$0xff]  }
 0x3ef   :  { %4573 = vmatpush1.bf16.msra.mxu0 %v9593_v62  ;;  %4737 = vmatpush1.bf16.msra.mxu1 %v9596_v1  ;;  %v9679_v62 = vld [vmem:[#allocation7 + $0x9e4] ss:$16 sps:$4 sm:$0xff]   ;;  %v9682_v1 = vld [vmem:[#allocation7 + $0x9ec] ss:$16 sps:$4 sm:$0xff]  }
 0x3f0   :  { %4574 = vmatprep.subr.bf16.mxu0 %v9601_v2  ;;  %4738 = vmatprep.subr.bf16.mxu1 %v9604_v3  ;;  %v9677_v2 = vld [vmem:[#allocation7 + $0x9e0] ss:$16 sps:$4 sm:$0xff]   ;;  %v9680_v3 = vld [vmem:[#allocation7 + $0x9e8] ss:$16 sps:$4 sm:$0xff]  }
 0x3f3   :  { %4575 = vmatpush1.bf16.msra.mxu0 %v9599_v4  ;;  %4739 = vmatpush1.bf16.msra.mxu1 %v9602_v7  ;;  %v9685_v4 = vld [vmem:[#allocation7 + $0xa04] ss:$16 sps:$4 sm:$0xff]   ;;  %v9688_v7 = vld [vmem:[#allocation7 + $0xa0c] ss:$16 sps:$4 sm:$0xff]  }
 0x3f4   :  { %4576 = vmatprep.subr.bf16.mxu0 %v9607_v9  ;;  %4740 = vmatprep.subr.bf16.mxu1 %v9610_v10  ;;  %v10978_v9 = vld [vmem:[#allocation8 + $0x8] sm:$0xff] }
 0x3f5   :  { %v2710_v10 = vrot.slane %v10978_v9, %v10806_v40 }
 0x3f7   :  { %4577 = vmatpush1.bf16.msra.mxu0 %v9605_v11  ;;  %4741 = vmatpush1.bf16.msra.mxu1 %v9608_v12  ;;  %v2714_v11 = vrot.slane %v10978_v9, %v10811_v42  ;;  %v2722_v12 = vrot.slane %v10978_v9, %v10814_v43 }
 0x3f8   :  { %4578 = vmatprep.subr.bf16.mxu0 %v9613_v13  ;;  %4742 = vmatprep.subr.bf16.mxu1 %v9616_v14 }
 0x3fb   :  { %4579 = vmatpush1.bf16.msra.mxu0 %v9611_v15  ;;  %4743 = vmatpush1.bf16.msra.mxu1 %v9614_v16 }
 0x3fc   :  { %4580 = vmatprep.subr.bf16.mxu0 %v9619_v17  ;;  %4744 = vmatprep.subr.bf16.mxu1 %v9622_v18 }
 0x3ff   :  { %4581 = vmatpush1.bf16.msra.mxu0 %v9617_v19  ;;  %4745 = vmatpush1.bf16.msra.mxu1 %v9620_v20 }
 0x400   :  { %4582 = vmatprep.subr.bf16.mxu0 %v9625_v21  ;;  %4746 = vmatprep.subr.bf16.mxu1 %v9628_v52 }
 0x403   :  { %4583 = vmatpush1.bf16.msra.mxu0 %v9623_v22  ;;  %4747 = vmatpush1.bf16.msra.mxu1 %v9626_v23 }
 0x404   :  { %4584 = vmatprep.subr.bf16.mxu0 %v9631_v41  ;;  %4748 = vmatprep.subr.bf16.mxu1 %v9634_v25 }
 0x407   :  { %4585 = vmatpush1.bf16.msra.mxu0 %v9629_v31  ;;  %4749 = vmatpush1.bf16.msra.mxu1 %v9632_v6  ;;  %v9683_v6 = vld [vmem:[#allocation7 + $0xa00] ss:$16 sps:$4 sm:$0xff]  }
 0x408   :  { %4586 = vmatprep.subr.bf16.mxu0 %v9637_v32  ;;  %4750 = vmatprep.subr.bf16.mxu1 %v9640_v33  ;;  %v9686_v32 = vld [vmem:[#allocation7 + $0xa08] ss:$16 sps:$4 sm:$0xff]  }
 0x40b   :  { %4587 = vmatpush1.bf16.msra.mxu0 %v9635_v34  ;;  %4751 = vmatpush1.bf16.msra.mxu1 %v9638_v35 }
 0x40c   :  { %4588 = vmatprep.subr.bf16.mxu0 %v9643_v36  ;;  %4752 = vmatprep.subr.bf16.mxu1 %v9646_v37  ;;  %v9691_v36 = vld [vmem:[#allocation7 + $0xa24] ss:$16 sps:$4 sm:$0xff]   ;;  %v9694_v37 = vld [vmem:[#allocation7 + $0xa2c] ss:$16 sps:$4 sm:$0xff]  }
 0x40f   :  { %4589 = vmatpush1.bf16.msra.mxu0 %v9641_v39  ;;  %4753 = vmatpush1.bf16.msra.mxu1 %v9644_v38 }
 0x410   :  { %4590 = vmatprep.subr.bf16.mxu0 %v9649_v44  ;;  %4754 = vmatprep.subr.bf16.mxu1 %v9652_v45 }
 0x413   :  { %4591 = vmatpush1.bf16.msra.mxu0 %v9647_v46  ;;  %4755 = vmatpush1.bf16.msra.mxu1 %v9650_v47  ;;  %v9689_v47 = vld [vmem:[#allocation7 + $0xa20] ss:$16 sps:$4 sm:$0xff]  }
 0x414   :  { %4592 = vmatprep.subr.bf16.mxu0 %v9655_v48  ;;  %4756 = vmatprep.subr.bf16.mxu1 %v9658_v29  ;;  %v9692_v48 = vld [vmem:[#allocation7 + $0xa28] ss:$16 sps:$4 sm:$0xff]  }
 0x417   :  { %4593 = vmatpush1.bf16.msra.mxu0 %v9653_v49  ;;  %4757 = vmatpush1.bf16.msra.mxu1 %v9656_v50  ;;  %v9697_v50 = vld [vmem:[#allocation7 + $0xa44] ss:$16 sps:$4 sm:$0xff]  }
 0x418   :  { %4594 = vmatprep.subr.bf16.mxu0 %v9661_v51  ;;  %4758 = vmatprep.subr.bf16.mxu1 %v9664_v5  ;;  %v9700_v51 = vld [vmem:[#allocation7 + $0xa4c] ss:$16 sps:$4 sm:$0xff]   ;;  %v9695_v5 = vld [vmem:[#allocation7 + $0xa40] ss:$16 sps:$4 sm:$0xff]  }
 0x41b   :  { %4595 = vmatpush1.bf16.msra.mxu0 %v9659_v27  ;;  %4759 = vmatpush1.bf16.msra.mxu1 %v9662_v54  ;;  %v9698_v27 = vld [vmem:[#allocation7 + $0xa48] ss:$16 sps:$4 sm:$0xff]   ;;  %v9703_v54 = vld [vmem:[#allocation7 + $0xa64] ss:$16 sps:$4 sm:$0xff]  }
 0x41c   :  { %4596 = vmatprep.subr.bf16.mxu0 %v9667_v55  ;;  %4760 = vmatprep.subr.bf16.mxu1 %v9670_v56  ;;  %v9706_v55 = vld [vmem:[#allocation7 + $0xa6c] ss:$16 sps:$4 sm:$0xff]   ;;  %v9701_v56 = vld [vmem:[#allocation7 + $0xa60] ss:$16 sps:$4 sm:$0xff]  }
 0x41f   :  { %4597 = vmatpush1.bf16.msra.mxu0 %v9665_v57  ;;  %4761 = vmatpush1.bf16.msra.mxu1 %v9668_v30  ;;  %v9704_v57 = vld [vmem:[#allocation7 + $0xa68] ss:$16 sps:$4 sm:$0xff]   ;;  %v9709_v30 = vld [vmem:[#allocation7 + $0xa84] ss:$16 sps:$4 sm:$0xff]  }
 0x420   :  { %4598 = vmatprep.subr.bf16.mxu0 %v9673_v58  ;;  %4762 = vmatprep.subr.bf16.mxu1 %v9676_v59  ;;  %v9712_v58 = vld [vmem:[#allocation7 + $0xa8c] ss:$16 sps:$4 sm:$0xff]   ;;  %v9707_v59 = vld [vmem:[#allocation7 + $0xa80] ss:$16 sps:$4 sm:$0xff]  }
 0x423   :  { %4599 = vmatpush1.bf16.msra.mxu0 %v9671_v60  ;;  %4763 = vmatpush1.bf16.msra.mxu1 %v9674_v61  ;;  %v9710_v60 = vld [vmem:[#allocation7 + $0xa88] ss:$16 sps:$4 sm:$0xff]   ;;  %v9715_v61 = vld [vmem:[#allocation7 + $0xaa4] ss:$16 sps:$4 sm:$0xff]  }
 0x424   :  { %4600 = vmatprep.subr.bf16.mxu0 %v9679_v62  ;;  %4764 = vmatprep.subr.bf16.mxu1 %v9682_v1  ;;  %v9718_v62 = vld [vmem:[#allocation7 + $0xaac] ss:$16 sps:$4 sm:$0xff]   ;;  %v9713_v1 = vld [vmem:[#allocation7 + $0xaa0] ss:$16 sps:$4 sm:$0xff]  }
 0x427   :  { %4601 = vmatpush1.bf16.msra.mxu0 %v9677_v2  ;;  %4765 = vmatpush1.bf16.msra.mxu1 %v9680_v3  ;;  %v9716_v2 = vld [vmem:[#allocation7 + $0xaa8] ss:$16 sps:$4 sm:$0xff]   ;;  %v9721_v3 = vld [vmem:[#allocation7 + $0xac4] ss:$16 sps:$4 sm:$0xff]  }
 0x428   :  { %4611 = vmatprep.subr.bf16.mxu0 %v9685_v4  ;;  %4775 = vmatprep.subr.bf16.mxu1 %v9688_v7  ;;  %v9724_v4 = vld [vmem:[#allocation7 + $0xacc] ss:$16 sps:$4 sm:$0xff]   ;;  %v9719_v7 = vld [vmem:[#allocation7 + $0xac0] ss:$16 sps:$4 sm:$0xff]  }
 0x4b5   :  { %v2864_v13 = vpop.f32.mrb[16].mxu0  ;;  %v10986_v14 = vpop.f32.mrb[16].mxu1 }
 0x4b6   :  { %v2865_v15 = vadd.f32 %v2864_v13, %v2710_v10  ;;  %v2866_v16 = vpop.f32.mrb[17].mxu0  ;;  %v2907_v17 = vpop.f32.mrb[17].mxu1  ;;  %v9722_v10 = vld [vmem:[#allocation7 + $0xac8] ss:$16 sps:$4 sm:$0xff]   ;;  %v9725_v13 = vld [vmem:[#allocation7 + $0xae0] ss:$16 sps:$4 sm:$0xff]  }
 0x4b7   :  { %v2867_v18 = vadd.f32 %v2866_v16, %v2714_v11  ;;  %v2908_v19 = vadd.f32 %v2907_v17, %v2722_v12  ;;  %v2868_v20 = vpop.f32.mrb[18].mxu0  ;;  %v2909_v21 = vpop.f32.mrb[18].mxu1  ;;  %v9727_v11 = vld [vmem:[#allocation7 + $0xae4] ss:$16 sps:$4 sm:$0xff]   ;;  %v9730_v12 = vld [vmem:[#allocation7 + $0xaec] ss:$16 sps:$4 sm:$0xff]  }
 0x4b8   :  { %v2994_v52 = vmax.f32 %v2865_v15, 0.0  ;;  %v2869_v22 = vpop.f32.mrb[19].mxu0  ;;  %v2910_v23 = vpop.f32.mrb[19].mxu1  ;;  %v9728_v15 = vld [vmem:[#allocation7 + $0xae8] ss:$16 sps:$4 sm:$0xff]  }
 0x4b9   :  { %v2995_v41 = vmax.f32 %v2867_v18, 0.0  ;;  %v2997_v25 = vmax.f32 %v2908_v19, 0.0  ;;  %v9733_v16 = vld [vmem:[#allocation7 + $0xb04] ss:$16 sps:$4 sm:$0xff]   ;;  %v9736_v17 = vld [vmem:[#allocation7 + $0xb0c] ss:$16 sps:$4 sm:$0xff]  }
 0x4ba   :  { %v3002_v33 = vpack.c.bf16 %v2994_v52, %v2994_v52  ;;  %v9731_v18 = vld [vmem:[#allocation7 + $0xb00] ss:$16 sps:$4 sm:$0xff]   ;;  %v9734_v19 = vld [vmem:[#allocation7 + $0xb08] ss:$16 sps:$4 sm:$0xff]   ;;  %v9739_v20 = vld [vmem:[#allocation7 + $0xb24] ss:$16 sps:$4 sm:$0xff]  }
 0x4bb   :  { %v3003_v31 = vpack.c.bf16 %v2995_v41, %v2995_v41  ;;  %v3005_v39 = vpack.c.bf16 %v2997_v25, %v2997_v25  ;;  %v9742_v21 = vld [vmem:[#allocation7 + $0xb2c] ss:$16 sps:$4 sm:$0xff]   ;;  %v9737_v52 = vld [vmem:[#allocation7 + $0xb20] ss:$16 sps:$4 sm:$0xff]   ;;  %v9740_v22 = vld [vmem:[#allocation7 + $0xb28] ss:$16 sps:$4 sm:$0xff]  }
 0x4bc   :  { %v9745_v23 = vld [vmem:[#allocation7 + $0xb44] ss:$16 sps:$4 sm:$0xff]   ;;  %v9748_v41 = vld [vmem:[#allocation7 + $0xb4c] ss:$16 sps:$4 sm:$0xff]   ;;  %v9743_v25 = vld [vmem:[#allocation7 + $0xb40] ss:$16 sps:$4 sm:$0xff]  }
 0x4bd   :  { %v10988_v34 = vpop.f32.mrb[20].mxu0  ;;  %v10990_v35 = vpop.f32.mrb[20].mxu1  ;;  %4602 = vmatprep.mubr.bf16.mxu0 %v3003_v31  ;;  %4766 = vmatprep.mubr.bf16.mxu1 %v3003_v31  ;;  %v9746_v31 = vld [vmem:[#allocation7 + $0xb48] ss:$16 sps:$4 sm:$0xff]  }
 0x4be   :  { %v10992_v38 = vpop.f32.mrb[21].mxu0  ;;  %v10994_v44 = vpop.f32.mrb[21].mxu1  ;;  %4603 = vmatmul.mubr.bf16.vlgmr.msra.gmra.mrb[24].mxu0 %v3002_v33  ;;  %4767 = vmatmul.mubr.bf16.vlgmr.msra.gmra.mrb[24].mxu1 %v3002_v33  ;;  %v9749_v33 = vld [vmem:[#allocation7 + $0xb60] ss:$16 sps:$4 sm:$0xff]  }
 0x4bf   :  { %4612 = vmatpush1.bf16.msra.mxu0 %v9683_v6  ;;  %4776 = vmatpush1.bf16.msra.mxu1 %v9686_v32  ;;  %v2950_v45 = vpop.f32.mrb[22].mxu0  ;;  %v2991_v46 = vpop.f32.mrb[22].mxu1  ;;  %v9751_v6 = vld [vmem:[#allocation7 + $0xb64] ss:$16 sps:$4 sm:$0xff]   ;;  %v9754_v32 = vld [vmem:[#allocation7 + $0xb6c] ss:$16 sps:$4 sm:$0xff]  }
 0x4c0   :  { %4643 = vmatprep.mubr.bf16.mxu0 %v3005_v39  ;;  %4807 = vmatprep.mubr.bf16.mxu1 %v3005_v39  ;;  %v2951_v29 = vpop.f32.mrb[23].mxu0  ;;  %v2992_v49 = vpop.f32.mrb[23].mxu1  ;;  %v9760_v39 = vld [vmem:[#allocation7 + $0xb8c] ss:$16 sps:$4 sm:$0xff]   ;;  %v9755_v45 = vld [vmem:[#allocation7 + $0xb80] ss:$16 sps:$4 sm:$0xff]  }
 0x4c1   :  { %4613 = vmatprep.subr.bf16.mxu0 %v9691_v36  ;;  %4777 = vmatprep.subr.bf16.mxu1 %v9694_v37  ;;  %v9752_v36 = vld [vmem:[#allocation7 + $0xb68] ss:$16 sps:$4 sm:$0xff]   ;;  %v9757_v37 = vld [vmem:[#allocation7 + $0xb84] ss:$16 sps:$4 sm:$0xff]   ;;  %v9761_v29 = vld [vmem:[#allocation7 + $0xba0] ss:$16 sps:$4 sm:$0xff]  }
 0x4c2   :  { %v9758_v46 = vld [vmem:[#allocation7 + $0xb88] ss:$16 sps:$4 sm:$0xff]  }
 0x4c3   :  { %4614 = vmatpush1.bf16.msra.mxu0 %v9689_v47  ;;  %4778 = vmatpush1.bf16.msra.mxu1 %v9692_v48  ;;  %v9763_v47 = vld [vmem:[#allocation7 + $0xba4] ss:$16 sps:$4 sm:$0xff]   ;;  %v9766_v48 = vld [vmem:[#allocation7 + $0xbac] ss:$16 sps:$4 sm:$0xff]   ;;  %v9764_v49 = vld [vmem:[#allocation7 + $0xba8] ss:$16 sps:$4 sm:$0xff]  }
 0x4c4   :  { %4615 = vmatprep.subr.bf16.mxu0 %v9697_v50  ;;  %4779 = vmatprep.subr.bf16.mxu1 %v9700_v51  ;;  %v2718_v50 = vrot.slane %v10978_v9, %v10833_v63  ;;  %v9769_v51 = vld [vmem:[#allocation7 + $0xbc4] ss:$16 sps:$4 sm:$0xff]  }
 0x4c7   :  { %4616 = vmatpush1.bf16.msra.mxu0 %v9695_v5  ;;  %4780 = vmatpush1.bf16.msra.mxu1 %v9698_v27  ;;  %v9772_v5 = vld [vmem:[#allocation7 + $0xbcc] ss:$16 sps:$4 sm:$0xff]   ;;  %v2730_v27 = vrot.slane %v10978_v9, %v10838_v8 }
 0x4c8   :  { %4617 = vmatprep.subr.bf16.mxu0 %v9703_v54  ;;  %4781 = vmatprep.subr.bf16.mxu1 %v9706_v55  ;;  %v9767_v54 = vld [vmem:[#allocation7 + $0xbc0] ss:$16 sps:$4 sm:$0xff]   ;;  %v9770_v55 = vld [vmem:[#allocation7 + $0xbc8] ss:$16 sps:$4 sm:$0xff]  }
 0x4cb   :  { %4618 = vmatpush1.bf16.msra.mxu0 %v9701_v56  ;;  %4782 = vmatpush1.bf16.msra.mxu1 %v9704_v57  ;;  %v2906_v56 = vadd.f32 %v10986_v14, %v2718_v50  ;;  %v9775_v57 = vld [vmem:[#allocation7 + $0xbe4] ss:$16 sps:$4 sm:$0xff]   ;;  %v9827_v50 = vld [vmem:[#allocation7 + $0xd00] ss:$16 sps:$4 sm:$0xff]  }
 0x4cc   :  { %4619 = vmatprep.subr.bf16.mxu0 %v9709_v30  ;;  %4783 = vmatprep.subr.bf16.mxu1 %v9712_v58  ;;  %v9778_v30 = vld [vmem:[#allocation7 + $0xbec] ss:$16 sps:$4 sm:$0xff]   ;;  %v2949_v58 = vadd.f32 %v10992_v38, %v2730_v27 }
 0x4cd   :  { %v9790_v38 = vld [vmem:[#allocation7 + $0xc2c] ss:$16 sps:$4 sm:$0xff]  }
 0x4ce   :  { %v9838_v27 = vld [vmem:[#allocation7 + $0xd2c] ss:$16 sps:$4 sm:$0xff]  }
 0x4cf   :  { %4620 = vmatpush1.bf16.msra.mxu0 %v9707_v59  ;;  %4784 = vmatpush1.bf16.msra.mxu1 %v9710_v60  ;;  %v9773_v59 = vld [vmem:[#allocation7 + $0xbe0] ss:$16 sps:$4 sm:$0xff]   ;;  %v9776_v60 = vld [vmem:[#allocation7 + $0xbe8] ss:$16 sps:$4 sm:$0xff]  }
 0x4d0   :  { %4621 = vmatprep.subr.bf16.mxu0 %v9715_v61  ;;  %4785 = vmatprep.subr.bf16.mxu1 %v9718_v62  ;;  %v2996_v61 = vmax.f32 %v2906_v56, 0.0  ;;  %v9781_v62 = vld [vmem:[#allocation7 + $0xc04] ss:$16 sps:$4 sm:$0xff]  }
 0x4d1   :  { %v9841_v56 = vld [vmem:[#allocation7 + $0xd44] ss:$16 sps:$4 sm:$0xff]  }
 0x4d2   :  { %v3004_v14 = vpack.c.bf16 %v2996_v61, %v2996_v61  ;;  %v9845_v61 = vld [vmem:[#allocation7 + $0xd60] ss:$16 sps:$4 sm:$0xff]  }
 0x4d3   :  { %4622 = vmatpush1.bf16.msra.mxu0 %v9713_v1  ;;  %4786 = vmatpush1.bf16.msra.mxu1 %v9716_v2  ;;  %v9784_v1 = vld [vmem:[#allocation7 + $0xc0c] ss:$16 sps:$4 sm:$0xff]   ;;  %v2999_v2 = vmax.f32 %v2949_v58, 0.0  ;;  %v9842_v58 = vld [vmem:[#allocation7 + $0xd48] ss:$16 sps:$4 sm:$0xff]  }
 0x4d4   :  { %4623 = vmatprep.subr.bf16.mxu0 %v9721_v3  ;;  %4787 = vmatprep.subr.bf16.mxu1 %v9724_v4  ;;  %v9779_v3 = vld [vmem:[#allocation7 + $0xc00] ss:$16 sps:$4 sm:$0xff]   ;;  %v9782_v4 = vld [vmem:[#allocation7 + $0xc08] ss:$16 sps:$4 sm:$0xff]  }
 0x4d7   :  { %4624 = vmatpush1.bf16.msra.mxu0 %v9719_v7  ;;  %4788 = vmatpush1.bf16.msra.mxu1 %v9722_v10  ;;  %v3007_v7 = vpack.c.bf16 %v2999_v2, %v2999_v2  ;;  %v9787_v10 = vld [vmem:[#allocation7 + $0xc24] ss:$16 sps:$4 sm:$0xff]   ;;  %v9856_v2 = vld [vmem:[#allocation7 + $0xd8c] ss:$16 sps:$4 sm:$0xff]  }
 0x4d8   :  { %4625 = vmatprep.subr.bf16.mxu0 %v9727_v11  ;;  %4789 = vmatprep.subr.bf16.mxu1 %v9730_v12  ;;  %v9785_v11 = vld [vmem:[#allocation7 + $0xc20] ss:$16 sps:$4 sm:$0xff]   ;;  %v9788_v12 = vld [vmem:[#allocation7 + $0xc28] ss:$16 sps:$4 sm:$0xff]  }
 0x4db   :  { %4626 = vmatpush1.bf16.msra.mxu0 %v9725_v13  ;;  %4790 = vmatpush1.bf16.msra.mxu1 %v9728_v15  ;;  %v9793_v13 = vld [vmem:[#allocation7 + $0xc44] ss:$16 sps:$4 sm:$0xff]   ;;  %v9796_v15 = vld [vmem:[#allocation7 + $0xc4c] ss:$16 sps:$4 sm:$0xff]  }
 0x4dc   :  { %4627 = vmatprep.subr.bf16.mxu0 %v9733_v16  ;;  %4791 = vmatprep.subr.bf16.mxu1 %v9736_v17  ;;  %v9791_v16 = vld [vmem:[#allocation7 + $0xc40] ss:$16 sps:$4 sm:$0xff]   ;;  %v9794_v17 = vld [vmem:[#allocation7 + $0xc48] ss:$16 sps:$4 sm:$0xff]  }
 0x4df   :  { %4628 = vmatpush1.bf16.msra.mxu0 %v9731_v18  ;;  %4792 = vmatpush1.bf16.msra.mxu1 %v9734_v19  ;;  %v9799_v18 = vld [vmem:[#allocation7 + $0xc64] ss:$16 sps:$4 sm:$0xff]   ;;  %v9802_v19 = vld [vmem:[#allocation7 + $0xc6c] ss:$16 sps:$4 sm:$0xff]  }
 0x4e0   :  { %4629 = vmatprep.subr.bf16.mxu0 %v9739_v20  ;;  %4793 = vmatprep.subr.bf16.mxu1 %v9742_v21  ;;  %v9797_v20 = vld [vmem:[#allocation7 + $0xc60] ss:$16 sps:$4 sm:$0xff]   ;;  %v9800_v21 = vld [vmem:[#allocation7 + $0xc68] ss:$16 sps:$4 sm:$0xff]  }
 0x4e3   :  { %4630 = vmatpush1.bf16.msra.mxu0 %v9737_v52  ;;  %4794 = vmatpush1.bf16.msra.mxu1 %v9740_v22  ;;  %v9805_v52 = vld [vmem:[#allocation7 + $0xc84] ss:$16 sps:$4 sm:$0xff]   ;;  %v9808_v22 = vld [vmem:[#allocation7 + $0xc8c] ss:$16 sps:$4 sm:$0xff]  }
 0x4e4   :  { %4631 = vmatprep.subr.bf16.mxu0 %v9745_v23  ;;  %4795 = vmatprep.subr.bf16.mxu1 %v9748_v41  ;;  %v9803_v23 = vld [vmem:[#allocation7 + $0xc80] ss:$16 sps:$4 sm:$0xff]   ;;  %v9806_v41 = vld [vmem:[#allocation7 + $0xc88] ss:$16 sps:$4 sm:$0xff]  }
 0x4e7   :  { %4632 = vmatpush1.bf16.msra.mxu0 %v9743_v25  ;;  %4796 = vmatpush1.bf16.msra.mxu1 %v9746_v31  ;;  %v9811_v25 = vld [vmem:[#allocation7 + $0xca4] ss:$16 sps:$4 sm:$0xff]   ;;  %v9814_v31 = vld [vmem:[#allocation7 + $0xcac] ss:$16 sps:$4 sm:$0xff]  }
 0x4e8   :  { %4633 = vmatprep.subr.bf16.mxu0 %v9751_v6  ;;  %4797 = vmatprep.subr.bf16.mxu1 %v9754_v32  ;;  %v9809_v6 = vld [vmem:[#allocation7 + $0xca0] ss:$16 sps:$4 sm:$0xff]   ;;  %v9812_v32 = vld [vmem:[#allocation7 + $0xca8] ss:$16 sps:$4 sm:$0xff]  }
 0x4eb   :  { %4634 = vmatpush1.bf16.msra.mxu0 %v9749_v33  ;;  %4798 = vmatpush1.bf16.msra.mxu1 %v9752_v36  ;;  %v9817_v33 = vld [vmem:[#allocation7 + $0xcc4] ss:$16 sps:$4 sm:$0xff]   ;;  %v9820_v36 = vld [vmem:[#allocation7 + $0xccc] ss:$16 sps:$4 sm:$0xff]  }
 0x4ec   :  { %4635 = vmatprep.subr.bf16.mxu0 %v9757_v37  ;;  %4799 = vmatprep.subr.bf16.mxu1 %v9760_v39  ;;  %v9815_v37 = vld [vmem:[#allocation7 + $0xcc0] ss:$16 sps:$4 sm:$0xff]   ;;  %v9818_v39 = vld [vmem:[#allocation7 + $0xcc8] ss:$16 sps:$4 sm:$0xff]  }
 0x4ef   :  { %4636 = vmatpush1.bf16.msra.mxu0 %v9755_v45  ;;  %4800 = vmatpush1.bf16.msra.mxu1 %v9758_v46  ;;  %v9823_v45 = vld [vmem:[#allocation7 + $0xce4] ss:$16 sps:$4 sm:$0xff]   ;;  %v9826_v46 = vld [vmem:[#allocation7 + $0xcec] ss:$16 sps:$4 sm:$0xff]  }
 0x4f0   :  { %4637 = vmatprep.subr.bf16.mxu0 %v9763_v47  ;;  %4801 = vmatprep.subr.bf16.mxu1 %v9766_v48  ;;  %v9821_v47 = vld [vmem:[#allocation7 + $0xce0] ss:$16 sps:$4 sm:$0xff]   ;;  %v9824_v48 = vld [vmem:[#allocation7 + $0xce8] ss:$16 sps:$4 sm:$0xff]  }
 0x4f3   :  { %4638 = vmatpush1.bf16.msra.mxu0 %v9761_v29  ;;  %4802 = vmatpush1.bf16.msra.mxu1 %v9764_v49  ;;  %v9829_v29 = vld [vmem:[#allocation7 + $0xd04] ss:$16 sps:$4 sm:$0xff]   ;;  %v9832_v49 = vld [vmem:[#allocation7 + $0xd0c] ss:$16 sps:$4 sm:$0xff]  }
 0x4f4   :  { %4639 = vmatprep.subr.bf16.mxu0 %v9769_v51  ;;  %4803 = vmatprep.subr.bf16.mxu1 %v9772_v5  ;;  %v9830_v51 = vld [vmem:[#allocation7 + $0xd08] ss:$16 sps:$4 sm:$0xff]   ;;  %v9835_v5 = vld [vmem:[#allocation7 + $0xd24] ss:$16 sps:$4 sm:$0xff]  }
 0x4f7   :  { %4640 = vmatpush1.bf16.msra.mxu0 %v9767_v54  ;;  %4804 = vmatpush1.bf16.msra.mxu1 %v9770_v55  ;;  %v9833_v54 = vld [vmem:[#allocation7 + $0xd20] ss:$16 sps:$4 sm:$0xff]   ;;  %v9836_v55 = vld [vmem:[#allocation7 + $0xd28] ss:$16 sps:$4 sm:$0xff]  }
 0x4f8   :  { %4641 = vmatprep.subr.bf16.mxu0 %v9775_v57  ;;  %4805 = vmatprep.subr.bf16.mxu1 %v9778_v30  ;;  %v9844_v57 = vld [vmem:[#allocation7 + $0xd4c] ss:$16 sps:$4 sm:$0xff]   ;;  %v9839_v30 = vld [vmem:[#allocation7 + $0xd40] ss:$16 sps:$4 sm:$0xff]  }
 0x4fb   :  { %4642 = vmatpush1.bf16.msra.mxu0 %v9773_v59  ;;  %4806 = vmatpush1.bf16.msra.mxu1 %v9776_v60  ;;  %v9847_v59 = vld [vmem:[#allocation7 + $0xd64] ss:$16 sps:$4 sm:$0xff]   ;;  %v9850_v60 = vld [vmem:[#allocation7 + $0xd6c] ss:$16 sps:$4 sm:$0xff]  }
 0x4fc   :  { %4652 = vmatprep.subr.bf16.mxu0 %v9781_v62  ;;  %4816 = vmatprep.subr.bf16.mxu1 %v9784_v1  ;;  %v9848_v62 = vld [vmem:[#allocation7 + $0xd68] ss:$16 sps:$4 sm:$0xff]   ;;  %v9853_v1 = vld [vmem:[#allocation7 + $0xd84] ss:$16 sps:$4 sm:$0xff]  }
 0x4fe   :  { %4644 = vmatmul.mubr.bf16.vlgmr.msra.gmra.mrb[24].mxu0 %v3004_v14  ;;  %4808 = vmatmul.mubr.bf16.vlgmr.msra.gmra.mrb[24].mxu1 %v3004_v14  ;;  %v9854_v14 = vld [vmem:[#allocation7 + $0xd88] ss:$16 sps:$4 sm:$0xff]  }
 0x4ff   :  { %4653 = vmatpush1.bf16.msra.mxu0 %v9779_v3  ;;  %4684 = vmatprep.mubr.bf16.mxu0 %v3007_v7  ;;  %v9851_v3 = vld [vmem:[#allocation7 + $0xd80] ss:$16 sps:$4 sm:$0xff]  }
 0x500   :  { %4817 = vmatpush1.bf16.msra.mxu1 %v9782_v4  ;;  %4848 = vmatprep.mubr.bf16.mxu1 %v3007_v7  ;;  %v9859_v4 = vld [vmem:[#allocation7 + $0xda4] ss:$16 sps:$4 sm:$0xff]   ;;  %v9862_v7 = vld [vmem:[#allocation7 + $0xdac] ss:$16 sps:$4 sm:$0xff]  }
 0x501   :  { %4654 = vmatprep.subr.bf16.mxu0 %v9787_v10  ;;  %4818 = vmatprep.subr.bf16.mxu1 %v9790_v38  ;;  %v9857_v10 = vld [vmem:[#allocation7 + $0xda0] ss:$16 sps:$4 sm:$0xff]   ;;  %v2726_v38 = vrot.slane %v10978_v9, %v10845_v24 }
 0x503   :  { %4655 = vmatpush1.bf16.msra.mxu0 %v9785_v11  ;;  %v9860_v11 = vld [vmem:[#allocation7 + $0xda8] ss:$16 sps:$4 sm:$0xff]  }
 0x504   :  { %4819 = vmatpush1.bf16.msra.mxu1 %v9788_v12  ;;  %4656 = vmatprep.subr.bf16.mxu0 %v9793_v13  ;;  %v9865_v12 = vld [vmem:[#allocation7 + $0xdc4] ss:$16 sps:$4 sm:$0xff]   ;;  %v9868_v13 = vld [vmem:[#allocation7 + $0xdcc] ss:$16 sps:$4 sm:$0xff]  }
 0x505   :  { %4820 = vmatprep.subr.bf16.mxu1 %v9796_v15  ;;  %v2738_v15 = vrot.slane %v10978_v9, %v10848_v28 }
 0x507   :  { %4657 = vmatpush1.bf16.msra.mxu0 %v9791_v16  ;;  %v9863_v16 = vld [vmem:[#allocation7 + $0xdc0] ss:$16 sps:$4 sm:$0xff]  }
 0x508   :  { %4821 = vmatpush1.bf16.msra.mxu1 %v9794_v17  ;;  %4658 = vmatprep.subr.bf16.mxu0 %v9799_v18  ;;  %v2947_v17 = vadd.f32 %v10988_v34, %v2726_v38  ;;  %v9866_v18 = vld [vmem:[#allocation7 + $0xdc8] ss:$16 sps:$4 sm:$0xff]   ;;  %v9875_v34 = vld [vmem:[#allocation7 + $0xe00] ss:$16 sps:$4 sm:$0xff]  }
 0x509   :  { %4822 = vmatprep.subr.bf16.mxu1 %v9802_v19  ;;  %v9871_v19 = vld [vmem:[#allocation7 + $0xde4] ss:$16 sps:$4 sm:$0xff]   ;;  %v9926_v38 = vld [vmem:[#allocation7 + $0xf08] ss:$16 sps:$4 sm:$0xff]  }
 0x50b   :  { %4659 = vmatpush1.bf16.msra.mxu0 %v9797_v20  ;;  %v9874_v20 = vld [vmem:[#allocation7 + $0xdec] ss:$16 sps:$4 sm:$0xff]  }
 0x50c   :  { %4823 = vmatpush1.bf16.msra.mxu1 %v9800_v21  ;;  %4660 = vmatprep.subr.bf16.mxu0 %v9805_v52  ;;  %v2990_v21 = vadd.f32 %v10994_v44, %v2738_v15  ;;  %v9869_v52 = vld [vmem:[#allocation7 + $0xde0] ss:$16 sps:$4 sm:$0xff]   ;;  %v9886_v44 = vld [vmem:[#allocation7 + $0xe2c] ss:$16 sps:$4 sm:$0xff]   ;;  %v9932_v15 = vld [vmem:[#allocation7 + $0xf28] ss:$16 sps:$4 sm:$0xff]  }
 0x50d   :  { %4824 = vmatprep.subr.bf16.mxu1 %v9808_v22  ;;  %v2998_v22 = vmax.f32 %v2947_v17, 0.0  ;;  %v9940_v17 = vld [vmem:[#allocation7 + $0xf4c] ss:$16 sps:$4 sm:$0xff]  }
 0x50f   :  { %4661 = vmatpush1.bf16.msra.mxu0 %v9803_v23  ;;  %v9872_v23 = vld [vmem:[#allocation7 + $0xde8] ss:$16 sps:$4 sm:$0xff]  }
 0x510   :  { %4825 = vmatpush1.bf16.msra.mxu1 %v9806_v41  ;;  %4662 = vmatprep.subr.bf16.mxu0 %v9811_v25  ;;  %v9877_v41 = vld [vmem:[#allocation7 + $0xe04] ss:$16 sps:$4 sm:$0xff]   ;;  %v9880_v25 = vld [vmem:[#allocation7 + $0xe0c] ss:$16 sps:$4 sm:$0xff]  }
 0x511   :  { %4826 = vmatprep.subr.bf16.mxu1 %v9814_v31  ;;  %v3001_v31 = vmax.f32 %v2990_v21, 0.0  ;;  %v9946_v21 = vld [vmem:[#allocation7 + $0xf6c] ss:$16 sps:$4 sm:$0xff]  }
 0x513   :  { %4663 = vmatpush1.bf16.msra.mxu0 %v9809_v6  ;;  %v3006_v6 = vpack.c.bf16 %v2998_v22, %v2998_v22  ;;  %v9944_v22 = vld [vmem:[#allocation7 + $0xf68] ss:$16 sps:$4 sm:$0xff]  }
 0x514   :  { %4827 = vmatpush1.bf16.msra.mxu1 %v9812_v32  ;;  %4664 = vmatprep.subr.bf16.mxu0 %v9817_v33  ;;  %v9878_v32 = vld [vmem:[#allocation7 + $0xe08] ss:$16 sps:$4 sm:$0xff]   ;;  %v9883_v33 = vld [vmem:[#allocation7 + $0xe24] ss:$16 sps:$4 sm:$0xff]  }
 0x515   :  { %4828 = vmatprep.subr.bf16.mxu1 %v9820_v36  ;;  %v3009_v36 = vpack.c.bf16 %v3001_v31, %v3001_v31  ;;  %v9950_v31 = vld [vmem:[#allocation7 + $0xf88] ss:$16 sps:$4 sm:$0xff]  }
 0x517   :  { %4665 = vmatpush1.bf16.msra.mxu0 %v9815_v37  ;;  %v9881_v37 = vld [vmem:[#allocation7 + $0xe20] ss:$16 sps:$4 sm:$0xff]  }
 0x518   :  { %4829 = vmatpush1.bf16.msra.mxu1 %v9818_v39  ;;  %4666 = vmatprep.subr.bf16.mxu0 %v9823_v45  ;;  %v9884_v39 = vld [vmem:[#allocation7 + $0xe28] ss:$16 sps:$4 sm:$0xff]   ;;  %v9889_v45 = vld [vmem:[#allocation7 + $0xe44] ss:$16 sps:$4 sm:$0xff]  }
 0x519   :  { %4830 = vmatprep.subr.bf16.mxu1 %v9826_v46  ;;  %v9892_v46 = vld [vmem:[#allocation7 + $0xe4c] ss:$16 sps:$4 sm:$0xff]  }
 0x51b   :  { %4667 = vmatpush1.bf16.msra.mxu0 %v9821_v47  ;;  %v9887_v47 = vld [vmem:[#allocation7 + $0xe40] ss:$16 sps:$4 sm:$0xff]  }
 0x51c   :  { %4831 = vmatpush1.bf16.msra.mxu1 %v9824_v48  ;;  %4668 = vmatprep.subr.bf16.mxu0 %v9829_v29  ;;  %v9890_v48 = vld [vmem:[#allocation7 + $0xe48] ss:$16 sps:$4 sm:$0xff]   ;;  %v9895_v29 = vld [vmem:[#allocation7 + $0xe64] ss:$16 sps:$4 sm:$0xff]  }
 0x51d   :  { %4832 = vmatprep.subr.bf16.mxu1 %v9832_v49  ;;  %v9898_v49 = vld [vmem:[#allocation7 + $0xe6c] ss:$16 sps:$4 sm:$0xff]  }
 0x51f   :  { %4669 = vmatpush1.bf16.msra.mxu0 %v9827_v50  ;;  %v9893_v50 = vld [vmem:[#allocation7 + $0xe60] ss:$16 sps:$4 sm:$0xff]  }
 0x520   :  { %4833 = vmatpush1.bf16.msra.mxu1 %v9830_v51  ;;  %4670 = vmatprep.subr.bf16.mxu0 %v9835_v5  ;;  %v9896_v51 = vld [vmem:[#allocation7 + $0xe68] ss:$16 sps:$4 sm:$0xff]   ;;  %v9901_v5 = vld [vmem:[#allocation7 + $0xe84] ss:$16 sps:$4 sm:$0xff]  }
 0x521   :  { %4834 = vmatprep.subr.bf16.mxu1 %v9838_v27  ;;  %v9904_v27 = vld [vmem:[#allocation7 + $0xe8c] ss:$16 sps:$4 sm:$0xff]  }
 0x523   :  { %4671 = vmatpush1.bf16.msra.mxu0 %v9833_v54  ;;  %v9899_v54 = vld [vmem:[#allocation7 + $0xe80] ss:$16 sps:$4 sm:$0xff]  }
 0x524   :  { %4835 = vmatpush1.bf16.msra.mxu1 %v9836_v55  ;;  %4672 = vmatprep.subr.bf16.mxu0 %v9841_v56  ;;  %v9902_v55 = vld [vmem:[#allocation7 + $0xe88] ss:$16 sps:$4 sm:$0xff]   ;;  %v9907_v56 = vld [vmem:[#allocation7 + $0xea4] ss:$16 sps:$4 sm:$0xff]  }
 0x525   :  { %4836 = vmatprep.subr.bf16.mxu1 %v9844_v57  ;;  %v9910_v57 = vld [vmem:[#allocation7 + $0xeac] ss:$16 sps:$4 sm:$0xff]  }
 0x527   :  { %4673 = vmatpush1.bf16.msra.mxu0 %v9839_v30  ;;  %v9905_v30 = vld [vmem:[#allocation7 + $0xea0] ss:$16 sps:$4 sm:$0xff]  }
 0x528   :  { %4837 = vmatpush1.bf16.msra.mxu1 %v9842_v58  ;;  %4674 = vmatprep.subr.bf16.mxu0 %v9847_v59  ;;  %v9908_v58 = vld [vmem:[#allocation7 + $0xea8] ss:$16 sps:$4 sm:$0xff]   ;;  %v9913_v59 = vld [vmem:[#allocation7 + $0xec4] ss:$16 sps:$4 sm:$0xff]  }
 0x529   :  { %4838 = vmatprep.subr.bf16.mxu1 %v9850_v60  ;;  %v9916_v60 = vld [vmem:[#allocation7 + $0xecc] ss:$16 sps:$4 sm:$0xff]  }
 0x52b   :  { %4675 = vmatpush1.bf16.msra.mxu0 %v9845_v61  ;;  %v9911_v61 = vld [vmem:[#allocation7 + $0xec0] ss:$16 sps:$4 sm:$0xff]  }
 0x52c   :  { %4839 = vmatpush1.bf16.msra.mxu1 %v9848_v62  ;;  %4676 = vmatprep.subr.bf16.mxu0 %v9853_v1  ;;  %v9914_v62 = vld [vmem:[#allocation7 + $0xec8] ss:$16 sps:$4 sm:$0xff]   ;;  %v9919_v1 = vld [vmem:[#allocation7 + $0xee4] ss:$16 sps:$4 sm:$0xff]  }
 0x52d   :  { %4840 = vmatprep.subr.bf16.mxu1 %v9856_v2  ;;  %v9922_v2 = vld [vmem:[#allocation7 + $0xeec] ss:$16 sps:$4 sm:$0xff]  }
 0x52f   :  { %4677 = vmatpush1.bf16.msra.mxu0 %v9851_v3  ;;  %v9917_v3 = vld [vmem:[#allocation7 + $0xee0] ss:$16 sps:$4 sm:$0xff]  }
 0x530   :  { %4841 = vmatpush1.bf16.msra.mxu1 %v9854_v14  ;;  %4678 = vmatprep.subr.bf16.mxu0 %v9859_v4  ;;  %v9920_v14 = vld [vmem:[#allocation7 + $0xee8] ss:$16 sps:$4 sm:$0xff]   ;;  %v9925_v4 = vld [vmem:[#allocation7 + $0xf04] ss:$16 sps:$4 sm:$0xff]  }
 0x531   :  { %4842 = vmatprep.subr.bf16.mxu1 %v9862_v7  ;;  %v9928_v7 = vld [vmem:[#allocation7 + $0xf0c] ss:$16 sps:$4 sm:$0xff]  }
 0x533   :  { %4679 = vmatpush1.bf16.msra.mxu0 %v9857_v10  ;;  %v9923_v10 = vld [vmem:[#allocation7 + $0xf00] ss:$16 sps:$4 sm:$0xff]  }
 0x534   :  { %4843 = vmatpush1.bf16.msra.mxu1 %v9860_v11  ;;  %4680 = vmatprep.subr.bf16.mxu0 %v9865_v12  ;;  %v9931_v11 = vld [vmem:[#allocation7 + $0xf24] ss:$16 sps:$4 sm:$0xff]   ;;  %v9934_v12 = vld [vmem:[#allocation7 + $0xf2c] ss:$16 sps:$4 sm:$0xff]  }
 0x535   :  { %4844 = vmatprep.subr.bf16.mxu1 %v9868_v13  ;;  %v9929_v13 = vld [vmem:[#allocation7 + $0xf20] ss:$16 sps:$4 sm:$0xff]  }
 0x537   :  { %4681 = vmatpush1.bf16.msra.mxu0 %v9863_v16  ;;  %v9937_v16 = vld [vmem:[#allocation7 + $0xf44] ss:$16 sps:$4 sm:$0xff]  }
 0x538   :  { %4845 = vmatpush1.bf16.msra.mxu1 %v9866_v18  ;;  %4682 = vmatprep.subr.bf16.mxu0 %v9871_v19  ;;  %v9935_v18 = vld [vmem:[#allocation7 + $0xf40] ss:$16 sps:$4 sm:$0xff]   ;;  %v9938_v19 = vld [vmem:[#allocation7 + $0xf48] ss:$16 sps:$4 sm:$0xff]  }
 0x539   :  { %4846 = vmatprep.subr.bf16.mxu1 %v9874_v20  ;;  %v9943_v20 = vld [vmem:[#allocation7 + $0xf64] ss:$16 sps:$4 sm:$0xff]  }
 0x53b   :  { %4683 = vmatpush1.bf16.msra.mxu0 %v9869_v52  ;;  %v9941_v52 = vld [vmem:[#allocation7 + $0xf60] ss:$16 sps:$4 sm:$0xff]  }
 0x53c   :  { %4847 = vmatpush1.bf16.msra.mxu1 %v9872_v23  ;;  %4693 = vmatprep.subr.bf16.mxu0 %v9877_v41  ;;  %v9949_v23 = vld [vmem:[#allocation7 + $0xf84] ss:$16 sps:$4 sm:$0xff]   ;;  %v9952_v41 = vld [vmem:[#allocation7 + $0xf8c] ss:$16 sps:$4 sm:$0xff]  }
 0x53d   :  { %4857 = vmatprep.subr.bf16.mxu1 %v9880_v25  ;;  %v9947_v25 = vld [vmem:[#allocation7 + $0xf80] ss:$16 sps:$4 sm:$0xff]  }
 0x53e   :  { %4685 = vmatmul.mubr.bf16.vlgmr.msra.gmra.mrb[24].mxu0 %v3006_v6 }
 0x53f   :  { %4849 = vmatmul.mubr.bf16.vlgmr.msra.gmra.mrb[24].mxu1 %v3006_v6  ;;  %4694 = vmatpush1.bf16.msra.mxu0 %v9875_v34  ;;  %v9955_v34 = vld [vmem:[#allocation7 + $0xfa4] ss:$16 sps:$4 sm:$0xff]   ;;  %v9958_v6 = vld [vmem:[#allocation7 + $0xfac] ss:$16 sps:$4 sm:$0xff]  }
 0x540   :  { %4725 = vmatprep.mubr.bf16.mxu0 %v3009_v36  ;;  %4858 = vmatpush1.bf16.msra.mxu1 %v9878_v32  ;;  %v9953_v32 = vld [vmem:[#allocation7 + $0xfa0] ss:$16 sps:$4 sm:$0xff]  }
 0x541   :  { %4889 = vmatprep.mubr.bf16.mxu1 %v3009_v36  ;;  %4695 = vmatprep.subr.bf16.mxu0 %v9883_v33  ;;  %v2734_v33 = vrot.slane %v10978_v9, %v10859_v26  ;;  %v9956_v36 = vld [vmem:[#allocation7 + $0xfa8] ss:$16 sps:$4 sm:$0xff]  }
 0x542   :  { %4859 = vmatprep.subr.bf16.mxu1 %v9886_v44  ;;  %v9961_v44 = vld [vmem:[#allocation7 + $0xfc4] ss:$16 sps:$4 sm:$0xff]   ;;  %v9968_v9 = vld [vmem:[#allocation7 + $0xfe8] ss:$16 sps:$4 sm:$0xff]  }
 0x543   :  { %4696 = vmatpush1.bf16.msra.mxu0 %v9881_v37  ;;  %v9964_v37 = vld [vmem:[#allocation7 + $0xfcc] ss:$16 sps:$4 sm:$0xff]  }
 0x544   :  { %4860 = vmatpush1.bf16.msra.mxu1 %v9884_v39  ;;  %4697 = vmatprep.subr.bf16.mxu0 %v9889_v45  ;;  %v9959_v39 = vld [vmem:[#allocation7 + $0xfc0] ss:$16 sps:$4 sm:$0xff]   ;;  %v2988_v45 = vadd.f32 %v10990_v35, %v2734_v33  ;;  %v9973_v35 = vld [vmem:[%s11285_s3 + $0x1c0] sm:$0xff]  }
 0x545   :  { %4861 = vmatprep.subr.bf16.mxu1 %v9892_v46  ;;  %v9962_v46 = vld [vmem:[#allocation7 + $0xfc8] ss:$16 sps:$4 sm:$0xff]  }
 0x547   :  { %4698 = vmatpush1.bf16.msra.mxu0 %v9887_v47  ;;  %v9967_v47 = vld [vmem:[#allocation7 + $0xfe4] ss:$16 sps:$4 sm:$0xff]  }
 0x548   :  { %4862 = vmatpush1.bf16.msra.mxu1 %v9890_v48  ;;  %4699 = vmatprep.subr.bf16.mxu0 %v9895_v29  ;;  %v9970_v48 = vld [vmem:[#allocation7 + $0xfec] ss:$16 sps:$4 sm:$0xff]   ;;  %v9965_v29 = vld [vmem:[#allocation7 + $0xfe0] ss:$16 sps:$4 sm:$0xff]  }
 0x549   :  { %4863 = vmatprep.subr.bf16.mxu1 %v9898_v49  ;;  %v3000_v49 = vmax.f32 %v2988_v45, 0.0 }
 0x54b   :  { %4700 = vmatpush1.bf16.msra.mxu0 %v9893_v50  ;;  %v9971_v50 = vld [vmem:[%s11285_s3 + $0x140] sm:$0xff]  }
 0x54c   :  { %4864 = vmatpush1.bf16.msra.mxu1 %v9896_v51  ;;  %4701 = vmatprep.subr.bf16.mxu0 %v9901_v5  ;;  %v9972_v51 = vld [vmem:[%s11285_s3 + $0x100] sm:$0xff]   ;;  %v3008_v5 = vpack.c.bf16 %v3000_v49, %v3000_v49 }
 0x54d   :  { %4865 = vmatprep.subr.bf16.mxu1 %v9904_v27  ;;  %v9974_v27 = vld [vmem:[%s11285_s3 + $0x180] sm:$0xff]  }
 0x54f   :  { %4702 = vmatpush1.bf16.msra.mxu0 %v9899_v54  ;;  %v9975_v54 = vld [vmem:[%s11285_s3 + $0x148] sm:$0xff]  }
 0x550   :  { %4866 = vmatpush1.bf16.msra.mxu1 %v9902_v55  ;;  %4703 = vmatprep.subr.bf16.mxu0 %v9907_v56  ;;  %v9977_v55 = vld [vmem:[%s11285_s3 + $0x1c8] sm:$0xff]  }
 0x551   :  { %4867 = vmatprep.subr.bf16.mxu1 %v9910_v57  ;;  %v9976_v56 = vld [vmem:[%s11285_s3 + $0x108] sm:$0xff]  }
 0x552   :  { %v9978_v57 = vld [vmem:[%s11285_s3 + $0x188] sm:$0xff]  }
 0x553   :  { %4704 = vmatpush1.bf16.msra.mxu0 %v9905_v30  ;;  %v9979_v30 = vld [vmem:[%s11285_s3 + $0x150] sm:$0xff]  }
 0x554   :  { %4868 = vmatpush1.bf16.msra.mxu1 %v9908_v58  ;;  %4705 = vmatprep.subr.bf16.mxu0 %v9913_v59  ;;  %v9981_v58 = vld [vmem:[%s11285_s3 + $0x1d0] sm:$0xff]  }
 0x555   :  { %4869 = vmatprep.subr.bf16.mxu1 %v9916_v60  ;;  %v9980_v59 = vld [vmem:[%s11285_s3 + $0x110] sm:$0xff]  }
 0x556   :  { %v9982_v60 = vld [vmem:[%s11285_s3 + $0x190] sm:$0xff]  }
 0x557   :  { %4706 = vmatpush1.bf16.msra.mxu0 %v9911_v61  ;;  %v9983_v61 = vld [vmem:[%s11285_s3 + $0x158] sm:$0xff]  }
 0x558   :  { %4870 = vmatpush1.bf16.msra.mxu1 %v9914_v62  ;;  %4707 = vmatprep.subr.bf16.mxu0 %v9919_v1  ;;  %v9985_v62 = vld [vmem:[%s11285_s3 + $0x1d8] sm:$0xff]  }
 0x559   :  { %4871 = vmatprep.subr.bf16.mxu1 %v9922_v2  ;;  %v9984_v1 = vld [vmem:[%s11285_s3 + $0x118] sm:$0xff]  }
 0x55a   :  { %v9986_v2 = vld [vmem:[%s11285_s3 + $0x198] sm:$0xff]  }
 0x55b   :  { %4708 = vmatpush1.bf16.msra.mxu0 %v9917_v3  ;;  %v9987_v3 = vld [vmem:[%s11285_s3 + $0x160] sm:$0xff]  }
 0x55c   :  { %4872 = vmatpush1.bf16.msra.mxu1 %v9920_v14  ;;  %4709 = vmatprep.subr.bf16.mxu0 %v9925_v4  ;;  %v9989_v14 = vld [vmem:[%s11285_s3 + $0x1e0] sm:$0xff]  }
 0x55d   :  { %4873 = vmatprep.subr.bf16.mxu1 %v9928_v7  ;;  %v9988_v4 = vld [vmem:[%s11285_s3 + $0x120] sm:$0xff]  }
 0x55e   :  { %v9990_v7 = vld [vmem:[%s11285_s3 + $0x1a0] sm:$0xff]  }
 0x55f   :  { %4710 = vmatpush1.bf16.msra.mxu0 %v9923_v10  ;;  %v9991_v10 = vld [vmem:[%s11285_s3 + $0x168] sm:$0xff]  }
 0x560   :  { %4874 = vmatpush1.bf16.msra.mxu1 %v9926_v38  ;;  %4711 = vmatprep.subr.bf16.mxu0 %v9931_v11  ;;  %v9993_v38 = vld [vmem:[%s11285_s3 + $0x1e8] sm:$0xff]  }
 0x561   :  { %4875 = vmatprep.subr.bf16.mxu1 %v9934_v12  ;;  %v9992_v11 = vld [vmem:[%s11285_s3 + $0x128] sm:$0xff]  }
 0x562   :  { %v9994_v12 = vld [vmem:[%s11285_s3 + $0x1a8] sm:$0xff]  }
 0x563   :  { %4712 = vmatpush1.bf16.msra.mxu0 %v9929_v13  ;;  %v9995_v13 = vld [vmem:[%s11285_s3 + $0x170] sm:$0xff]  }
 0x564   :  { %4876 = vmatpush1.bf16.msra.mxu1 %v9932_v15  ;;  %4713 = vmatprep.subr.bf16.mxu0 %v9937_v16  ;;  %v9997_v15 = vld [vmem:[%s11285_s3 + $0x1f0] sm:$0xff]  }
 0x565   :  { %4877 = vmatprep.subr.bf16.mxu1 %v9940_v17  ;;  %v9996_v16 = vld [vmem:[%s11285_s3 + $0x130] sm:$0xff]  }
 0x566   :  { %v9998_v17 = vld [vmem:[%s11285_s3 + $0x1b0] sm:$0xff]  }
 0x567   :  { %4714 = vmatpush1.bf16.msra.mxu0 %v9935_v18  ;;  %v9999_v18 = vld [vmem:[%s11285_s3 + $0x178] sm:$0xff]  }
 0x568   :  { %4878 = vmatpush1.bf16.msra.mxu1 %v9938_v19  ;;  %4715 = vmatprep.subr.bf16.mxu0 %v9943_v20  ;;  %v10001_v19 = vld [vmem:[%s11285_s3 + $0x1f8] sm:$0xff]  }
 0x569   :  { %4879 = vmatprep.subr.bf16.mxu1 %v9946_v21  ;;  %v10000_v20 = vld [vmem:[%s11285_s3 + $0x138] sm:$0xff]  }
 0x56a   :  { %v10002_v21 = vld [vmem:[%s11285_s3 + $0x1b8] sm:$0xff]  }
 0x56b   :  { %4716 = vmatpush1.bf16.msra.mxu0 %v9941_v52  ;;  %v5252_v52 = vld [vmem:[#allocation5 + $0x100] sm:$0xff] }
 0x56c   :  { %4880 = vmatpush1.bf16.msra.mxu1 %v9944_v22  ;;  %4717 = vmatprep.subr.bf16.mxu0 %v9949_v23  ;;  %v5256_v22 = vld [vmem:[#allocation5 + $0x120] sm:$0xff]  ;;  %v5253_v23 = vld [vmem:[#allocation5 + $0x108] sm:$0xff] }
 0x56d   :  { %4881 = vmatprep.subr.bf16.mxu1 %v9952_v41  ;;  %v8562_v41 = vcombine.low %v5252_v52, %v5256_v22 }
 0x56f   :  { %4718 = vmatpush1.bf16.msra.mxu0 %v9947_v25  ;;  %v8563_v25 = vcombine.high %v5252_v52, %v5256_v22 }
 0x570   :  { %4882 = vmatpush1.bf16.msra.mxu1 %v9950_v31  ;;  %4719 = vmatprep.subr.bf16.mxu0 %v9955_v34  ;;  %v5257_v31 = vld [vmem:[#allocation5 + $0x128] sm:$0xff] }
 0x571   :  { %4883 = vmatprep.subr.bf16.mxu1 %v9958_v6  ;;  %v8564_v34 = vcombine.low %v5253_v23, %v5257_v31  ;;  %v8565_v6 = vcombine.high %v5253_v23, %v5257_v31  ;;  %v10003_v31 = vld [vmem:[#allocation7 + $0x1000] ss:$16 sps:$4 sm:$0xff]  }
 0x573   :  { %4720 = vmatpush1.bf16.msra.mxu0 %v9953_v32  ;;  %v3268_v32 = vld [vmem:[#allocation10 + $0x4] sm:$0xf] }
 0x574   :  { %4884 = vmatpush1.bf16.msra.mxu1 %v9956_v36  ;;  %4721 = vmatprep.subr.bf16.mxu0 %v9961_v44  ;;  %v3273_v33 = vrot.slane %v3268_v32, %v10806_v40  ;;  %v3281_v36 = vrot.slane %v3268_v32, %v10833_v63  ;;  %v3277_v44 = vrot.slane %v3268_v32, %v10811_v42 }
 0x575   :  { %4885 = vmatprep.subr.bf16.mxu1 %v9964_v37  ;;  %v3285_v37 = vrot.slane %v3268_v32, %v10814_v43  ;;  %v10014_v32 = vld [vmem:[#allocation7 + $0x102c] ss:$16 sps:$4 sm:$0xff]  }
 0x577   :  { %4722 = vmatpush1.bf16.msra.mxu0 %v9959_v39 }
 0x578   :  { %4886 = vmatpush1.bf16.msra.mxu1 %v9962_v46  ;;  %4723 = vmatprep.subr.bf16.mxu0 %v9967_v47 }
 0x579   :  { %4887 = vmatprep.subr.bf16.mxu1 %v9970_v48 }
 0x57b   :  { %4724 = vmatpush1.bf16.msra.mxu0 %v9965_v29 }
 0x57c   :  { %4888 = vmatpush1.bf16.msra.mxu1 %v9968_v9  ;;  %8979 = vmatprep.subr.bf16.mxu0 %v9971_v50 }
 0x57d   :  { %9001 = vmatprep.subr.bf16.mxu1 %v9973_v35 }
 0x57e   :  { %4726 = vmatmul.mubr.bf16.vlgmr.msra.gmra.mrb[24].mxu0 %v3008_v5 }
 0x57f   :  { %4890 = vmatmul.mubr.bf16.vlgmr.msra.gmra.mrb[24].mxu1 %v3008_v5  ;;  %8980 = vmatpush3.bf16.msra.mxu0 %v9972_v51 }
 0x580   :  { %9002 = vmatpush3.bf16.msra.mxu1 %v9974_v27  ;;  %8981 = vmatprep.subr.bf16.mxu0 %v9975_v54 }
 0x581   :  { %9003 = vmatprep.subr.bf16.mxu1 %v9977_v55 }
 0x583   :  { %8982 = vmatpush3.bf16.msra.mxu0 %v9976_v56  ;;  %v5260_v56 = vld [vmem:[#allocation5 + $0x140] sm:$0xff] }
 0x584   :  { %9004 = vmatpush3.bf16.msra.mxu1 %v9978_v57  ;;  %8983 = vmatprep.subr.bf16.mxu0 %v9979_v30  ;;  %v5264_v57 = vld [vmem:[#allocation5 + $0x160] sm:$0xff] }
 0x585   :  { %9005 = vmatprep.subr.bf16.mxu1 %v9981_v58  ;;  %v5261_v58 = vld [vmem:[#allocation5 + $0x148] sm:$0xff] }
 0x587   :  { %8984 = vmatpush3.bf16.msra.mxu0 %v9980_v59  ;;  %v5265_v59 = vld [vmem:[#allocation5 + $0x168] sm:$0xff] }
 0x588   :  { %9006 = vmatpush3.bf16.msra.mxu1 %v9982_v60  ;;  %8985 = vmatprep.subr.bf16.mxu0 %v9983_v61 }
 0x589   :  { %9007 = vmatprep.subr.bf16.mxu1 %v9985_v62 }
 0x58b   :  { %8986 = vmatpush3.bf16.msra.mxu0 %v9984_v1  ;;  %v8571_v1 = vcombine.high %v5260_v56, %v5264_v57 }
 0x58c   :  { %9008 = vmatpush3.bf16.msra.mxu1 %v9986_v2  ;;  %8987 = vmatprep.subr.bf16.mxu0 %v9987_v3  ;;  %v8573_v3 = vcombine.high %v5261_v58, %v5265_v59 }
 0x58d   :  { %9009 = vmatprep.subr.bf16.mxu1 %v9989_v14  ;;  %v5254_v14 = vld [vmem:[#allocation5 + $0x110] sm:$0xff] }
 0x58f   :  { %8988 = vmatpush3.bf16.msra.mxu0 %v9988_v4  ;;  %v5258_v4 = vld [vmem:[#allocation5 + $0x130] sm:$0xff] }
 0x590   :  { %9010 = vmatpush3.bf16.msra.mxu1 %v9990_v7  ;;  %8989 = vmatprep.subr.bf16.mxu0 %v9991_v10  ;;  %v5255_v7 = vld [vmem:[#allocation5 + $0x118] sm:$0xff] }
 0x591   :  { %9011 = vmatprep.subr.bf16.mxu1 %v9993_v38  ;;  %v5259_v10 = vld [vmem:[#allocation5 + $0x138] sm:$0xff]  ;;  %v8570_v38 = vcombine.low %v5260_v56, %v5264_v57  ;;  %v10047_v57 = vld [vmem:[#allocation7 + $0x10e4] ss:$16 sps:$4 sm:$0xff]  }
 0x592   :  { %v10042_v56 = vld [vmem:[#allocation7 + $0x10c8] ss:$16 sps:$4 sm:$0xff]  }
 0x593   :  { %8990 = vmatpush3.bf16.msra.mxu0 %v9992_v11  ;;  %v8572_v11 = vcombine.low %v5261_v58, %v5265_v59  ;;  %v10045_v58 = vld [vmem:[#allocation7 + $0x10e0] ss:$16 sps:$4 sm:$0xff]   ;;  %v10048_v59 = vld [vmem:[#allocation7 + $0x10e8] ss:$16 sps:$4 sm:$0xff]  }
 0x594   :  { %9012 = vmatpush3.bf16.msra.mxu1 %v9994_v12  ;;  %8991 = vmatprep.subr.bf16.mxu0 %v9995_v13  ;;  %v8567_v12 = vcombine.high %v5254_v14, %v5258_v4  ;;  %v8569_v13 = vcombine.high %v5255_v7, %v5259_v10 }
 0x595   :  { %9013 = vmatprep.subr.bf16.mxu1 %v9997_v15  ;;  %v5262_v15 = vld [vmem:[#allocation5 + $0x150] sm:$0xff] }
 0x597   :  { %8992 = vmatpush3.bf16.msra.mxu0 %v9996_v16  ;;  %v5266_v16 = vld [vmem:[#allocation5 + $0x170] sm:$0xff] }
 0x598   :  { %9014 = vmatpush3.bf16.msra.mxu1 %v9998_v17  ;;  %8993 = vmatprep.subr.bf16.mxu0 %v9999_v18  ;;  %v5263_v17 = vld [vmem:[#allocation5 + $0x158] sm:$0xff]  ;;  %v8574_v22 = vcombine.low %v5262_v15, %v5266_v16 }
 0x599   :  { %9015 = vmatprep.subr.bf16.mxu1 %v10001_v19  ;;  %v5267_v18 = vld [vmem:[#allocation5 + $0x178] sm:$0xff]  ;;  %v8566_v19 = vcombine.low %v5254_v14, %v5258_v4  ;;  %v10057_v14 = vld [vmem:[#allocation7 + $0x1120] ss:$16 sps:$4 sm:$0xff]  }
 0x59a   :  { %v8577_v52 = vcombine.high %v5263_v17, %v5267_v18  ;;  %v8576_v23 = vcombine.low %v5263_v17, %v5267_v18  ;;  %v10060_v4 = vld [vmem:[#allocation7 + $0x1128] ss:$16 sps:$4 sm:$0xff]   ;;  %v10077_v17 = vld [vmem:[#allocation7 + $0x1184] ss:$16 sps:$4 sm:$0xff]   ;;  %v10080_v18 = vld [vmem:[#allocation7 + $0x118c] ss:$16 sps:$4 sm:$0xff]  }
 0x59b   :  { %8994 = vmatpush3.bf16.msra.mxu0 %v10000_v20  ;;  %v8568_v20 = vcombine.low %v5255_v7, %v5259_v10  ;;  %v10065_v7 = vld [vmem:[#allocation7 + $0x1144] ss:$16 sps:$4 sm:$0xff]   ;;  %v10068_v10 = vld [vmem:[#allocation7 + $0x114c] ss:$16 sps:$4 sm:$0xff]  }
 0x59c   :  { %9016 = vmatpush3.bf16.msra.mxu1 %v10002_v21  ;;  %5391 = vmatprep.subr.bf16.mxu0 %v8563_v25  ;;  %v8575_v21 = vcombine.high %v5262_v15, %v5266_v16  ;;  %v10008_v25 = vld [vmem:[#allocation7 + $0x100c] ss:$16 sps:$4 sm:$0xff]   ;;  %v10069_v15 = vld [vmem:[#allocation7 + $0x1160] ss:$16 sps:$4 sm:$0xff]   ;;  %v10072_v16 = vld [vmem:[#allocation7 + $0x1168] ss:$16 sps:$4 sm:$0xff]  }
 0x59d   :  { %5432 = vmatprep.subr.bf16.mxu1 %v8565_v6  ;;  %v10011_v6 = vld [vmem:[#allocation7 + $0x1024] ss:$16 sps:$4 sm:$0xff]  }
 0x651   :  { %v4727_v39 = vpop.f32.mrb[24].mxu0 }
 0x652   :  { %v9071_v45 = vadd.f32 %v4727_v39, %v3273_v33  ;;  %v4891_v46 = vpop.f32.mrb[24].mxu1  ;;  %v4729_v47 = vpop.f32.mrb[25].mxu0  ;;  %v10009_v33 = vld [vmem:[#allocation7 + $0x1020] ss:$16 sps:$4 sm:$0xff]   ;;  %v10018_v39 = vld [vmem:[#allocation7 + $0x1048] ss:$16 sps:$4 sm:$0xff]  }
 0x653   :  { %v9073_v48 = vadd.f32 %v4891_v46, %v3281_v36  ;;  %v9072_v29 = vadd.f32 %v4729_v47, %v3277_v44  ;;  %v4893_v49 = vpop.f32.mrb[25].mxu1  ;;  %v4731_v9 = vpop.f32.mrb[26].mxu0  ;;  %v10012_v36 = vld [vmem:[#allocation7 + $0x1028] ss:$16 sps:$4 sm:$0xff]   ;;  %v10020_v44 = vld [vmem:[#allocation7 + $0x104c] ss:$16 sps:$4 sm:$0xff]  }
 0x654   :  { %v4898_v50 = vmax.f32 %v9071_v45, 0.0  ;;  %v9074_v35 = vadd.f32 %v4893_v49, %v3285_v37  ;;  %v4895_v51 = vpop.f32.mrb[26].mxu1  ;;  %v4732_v5 = vpop.f32.mrb[27].mxu0  ;;  %v10015_v37 = vld [vmem:[#allocation7 + $0x1040] ss:$16 sps:$4 sm:$0xff]  }
 0x655   :  { %v4900_v27 = vmax.f32 %v9073_v48, 0.0  ;;  %v4899_v54 = vmax.f32 %v9072_v29, 0.0  ;;  %v4896_v55 = vpop.f32.mrb[27].mxu1  ;;  %v10023_v45 = vld [vmem:[#allocation7 + $0x1064] ss:$16 sps:$4 sm:$0xff]  }
 0x656   :  { %v4901_v30 = vmax.f32 %v9074_v35, 0.0  ;;  %v4902_v61 = vpack.c.bf16 %v4898_v50, %v4898_v50  ;;  %v10026_v46 = vld [vmem:[#allocation7 + $0x106c] ss:$16 sps:$4 sm:$0xff]   ;;  %v10021_v47 = vld [vmem:[#allocation7 + $0x1060] ss:$16 sps:$4 sm:$0xff]  }
 0x657   :  { %v4903_v60 = vpack.c.bf16 %v4899_v54, %v4899_v54  ;;  %v4904_v2 = vpack.c.bf16 %v4900_v27, %v4900_v27  ;;  %v10029_v48 = vld [vmem:[#allocation7 + $0x1084] ss:$16 sps:$4 sm:$0xff]   ;;  %v10032_v29 = vld [vmem:[#allocation7 + $0x108c] ss:$16 sps:$4 sm:$0xff]   ;;  %v10027_v49 = vld [vmem:[#allocation7 + $0x1080] ss:$16 sps:$4 sm:$0xff]  }
 0x658   :  { %v4905_v62 = vpack.c.bf16 %v4901_v30, %v4901_v30  ;;  %v10030_v9 = vld [vmem:[#allocation7 + $0x1088] ss:$16 sps:$4 sm:$0xff]   ;;  %v10035_v50 = vld [vmem:[#allocation7 + $0x10a4] ss:$16 sps:$4 sm:$0xff]   ;;  %v10038_v35 = vld [vmem:[#allocation7 + $0x10ac] ss:$16 sps:$4 sm:$0xff]  }
 0x659   :  { %5203 = vmatprep.mubr.bf16.mxu0 %v4903_v60  ;;  %v10033_v51 = vld [vmem:[#allocation7 + $0x10a0] ss:$16 sps:$4 sm:$0xff]   ;;  %v10036_v5 = vld [vmem:[#allocation7 + $0x10a8] ss:$16 sps:$4 sm:$0xff]   ;;  %v10041_v27 = vld [vmem:[#allocation7 + $0x10c4] ss:$16 sps:$4 sm:$0xff]  }
 0x65a   :  { %5243 = vmatprep.mubr.bf16.mxu1 %v4905_v62  ;;  %5204 = vmatmul.mubr.bf16.vlgmr.msra.gmra.mrb[28].mxu0 %v4902_v61  ;;  %v10044_v54 = vld [vmem:[#allocation7 + $0x10cc] ss:$16 sps:$4 sm:$0xff]   ;;  %v10039_v55 = vld [vmem:[#allocation7 + $0x10c0] ss:$16 sps:$4 sm:$0xff]   ;;  %v10053_v60 = vld [vmem:[#allocation7 + $0x1104] ss:$16 sps:$4 sm:$0xff]  }
 0x65b   :  { %5244 = vmatmul.mubr.bf16.vlgmr.msra.gmra.mrb[28].mxu1 %v4904_v2  ;;  %5392 = vmatpush1.bf16.msra.mxu0 %v8562_v41  ;;  %v10005_v41 = vld [vmem:[#allocation7 + $0x1004] ss:$16 sps:$4 sm:$0xff]   ;;  %v10050_v30 = vld [vmem:[#allocation7 + $0x10ec] ss:$16 sps:$4 sm:$0xff]   ;;  %v10051_v62 = vld [vmem:[#allocation7 + $0x1100] ss:$16 sps:$4 sm:$0xff]  }
 0x65c   :  { %5433 = vmatpush1.bf16.msra.mxu1 %v8564_v34  ;;  %5393 = vmatprep.subr.bf16.mxu0 %v8571_v1  ;;  %v10006_v34 = vld [vmem:[#allocation7 + $0x1008] ss:$16 sps:$4 sm:$0xff]   ;;  %v10056_v61 = vld [vmem:[#allocation7 + $0x110c] ss:$16 sps:$4 sm:$0xff]   ;;  %v10059_v2 = vld [vmem:[#allocation7 + $0x1124] ss:$16 sps:$4 sm:$0xff]  }
 0x65d   :  { %5434 = vmatprep.subr.bf16.mxu1 %v8573_v3  ;;  %5423 = vmatprep.mubr.bf16.mxu0 %v10654_v0  ;;  %v10054_v1 = vld [vmem:[#allocation7 + $0x1108] ss:$16 sps:$4 sm:$0xff]   ;;  %v10062_v3 = vld [vmem:[#allocation7 + $0x112c] ss:$16 sps:$4 sm:$0xff]  }
 0x65e   :  { %5464 = vmatprep.mubr.bf16.mxu1 %v10654_v0 }
 0x65f   :  { %5394 = vmatpush1.bf16.msra.mxu0 %v8570_v38  ;;  %v10063_v38 = vld [vmem:[#allocation7 + $0x1140] ss:$16 sps:$4 sm:$0xff]  }
 0x660   :  { %5435 = vmatpush1.bf16.msra.mxu1 %v8572_v11  ;;  %5473 = vmatprep.subr.bf16.mxu0 %v8567_v12  ;;  %v10066_v11 = vld [vmem:[#allocation7 + $0x1148] ss:$16 sps:$4 sm:$0xff]   ;;  %v10071_v12 = vld [vmem:[#allocation7 + $0x1164] ss:$16 sps:$4 sm:$0xff]  }
 0x661   :  { %5514 = vmatprep.subr.bf16.mxu1 %v8569_v13  ;;  %v10074_v13 = vld [vmem:[#allocation7 + $0x116c] ss:$16 sps:$4 sm:$0xff]  }
 0x662   :  { %8578 = vmatmul.mubr.msk.bf16.vlgmr.msra.gmra.mrb[32].mxu0 %vm265_vm0, %v10966_v53 }
 0x663   :  { %8579 = vmatmul.mubr.msk.bf16.vlgmr.msra.gmra.mrb[32].mxu1 %vm265_vm0, %v10966_v53  ;;  %5474 = vmatpush1.bf16.msra.mxu0 %v8566_v19  ;;  %v10075_v19 = vld [vmem:[#allocation7 + $0x1180] ss:$16 sps:$4 sm:$0xff]  }
 0x664   :  { %5515 = vmatpush1.bf16.msra.mxu1 %v8568_v20  ;;  %5475 = vmatprep.subr.bf16.mxu0 %v8575_v21  ;;  %v10078_v20 = vld [vmem:[#allocation7 + $0x1188] ss:$16 sps:$4 sm:$0xff]   ;;  %v10083_v21 = vld [vmem:[#allocation7 + $0x11a4] ss:$16 sps:$4 sm:$0xff]  }
 0x665   :  { %5516 = vmatprep.subr.bf16.mxu1 %v8577_v52  ;;  %5505 = vmatprep.mubr.bf16.mxu0 %v10654_v0  ;;  %v10086_v52 = vld [vmem:[#allocation7 + $0x11ac] ss:$16 sps:$4 sm:$0xff]  }
 0x666   :  { %5546 = vmatprep.mubr.bf16.mxu1 %v10654_v0  ;;  %v10017_v0 = vld [vmem:[#allocation7 + $0x1044] ss:$16 sps:$4 sm:$0xff]  }
 0x667   :  { %5476 = vmatpush1.bf16.msra.mxu0 %v8574_v22  ;;  %v10081_v22 = vld [vmem:[#allocation7 + $0x11a0] ss:$16 sps:$4 sm:$0xff]  }
 0x668   :  { %5517 = vmatpush1.bf16.msra.mxu1 %v8576_v23  ;;  %7131 = vmatprep.subr.bf16.mxu0 %v10005_v41  ;;  %v10084_v23 = vld [vmem:[#allocation7 + $0x11a8] ss:$16 sps:$4 sm:$0xff]   ;;  %v10089_v41 = vld [vmem:[#allocation7 + $0x11c4] ss:$16 sps:$4 sm:$0xff]  }
 0x669   :  { %7295 = vmatprep.subr.bf16.mxu1 %v10008_v25  ;;  %v10092_v25 = vld [vmem:[#allocation7 + $0x11cc] ss:$16 sps:$4 sm:$0xff]  }
 0x66a   :  { %8580 = vmatmul.mubr.msk.bf16.vlgmr.msra.gmra.mrb[36].mxu0 %vm265_vm0, %v10966_v53 }
 0x66b   :  { %8581 = vmatmul.mubr.msk.bf16.vlgmr.msra.gmra.mrb[36].mxu1 %vm265_vm0, %v10966_v53  ;;  %7132 = vmatpush1.bf16.msra.mxu0 %v10003_v31  ;;  %v10024_v53 = vld [vmem:[#allocation7 + $0x1068] ss:$16 sps:$4 sm:$0xff]   ;;  %v10087_v31 = vld [vmem:[#allocation7 + $0x11c0] ss:$16 sps:$4 sm:$0xff]  }
 0x66c   :  { %7296 = vmatpush1.bf16.msra.mxu1 %v10006_v34  ;;  %7133 = vmatprep.subr.bf16.mxu0 %v10011_v6  ;;  %v10090_v34 = vld [vmem:[#allocation7 + $0x11c8] ss:$16 sps:$4 sm:$0xff]   ;;  %v10095_v6 = vld [vmem:[#allocation7 + $0x11e4] ss:$16 sps:$4 sm:$0xff]  }
 0x66d   :  { %7297 = vmatprep.subr.bf16.mxu1 %v10014_v32  ;;  %v10098_v32 = vld [vmem:[#allocation7 + $0x11ec] ss:$16 sps:$4 sm:$0xff]  }
 0x66f   :  { %7134 = vmatpush1.bf16.msra.mxu0 %v10009_v33  ;;  %v10093_v33 = vld [vmem:[#allocation7 + $0x11e0] ss:$16 sps:$4 sm:$0xff]  }
 0x670   :  { %7298 = vmatpush1.bf16.msra.mxu1 %v10012_v36  ;;  %7135 = vmatprep.subr.bf16.mxu0 %v10017_v0  ;;  %v10096_v36 = vld [vmem:[#allocation7 + $0x11e8] ss:$16 sps:$4 sm:$0xff]   ;;  %v10101_v0 = vld [vmem:[#allocation7 + $0x1204] ss:$16 sps:$4 sm:$0xff]  }
 0x671   :  { %7299 = vmatprep.subr.bf16.mxu1 %v10020_v44  ;;  %v10104_v44 = vld [vmem:[#allocation7 + $0x120c] ss:$16 sps:$4 sm:$0xff]  }
 0x673   :  { %7136 = vmatpush1.bf16.msra.mxu0 %v10015_v37 }
 0x674   :  { %7300 = vmatpush1.bf16.msra.mxu1 %v10018_v39  ;;  %7137 = vmatprep.subr.bf16.mxu0 %v10023_v45  ;;  %v8529_v45 = vld [vmem:[#allocation11 + $0x1] ss:$0 sm:$0xff] }
 0x675   :  { %7301 = vmatprep.subr.bf16.mxu1 %v10026_v46 }
 0x677   :  { %7138 = vmatpush1.bf16.msra.mxu0 %v10021_v47 }
 0x678   :  { %7302 = vmatpush1.bf16.msra.mxu1 %v10024_v53  ;;  %7139 = vmatprep.subr.bf16.mxu0 %v10029_v48 }
 0x679   :  { %7303 = vmatprep.subr.bf16.mxu1 %v10032_v29  ;;  %v5269_v29 = vld [vmem:[#allocation8 + $0x10] sm:$0xff] }
 0x67b   :  { %7140 = vmatpush1.bf16.msra.mxu0 %v10027_v49 }
 0x67c   :  { %7304 = vmatpush1.bf16.msra.mxu1 %v10030_v9  ;;  %7141 = vmatprep.subr.bf16.mxu0 %v10035_v50 }
 0x67d   :  { %7305 = vmatprep.subr.bf16.mxu1 %v10038_v35 }
 0x67f   :  { %7142 = vmatpush1.bf16.msra.mxu0 %v10033_v51 }
 0x680   :  { %7306 = vmatpush1.bf16.msra.mxu1 %v10036_v5  ;;  %7143 = vmatprep.subr.bf16.mxu0 %v10041_v27  ;;  %v7812_v5 = vld [vmem:[#allocation13] sm:$0xff]  ;;  %v5274_v27 = vrot.slane %v5269_v29, %v10806_v40 }
 0x681   :  { %7307 = vmatprep.subr.bf16.mxu1 %v10044_v54 }
 0x683   :  { %7144 = vmatpush1.bf16.msra.mxu0 %v10039_v55  ;;  %v5282_v55 = vrot.slane %v5269_v29, %v10833_v63 }
 0x684   :  { %7308 = vmatpush1.bf16.msra.mxu1 %v10042_v56  ;;  %7145 = vmatprep.subr.bf16.mxu0 %v10047_v57  ;;  %v5278_v56 = vrot.slane %v5269_v29, %v10811_v42  ;;  %v5286_v57 = vrot.slane %v5269_v29, %v10814_v43 }
 0x685   :  { %7309 = vmatprep.subr.bf16.mxu1 %v10050_v30 }
 0x687   :  { %7146 = vmatpush1.bf16.msra.mxu0 %v10045_v58 }
 0x688   :  { %7310 = vmatpush1.bf16.msra.mxu1 %v10048_v59  ;;  %7147 = vmatprep.subr.bf16.mxu0 %v10053_v60 }
 0x689   :  { %7311 = vmatprep.subr.bf16.mxu1 %v10056_v61 }
 0x68b   :  { %7148 = vmatpush1.bf16.msra.mxu0 %v10051_v62 }
 0x68c   :  { %7312 = vmatpush1.bf16.msra.mxu1 %v10054_v1  ;;  %7149 = vmatprep.subr.bf16.mxu0 %v10059_v2 }
 0x68d   :  { %7313 = vmatprep.subr.bf16.mxu1 %v10062_v3 }
 0x68f   :  { %7150 = vmatpush1.bf16.msra.mxu0 %v10057_v14 }
 0x690   :  { %7314 = vmatpush1.bf16.msra.mxu1 %v10060_v4  ;;  %7151 = vmatprep.subr.bf16.mxu0 %v10065_v7 }
 0x691   :  { %7315 = vmatprep.subr.bf16.mxu1 %v10068_v10 }
 0x693   :  { %7152 = vmatpush1.bf16.msra.mxu0 %v10063_v38 }
 0x694   :  { %7316 = vmatpush1.bf16.msra.mxu1 %v10066_v11  ;;  %7153 = vmatprep.subr.bf16.mxu0 %v10071_v12 }
 0x695   :  { %7317 = vmatprep.subr.bf16.mxu1 %v10074_v13 }
 0x697   :  { %7154 = vmatpush1.bf16.msra.mxu0 %v10069_v15 }
 0x698   :  { %7318 = vmatpush1.bf16.msra.mxu1 %v10072_v16  ;;  %7155 = vmatprep.subr.bf16.mxu0 %v10077_v17  ;;  %v5290_v16 = vrot.slane %v5269_v29, %v10845_v24 }
 0x699   :  { %7319 = vmatprep.subr.bf16.mxu1 %v10080_v18 }
 0x69b   :  { %7156 = vmatpush1.bf16.msra.mxu0 %v10075_v19  ;;  %v5298_v19 = vrot.slane %v5269_v29, %v10859_v26  ;;  %v10105_v26 = vld [vmem:[#allocation7 + $0x1220] ss:$16 sps:$4 sm:$0xff]  }
 0x69c   :  { %7320 = vmatpush1.bf16.msra.mxu1 %v10078_v20  ;;  %7157 = vmatprep.subr.bf16.mxu0 %v10083_v21  ;;  %v10099_v20 = vld [vmem:[#allocation7 + $0x1200] ss:$16 sps:$4 sm:$0xff]   ;;  %v10102_v21 = vld [vmem:[#allocation7 + $0x1208] ss:$16 sps:$4 sm:$0xff]  }
 0x69d   :  { %7321 = vmatprep.subr.bf16.mxu1 %v10086_v52  ;;  %v5294_v52 = vrot.slane %v5269_v29, %v10838_v8 }
 0x69f   :  { %7158 = vmatpush1.bf16.msra.mxu0 %v10081_v22 }
 0x6a0   :  { %7322 = vmatpush1.bf16.msra.mxu1 %v10084_v23  ;;  %7159 = vmatprep.subr.bf16.mxu0 %v10089_v41  ;;  %v5302_v23 = vrot.slane %v5269_v29, %v10848_v28 }
 0x6a1   :  { %7323 = vmatprep.subr.bf16.mxu1 %v10092_v25 }
 0x6a3   :  { %7160 = vmatpush1.bf16.msra.mxu0 %v10087_v31  ;;  %v10107_v31 = vld [vmem:[#allocation7 + $0x1224] ss:$16 sps:$4 sm:$0xff]  }
 0x6a4   :  { %7324 = vmatpush1.bf16.msra.mxu1 %v10090_v34  ;;  %7161 = vmatprep.subr.bf16.mxu0 %v10095_v6  ;;  %v10110_v34 = vld [vmem:[#allocation7 + $0x122c] ss:$16 sps:$4 sm:$0xff]  }
 0x6a5   :  { %7325 = vmatprep.subr.bf16.mxu1 %v10098_v32 }
 0x6a7   :  { %7162 = vmatpush1.bf16.msra.mxu0 %v10093_v33 }
 0x6a8   :  { %7326 = vmatpush1.bf16.msra.mxu1 %v10096_v36  ;;  %7172 = vmatprep.subr.bf16.mxu0 %v10101_v0 }
 0x6a9   :  { %7336 = vmatprep.subr.bf16.mxu1 %v10104_v44  ;;  %v10108_v44 = vld [vmem:[#allocation7 + $0x1228] ss:$16 sps:$4 sm:$0xff]  }
 0x72d   :  { %v8995_v37 = vpop.f32.mrb[28].mxu0 }
 0x72e   :  { %v9017_v39 = vpop.f32.mrb[28].mxu1  ;;  %v8996_v46 = vpop.f32.mrb[29].mxu0 }
 0x72f   :  { %v8997_v47 = vadd.f32 %v8996_v46, %v8995_v37  ;;  %v9018_v53 = vpop.f32.mrb[29].mxu1  ;;  %v8998_v48 = vpop.f32.mrb[30].mxu0 }
 0x730   :  { %v9019_v49 = vadd.f32 %v9018_v53, %v9017_v39  ;;  %v9020_v9 = vpop.f32.mrb[30].mxu1  ;;  %v8999_v50 = vpop.f32.mrb[31].mxu0  ;;  %v10116_v53 = vld [vmem:[#allocation7 + $0x124c] ss:$16 sps:$4 sm:$0xff]  }
 0x731   :  { %v5206_v35 = vadd.f32 %v8997_v47, %v8529_v45  ;;  %v9021_v51 = vpop.f32.mrb[31].mxu1  ;;  %v10113_v47 = vld [vmem:[#allocation7 + $0x1244] ss:$16 sps:$4 sm:$0xff]   ;;  %v10114_v9 = vld [vmem:[#allocation7 + $0x1248] ss:$16 sps:$4 sm:$0xff]  }
 0x732   :  { %v10122_v51 = vld [vmem:[#allocation7 + $0x126c] ss:$16 sps:$4 sm:$0xff]  }
 0x733   :  { %v5246_v54 = vadd.f32 %v9019_v49, %v5206_v35  ;;  %v10111_v49 = vld [vmem:[#allocation7 + $0x1240] ss:$16 sps:$4 sm:$0xff]   ;;  %v10119_v35 = vld [vmem:[#allocation7 + $0x1264] ss:$16 sps:$4 sm:$0xff]  }
 0x735   :  { %v7813_v30 = vadd.f32 %v7812_v5, %v5246_v54  ;;  %v5425_v58 = vpop.f32.mrb[32].mxu0  ;;  %v10120_v54 = vld [vmem:[#allocation7 + $0x1268] ss:$16 sps:$4 sm:$0xff]  }
 0x736   :  { %v5426_v59 = vadd.f32 %v5425_v58, %v5274_v27  ;;  %v5466_v60 = vpop.f32.mrb[32].mxu1  ;;  %v5427_v61 = vpop.f32.mrb[33].mxu0  ;;  %v10117_v27 = vld [vmem:[#allocation7 + $0x1260] ss:$16 sps:$4 sm:$0xff]  }
 0x737   :  { %v11127_v62 = vmul.f32 2.0, %v7813_v30  ;;  %v11129_v1 = vadd.f32 %v5466_v60, %v5282_v55  ;;  %v5428_v2 = vadd.f32 %v5427_v61, %v5278_v56  ;;  %v5468_v3 = vpop.f32.mrb[33].mxu1  ;;  %v5429_v14 = vpop.f32.mrb[34].mxu0  ;;  %v10125_v56 = vld [vmem:[#allocation7 + $0x1284] ss:$16 sps:$4 sm:$0xff]  }
 0x738   :  { %v5555_v4 = vmax.f32 %v5426_v59, 0.0  ;;  %v5469_v7 = vadd.f32 %v5468_v3, %v5286_v57  ;;  %v5470_v10 = vpop.f32.mrb[34].mxu1  ;;  %v5430_v38 = vpop.f32.mrb[35].mxu0  ;;  %v10128_v57 = vld [vmem:[#allocation7 + $0x128c] ss:$16 sps:$4 sm:$0xff]  }
 0x739   :  { %v5556_v11 = vmax.f32 %v5428_v2, 0.0  ;;  %v5471_v12 = vpop.f32.mrb[35].mxu1  ;;  %v7816_v13 = vsel %vm7815_vm1, %v11127_v62, -inf  ;;  %v10123_v58 = vld [vmem:[#allocation7 + $0x1280] ss:$16 sps:$4 sm:$0xff]  }
 0x73a   :  { %v5558_v15 = vmax.f32 %v5469_v7, 0.0  ;;  %v7817_v17 = vrot.slane %v7816_v13, 4  ;;  %v5563_v22 = vpack.c.bf16 %v5555_v4, %v5555_v4  ;;  %v10126_v59 = vld [vmem:[#allocation7 + $0x1288] ss:$16 sps:$4 sm:$0xff]   ;;  %v10131_v60 = vld [vmem:[#allocation7 + $0x12a4] ss:$16 sps:$4 sm:$0xff]  }
 0x73b   :  { %v5564_v18 = vpack.c.bf16 %v5556_v11, %v5556_v11  ;;  %v10134_v61 = vld [vmem:[#allocation7 + $0x12ac] ss:$16 sps:$4 sm:$0xff]   ;;  %v10129_v2 = vld [vmem:[#allocation7 + $0x12a0] ss:$16 sps:$4 sm:$0xff]   ;;  %v10132_v3 = vld [vmem:[#allocation7 + $0x12a8] ss:$16 sps:$4 sm:$0xff]  }
 0x73c   :  { %v7818_v41 = vmax.f32 %v7816_v13, %v7817_v17  ;;  %v5566_v6 = vpack.c.bf16 %v5558_v15, %v5558_v15  ;;  %v10140_v14 = vld [vmem:[#allocation7 + $0x12cc] ss:$16 sps:$4 sm:$0xff]   ;;  %v10135_v4 = vld [vmem:[#allocation7 + $0x12c0] ss:$16 sps:$4 sm:$0xff]   ;;  %v10138_v7 = vld [vmem:[#allocation7 + $0x12c8] ss:$16 sps:$4 sm:$0xff]  }
 0x73d   :  { %v5507_v25 = vpop.f32.mrb[36].mxu0  ;;  %7163 = vmatprep.mubr.bf16.mxu0 %v5564_v18  ;;  %7327 = vmatprep.mubr.bf16.mxu1 %v5564_v18  ;;  %v10143_v10 = vld [vmem:[#allocation7 + $0x12e4] ss:$16 sps:$4 sm:$0xff]   ;;  %v10146_v38 = vld [vmem:[#allocation7 + $0x12ec] ss:$16 sps:$4 sm:$0xff]  }
 0x73e   :  { %v11137_v32 = vadd.f32 %v5507_v25, %v5290_v16  ;;  %v5548_v24 = vpop.f32.mrb[36].mxu1  ;;  %v5509_v33 = vpop.f32.mrb[37].mxu0  ;;  %7164 = vmatmul.mubr.bf16.vlgmr.msra.gmra.mrb[40].mxu0 %v5563_v22  ;;  %7328 = vmatmul.mubr.bf16.vlgmr.msra.gmra.mrb[40].mxu1 %v5563_v22  ;;  %v7819_v37 = vrot.slane %v7818_v41, 2  ;;  %v10141_v13 = vld [vmem:[#allocation7 + $0x12e0] ss:$16 sps:$4 sm:$0xff]  }
 0x73f   :  { %v11139_v36 = vadd.f32 %v5548_v24, %v5298_v19  ;;  %v11141_v8 = vadd.f32 %v5509_v33, %v5294_v52  ;;  %v5550_v0 = vpop.f32.mrb[37].mxu1  ;;  %7173 = vmatpush1.bf16.msra.mxu0 %v10099_v20  ;;  %7337 = vmatpush1.bf16.msra.mxu1 %v10102_v21  ;;  %v5511_v28 = vpop.f32.mrb[38].mxu0  ;;  %v10144_v15 = vld [vmem:[#allocation7 + $0x12e8] ss:$16 sps:$4 sm:$0xff]   ;;  %v10149_v17 = vld [vmem:[#allocation7 + $0x1304] ss:$16 sps:$4 sm:$0xff]  }
 0x740   :  { %v11143_v39 = vadd.f32 %v5550_v0, %v5302_v23  ;;  %v5552_v45 = vpop.f32.mrb[38].mxu1  ;;  %7204 = vmatprep.mubr.bf16.mxu0 %v5566_v6  ;;  %7368 = vmatprep.mubr.bf16.mxu1 %v5566_v6  ;;  %v5512_v46 = vpop.f32.mrb[39].mxu0  ;;  %v7820_v29 = vmax.f32 %v7818_v41, %v7819_v37  ;;  %v10152_v18 = vld [vmem:[#allocation7 + $0x130c] ss:$16 sps:$4 sm:$0xff]   ;;  %v10147_v20 = vld [vmem:[#allocation7 + $0x1300] ss:$16 sps:$4 sm:$0xff]  }
 0x741   :  { %v5553_v48 = vpop.f32.mrb[39].mxu1  ;;  %7174 = vmatprep.subr.bf16.mxu0 %v10107_v31  ;;  %7338 = vmatprep.subr.bf16.mxu1 %v10110_v34  ;;  %v10150_v21 = vld [vmem:[#allocation7 + $0x1308] ss:$16 sps:$4 sm:$0xff]   ;;  %v10155_v22 = vld [vmem:[#allocation7 + $0x1324] ss:$16 sps:$4 sm:$0xff]  }
 0x742   :  { %v7821_v50 = vrot.slane %v7820_v29, 1  ;;  %v10158_v23 = vld [vmem:[#allocation7 + $0x132c] ss:$16 sps:$4 sm:$0xff]   ;;  %v10153_v25 = vld [vmem:[#allocation7 + $0x1320] ss:$16 sps:$4 sm:$0xff]  }
 0x743   :  { %7175 = vmatpush1.bf16.msra.mxu0 %v10105_v26  ;;  %7339 = vmatpush1.bf16.msra.mxu1 %v10108_v44  ;;  %v10156_v31 = vld [vmem:[#allocation7 + $0x1328] ss:$16 sps:$4 sm:$0xff]   ;;  %v10161_v6 = vld [vmem:[#allocation7 + $0x1344] ss:$16 sps:$4 sm:$0xff]   ;;  %v10164_v24 = vld [vmem:[#allocation7 + $0x134c] ss:$16 sps:$4 sm:$0xff]  }
 0x744   :  { %7176 = vmatprep.subr.bf16.mxu0 %v10113_v47  ;;  %7340 = vmatprep.subr.bf16.mxu1 %v10116_v53  ;;  %v7822_v5 = vmax.f32 %v7820_v29, %v7821_v50  ;;  %v10159_v26 = vld [vmem:[#allocation7 + $0x1340] ss:$16 sps:$4 sm:$0xff]   ;;  %v10162_v0 = vld [vmem:[#allocation7 + $0x1348] ss:$16 sps:$4 sm:$0xff]   ;;  %v10167_v28 = vld [vmem:[#allocation7 + $0x1364] ss:$16 sps:$4 sm:$0xff]  }
 0x745   :  { %v10170_v44 = vld [vmem:[#allocation7 + $0x136c] ss:$16 sps:$4 sm:$0xff]   ;;  %v10165_v37 = vld [vmem:[#allocation7 + $0x1360] ss:$16 sps:$4 sm:$0xff]   ;;  %v10168_v45 = vld [vmem:[#allocation7 + $0x1368] ss:$16 sps:$4 sm:$0xff]  }
 0x746   :  { %v7823_v55 = vsub.f32 %v11127_v62, %v7822_v5  ;;  %v10137_v62 = vld [vmem:[#allocation7 + $0x12c4] ss:$16 sps:$4 sm:$0xff]   ;;  %v10176_v47 = vld [vmem:[#allocation7 + $0x138c] ss:$16 sps:$4 sm:$0xff]   ;;  %v10171_v53 = vld [vmem:[#allocation7 + $0x1380] ss:$16 sps:$4 sm:$0xff]  }
 0x747   :  { %7177 = vmatpush1.bf16.msra.mxu0 %v10111_v49  ;;  %7341 = vmatpush1.bf16.msra.mxu1 %v10114_v9  ;;  %v10173_v46 = vld [vmem:[#allocation7 + $0x1384] ss:$16 sps:$4 sm:$0xff]   ;;  %v10174_v48 = vld [vmem:[#allocation7 + $0x1388] ss:$16 sps:$4 sm:$0xff]   ;;  %v10182_v49 = vld [vmem:[#allocation7 + $0x13ac] ss:$16 sps:$4 sm:$0xff]  }
 0x748   :  { %7178 = vmatprep.subr.bf16.mxu0 %v10119_v35  ;;  %7342 = vmatprep.subr.bf16.mxu1 %v10122_v51  ;;  %v7824_v30 = vmul.f32 1.442695, %v7823_v55  ;;  %v10179_v29 = vld [vmem:[#allocation7 + $0x13a4] ss:$16 sps:$4 sm:$0xff]   ;;  %v10177_v35 = vld [vmem:[#allocation7 + $0x13a0] ss:$16 sps:$4 sm:$0xff]  }
 0x749   :  { %v10180_v51 = vld [vmem:[#allocation7 + $0x13a8] ss:$16 sps:$4 sm:$0xff]   ;;  %v10185_v5 = vld [vmem:[#allocation7 + $0x13c4] ss:$16 sps:$4 sm:$0xff]  }
 0x74a   :  { %10419 = vpow2.f32 %v7824_v30  ;;  %v10186_v55 = vld [vmem:[#allocation7 + $0x13c8] ss:$16 sps:$4 sm:$0xff]   ;;  %v10189_v30 = vld [vmem:[#allocation7 + $0x13e0] ss:$16 sps:$4 sm:$0xff]  }
 0x74b   :  { %7179 = vmatpush1.bf16.msra.mxu0 %v10117_v27  ;;  %7343 = vmatpush1.bf16.msra.mxu1 %v10120_v54  ;;  %v10188_v27 = vld [vmem:[#allocation7 + $0x13cc] ss:$16 sps:$4 sm:$0xff]   ;;  %v10183_v54 = vld [vmem:[#allocation7 + $0x13c0] ss:$16 sps:$4 sm:$0xff]  }
 0x74c   :  { %7180 = vmatprep.subr.bf16.mxu0 %v10125_v56  ;;  %7344 = vmatprep.subr.bf16.mxu1 %v10128_v57  ;;  %v10191_v56 = vld [vmem:[#allocation7 + $0x13e4] ss:$16 sps:$4 sm:$0xff]   ;;  %v10194_v57 = vld [vmem:[#allocation7 + $0x13ec] ss:$16 sps:$4 sm:$0xff]  }
 0x74f   :  { %7181 = vmatpush1.bf16.msra.mxu0 %v10123_v58  ;;  %7345 = vmatpush1.bf16.msra.mxu1 %v10126_v59  ;;  %v10192_v58 = vld [vmem:[#allocation7 + $0x13e8] ss:$16 sps:$4 sm:$0xff]   ;;  %v5557_v59 = vmax.f32 %v11129_v1, 0.0  ;;  %v10201_v1 = vld [vmem:[#allocation7 + $0x1420] ss:$16 sps:$4 sm:$0xff]  }
 0x750   :  { %7182 = vmatprep.subr.bf16.mxu0 %v10131_v60  ;;  %7346 = vmatprep.subr.bf16.mxu1 %v10134_v61  ;;  %v10197_v60 = vld [vmem:[#allocation7 + $0x1404] ss:$16 sps:$4 sm:$0xff]   ;;  %v10200_v61 = vld [vmem:[#allocation7 + $0x140c] ss:$16 sps:$4 sm:$0xff]  }
 0x753   :  { %7183 = vmatpush1.bf16.msra.mxu0 %v10129_v2  ;;  %7347 = vmatpush1.bf16.msra.mxu1 %v10132_v3  ;;  %v5560_v2 = vmax.f32 %v11141_v8, 0.0  ;;  %v10195_v3 = vld [vmem:[#allocation7 + $0x1400] ss:$16 sps:$4 sm:$0xff]   ;;  %v10212_v8 = vld [vmem:[#allocation7 + $0x144c] ss:$16 sps:$4 sm:$0xff]  }
 0x754   :  { %7184 = vmatprep.subr.bf16.mxu0 %v10137_v62  ;;  %7348 = vmatprep.subr.bf16.mxu1 %v10140_v14  ;;  %v10420_v11 = vpop.eup %10419  ;;  %v5565_v62 = vpack.c.bf16 %v5557_v59, %v5557_v59  ;;  %v10198_v14 = vld [vmem:[#allocation7 + $0x1408] ss:$16 sps:$4 sm:$0xff]   ;;  %v10275_v59 = vld [vmem:[#allocation7 + $0x15a4] ss:$16 sps:$4 sm:$0xff]  }
 0x755   :  { %v7826_v12 = vsel %vm7815_vm1, %v10420_v11, 0.0 }
 0x756   :  { %v7827_v16 = vrot.slane %v7826_v12, 4 }
 0x757   :  { %7185 = vmatpush1.bf16.msra.mxu0 %v10135_v4  ;;  %7349 = vmatpush1.bf16.msra.mxu1 %v10138_v7  ;;  %v5568_v4 = vpack.c.bf16 %v5560_v2, %v5560_v2  ;;  %v10203_v7 = vld [vmem:[#allocation7 + $0x1424] ss:$16 sps:$4 sm:$0xff]   ;;  %v10276_v2 = vld [vmem:[#allocation7 + $0x15a8] ss:$16 sps:$4 sm:$0xff]  }
 0x758   :  { %7186 = vmatprep.subr.bf16.mxu0 %v10143_v10  ;;  %7350 = vmatprep.subr.bf16.mxu1 %v10146_v38  ;;  %v7828_v19 = vadd.f32 %v7827_v16, %v7826_v12  ;;  %v10206_v10 = vld [vmem:[#allocation7 + $0x142c] ss:$16 sps:$4 sm:$0xff]   ;;  %v10204_v38 = vld [vmem:[#allocation7 + $0x1428] ss:$16 sps:$4 sm:$0xff]   ;;  %v10207_v12 = vld [vmem:[#allocation7 + $0x1440] ss:$16 sps:$4 sm:$0xff]  }
 0x759   :  { %v10218_v16 = vld [vmem:[#allocation7 + $0x146c] ss:$16 sps:$4 sm:$0xff]  }
 0x75a   :  { %v7829_v52 = vrot.slane %v7828_v19, 2 }
 0x75b   :  { %7187 = vmatpush1.bf16.msra.mxu0 %v10141_v13  ;;  %7351 = vmatpush1.bf16.msra.mxu1 %v10144_v15  ;;  %v10210_v13 = vld [vmem:[#allocation7 + $0x1448] ss:$16 sps:$4 sm:$0xff]   ;;  %v10215_v15 = vld [vmem:[#allocation7 + $0x1464] ss:$16 sps:$4 sm:$0xff]  }
 0x75c   :  { %7188 = vmatprep.subr.bf16.mxu0 %v10149_v17  ;;  %7352 = vmatprep.subr.bf16.mxu1 %v10152_v18  ;;  %v7830_v41 = vadd.f32 %v7829_v52, %v7828_v19  ;;  %v10213_v17 = vld [vmem:[#allocation7 + $0x1460] ss:$16 sps:$4 sm:$0xff]   ;;  %v10216_v18 = vld [vmem:[#allocation7 + $0x1468] ss:$16 sps:$4 sm:$0xff]   ;;  %v10221_v19 = vld [vmem:[#allocation7 + $0x1484] ss:$16 sps:$4 sm:$0xff]  }
 0x75d   :  { %v10222_v52 = vld [vmem:[#allocation7 + $0x1488] ss:$16 sps:$4 sm:$0xff]  }
 0x75e   :  { %v7831_v34 = vrot.slane %v7830_v41, 1 }
 0x75f   :  { %7189 = vmatpush1.bf16.msra.mxu0 %v10147_v20  ;;  %7353 = vmatpush1.bf16.msra.mxu1 %v10150_v21  ;;  %v10224_v20 = vld [vmem:[#allocation7 + $0x148c] ss:$16 sps:$4 sm:$0xff]   ;;  %v10219_v21 = vld [vmem:[#allocation7 + $0x1480] ss:$16 sps:$4 sm:$0xff]  }
 0x760   :  { %7190 = vmatprep.subr.bf16.mxu0 %v10155_v22  ;;  %7354 = vmatprep.subr.bf16.mxu1 %v10158_v23  ;;  %v7832_v33 = vadd.f32 %v7831_v34, %v7830_v41  ;;  %v10227_v22 = vld [vmem:[#allocation7 + $0x14a4] ss:$16 sps:$4 sm:$0xff]   ;;  %v10230_v23 = vld [vmem:[#allocation7 + $0x14ac] ss:$16 sps:$4 sm:$0xff]   ;;  %v10225_v41 = vld [vmem:[#allocation7 + $0x14a0] ss:$16 sps:$4 sm:$0xff]  }
 0x761   :  { %v10236_v34 = vld [vmem:[#allocation7 + $0x14cc] ss:$16 sps:$4 sm:$0xff]  }
 0x762   :  { %10421 = vrcp.f32 %v7832_v33  ;;  %v10239_v33 = vld [vmem:[#allocation7 + $0x14e4] ss:$16 sps:$4 sm:$0xff]  }
 0x763   :  { %7191 = vmatpush1.bf16.msra.mxu0 %v10153_v25  ;;  %7355 = vmatpush1.bf16.msra.mxu1 %v10156_v31  ;;  %v10228_v25 = vld [vmem:[#allocation7 + $0x14a8] ss:$16 sps:$4 sm:$0xff]   ;;  %v10233_v31 = vld [vmem:[#allocation7 + $0x14c4] ss:$16 sps:$4 sm:$0xff]  }
 0x764   :  { %7192 = vmatprep.subr.bf16.mxu0 %v10161_v6  ;;  %7356 = vmatprep.subr.bf16.mxu1 %v10164_v24  ;;  %v10231_v6 = vld [vmem:[#allocation7 + $0x14c0] ss:$16 sps:$4 sm:$0xff]   ;;  %v10234_v24 = vld [vmem:[#allocation7 + $0x14c8] ss:$16 sps:$4 sm:$0xff]  }
 0x767   :  { %7193 = vmatpush1.bf16.msra.mxu0 %v10159_v26  ;;  %7357 = vmatpush1.bf16.msra.mxu1 %v10162_v0  ;;  %v10242_v26 = vld [vmem:[#allocation7 + $0x14ec] ss:$16 sps:$4 sm:$0xff]   ;;  %v10237_v0 = vld [vmem:[#allocation7 + $0x14e0] ss:$16 sps:$4 sm:$0xff]  }
 0x768   :  { %7194 = vmatprep.subr.bf16.mxu0 %v10167_v28  ;;  %7358 = vmatprep.subr.bf16.mxu1 %v10170_v44  ;;  %v10240_v28 = vld [vmem:[#allocation7 + $0x14e8] ss:$16 sps:$4 sm:$0xff]   ;;  %v10245_v44 = vld [vmem:[#allocation7 + $0x1504] ss:$16 sps:$4 sm:$0xff]  }
 0x76b   :  { %7195 = vmatpush1.bf16.msra.mxu0 %v10165_v37  ;;  %7359 = vmatpush1.bf16.msra.mxu1 %v10168_v45  ;;  %v10248_v37 = vld [vmem:[#allocation7 + $0x150c] ss:$16 sps:$4 sm:$0xff]   ;;  %v10243_v45 = vld [vmem:[#allocation7 + $0x1500] ss:$16 sps:$4 sm:$0xff]  }
 0x76c   :  { %7196 = vmatprep.subr.bf16.mxu0 %v10173_v46  ;;  %7360 = vmatprep.subr.bf16.mxu1 %v10176_v47  ;;  %v10422_v9 = vpop.eup %10421  ;;  %v10246_v46 = vld [vmem:[#allocation7 + $0x1508] ss:$16 sps:$4 sm:$0xff]   ;;  %v10251_v47 = vld [vmem:[#allocation7 + $0x1524] ss:$16 sps:$4 sm:$0xff]  }
 0x76d   :  { %v11147_v50 = vmul.f32 %v10422_v9, %v10420_v11  ;;  %v10209_v11 = vld [vmem:[#allocation7 + $0x1444] ss:$16 sps:$4 sm:$0xff]   ;;  %v10260_v9 = vld [vmem:[#allocation7 + $0x154c] ss:$16 sps:$4 sm:$0xff]  }
 0x76f   :  { %7197 = vmatpush1.bf16.msra.mxu0 %v10171_v53  ;;  %7361 = vmatpush1.bf16.msra.mxu1 %v10174_v48  ;;  %7847 = vst.msk [vmem:[#allocation15] sm:$0xff] %vm7815_vm1, %v11147_v50  ;;  %v10254_v53 = vld [vmem:[#allocation7 + $0x152c] ss:$16 sps:$4 sm:$0xff]   ;;  %v10249_v48 = vld [vmem:[#allocation7 + $0x1520] ss:$16 sps:$4 sm:$0xff]  }
 0x770   :  { %7198 = vmatprep.subr.bf16.mxu0 %v10179_v29  ;;  %7362 = vmatprep.subr.bf16.mxu1 %v10182_v49  ;;  %v10252_v29 = vld [vmem:[#allocation7 + $0x1528] ss:$16 sps:$4 sm:$0xff]   ;;  %v10257_v49 = vld [vmem:[#allocation7 + $0x1544] ss:$16 sps:$4 sm:$0xff]  }
 0x773   :  { %7199 = vmatpush1.bf16.msra.mxu0 %v10177_v35  ;;  %7363 = vmatpush1.bf16.msra.mxu1 %v10180_v51  ;;  %v10255_v35 = vld [vmem:[#allocation7 + $0x1540] ss:$16 sps:$4 sm:$0xff]   ;;  %v10258_v51 = vld [vmem:[#allocation7 + $0x1548] ss:$16 sps:$4 sm:$0xff]  }
 0x774   :  { %7200 = vmatprep.subr.bf16.mxu0 %v10185_v5  ;;  %7364 = vmatprep.subr.bf16.mxu1 %v10188_v27  ;;  %v10263_v5 = vld [vmem:[#allocation7 + $0x1564] ss:$16 sps:$4 sm:$0xff]   ;;  %v10266_v27 = vld [vmem:[#allocation7 + $0x156c] ss:$16 sps:$4 sm:$0xff]  }
 0x777   :  { %7201 = vmatpush1.bf16.msra.mxu0 %v10183_v54  ;;  %7365 = vmatpush1.bf16.msra.mxu1 %v10186_v55  ;;  %v10261_v54 = vld [vmem:[#allocation7 + $0x1560] ss:$16 sps:$4 sm:$0xff]   ;;  %v10264_v55 = vld [vmem:[#allocation7 + $0x1568] ss:$16 sps:$4 sm:$0xff]  }
 0x778   :  { %7202 = vmatprep.subr.bf16.mxu0 %v10191_v56  ;;  %7366 = vmatprep.subr.bf16.mxu1 %v10194_v57  ;;  %v10269_v56 = vld [vmem:[#allocation7 + $0x1584] ss:$16 sps:$4 sm:$0xff]   ;;  %v10272_v57 = vld [vmem:[#allocation7 + $0x158c] ss:$16 sps:$4 sm:$0xff]  }
 0x77b   :  { %7203 = vmatpush1.bf16.msra.mxu0 %v10189_v30  ;;  %7367 = vmatpush1.bf16.msra.mxu1 %v10192_v58  ;;  %v10267_v30 = vld [vmem:[#allocation7 + $0x1580] ss:$16 sps:$4 sm:$0xff]   ;;  %v10270_v58 = vld [vmem:[#allocation7 + $0x1588] ss:$16 sps:$4 sm:$0xff]  }
 0x77c   :  { %7213 = vmatprep.subr.bf16.mxu0 %v10197_v60  ;;  %7377 = vmatprep.subr.bf16.mxu1 %v10200_v61  ;;  %v10278_v60 = vld [vmem:[#allocation7 + $0x15ac] ss:$16 sps:$4 sm:$0xff]   ;;  %v10273_v61 = vld [vmem:[#allocation7 + $0x15a0] ss:$16 sps:$4 sm:$0xff]  }
 0x77e   :  { %7205 = vmatmul.mubr.bf16.vlgmr.msra.gmra.mrb[40].mxu0 %v5565_v62  ;;  %7369 = vmatmul.mubr.bf16.vlgmr.msra.gmra.mrb[40].mxu1 %v5565_v62  ;;  %v10284_v62 = vld [vmem:[#allocation7 + $0x15cc] ss:$16 sps:$4 sm:$0xff]  }
 0x77f   :  { %7214 = vmatpush1.bf16.msra.mxu0 %v10195_v3  ;;  %7245 = vmatprep.mubr.bf16.mxu0 %v5568_v4  ;;  %v10281_v3 = vld [vmem:[#allocation7 + $0x15c4] ss:$16 sps:$4 sm:$0xff]  }
 0x780   :  { %7378 = vmatpush1.bf16.msra.mxu1 %v10198_v14  ;;  %7409 = vmatprep.mubr.bf16.mxu1 %v5568_v4  ;;  %v10279_v14 = vld [vmem:[#allocation7 + $0x15c0] ss:$16 sps:$4 sm:$0xff]   ;;  %v10282_v4 = vld [vmem:[#allocation7 + $0x15c8] ss:$16 sps:$4 sm:$0xff]  }
 0x781   :  { %7215 = vmatprep.subr.bf16.mxu0 %v10203_v7  ;;  %7379 = vmatprep.subr.bf16.mxu1 %v10206_v10  ;;  %v10287_v7 = vld [vmem:[#allocation7 + $0x15e4] ss:$16 sps:$4 sm:$0xff]   ;;  %v10290_v10 = vld [vmem:[#allocation7 + $0x15ec] ss:$16 sps:$4 sm:$0xff]  }
 0x783   :  { %7216 = vmatpush1.bf16.msra.mxu0 %v10201_v1  ;;  %v10285_v1 = vld [vmem:[#allocation7 + $0x15e0] ss:$16 sps:$4 sm:$0xff]  }
 0x784   :  { %7380 = vmatpush1.bf16.msra.mxu1 %v10204_v38  ;;  %7217 = vmatprep.subr.bf16.mxu0 %v10209_v11  ;;  %v5559_v38 = vmax.f32 %v11137_v32, 0.0  ;;  %v10288_v11 = vld [vmem:[#allocation7 + $0x15e8] ss:$16 sps:$4 sm:$0xff]   ;;  %v10297_v32 = vld [vmem:[#allocation7 + $0x1620] ss:$16 sps:$4 sm:$0xff]  }
 0x785   :  { %7381 = vmatprep.subr.bf16.mxu1 %v10212_v8  ;;  %v10293_v8 = vld [vmem:[#allocation7 + $0x1604] ss:$16 sps:$4 sm:$0xff]  }
 0x787   :  { %7218 = vmatpush1.bf16.msra.mxu0 %v10207_v12  ;;  %v10296_v12 = vld [vmem:[#allocation7 + $0x160c] ss:$16 sps:$4 sm:$0xff]  }
 0x788   :  { %7382 = vmatpush1.bf16.msra.mxu1 %v10210_v13  ;;  %7219 = vmatprep.subr.bf16.mxu0 %v10215_v15  ;;  %v5562_v13 = vmax.f32 %v11143_v39, 0.0  ;;  %v10291_v15 = vld [vmem:[#allocation7 + $0x1600] ss:$16 sps:$4 sm:$0xff]   ;;  %v10308_v39 = vld [vmem:[#allocation7 + $0x164c] ss:$16 sps:$4 sm:$0xff]  }
 0x789   :  { %7383 = vmatprep.subr.bf16.mxu1 %v10218_v16  ;;  %v5567_v16 = vpack.c.bf16 %v5559_v38, %v5559_v38  ;;  %v10374_v38 = vld [vmem:[#allocation7 + $0x17ac] ss:$16 sps:$4 sm:$0xff]  }
 0x78b   :  { %7220 = vmatpush1.bf16.msra.mxu0 %v10213_v17  ;;  %v10294_v17 = vld [vmem:[#allocation7 + $0x1608] ss:$16 sps:$4 sm:$0xff]  }
 0x78c   :  { %7384 = vmatpush1.bf16.msra.mxu1 %v10216_v18  ;;  %7221 = vmatprep.subr.bf16.mxu0 %v10221_v19  ;;  %v10299_v18 = vld [vmem:[#allocation7 + $0x1624] ss:$16 sps:$4 sm:$0xff]   ;;  %v5570_v19 = vpack.c.bf16 %v5562_v13, %v5562_v13  ;;  %v10380_v13 = vld [vmem:[#allocation7 + $0x17cc] ss:$16 sps:$4 sm:$0xff]  }
 0x78d   :  { %7385 = vmatprep.subr.bf16.mxu1 %v10224_v20  ;;  %v10302_v20 = vld [vmem:[#allocation7 + $0x162c] ss:$16 sps:$4 sm:$0xff]  }
 0x78f   :  { %7222 = vmatpush1.bf16.msra.mxu0 %v10219_v21  ;;  %v10300_v21 = vld [vmem:[#allocation7 + $0x1628] ss:$16 sps:$4 sm:$0xff]  }
 0x790   :  { %7386 = vmatpush1.bf16.msra.mxu1 %v10222_v52  ;;  %7223 = vmatprep.subr.bf16.mxu0 %v10227_v22  ;;  %v10305_v52 = vld [vmem:[#allocation7 + $0x1644] ss:$16 sps:$4 sm:$0xff]   ;;  %v10303_v22 = vld [vmem:[#allocation7 + $0x1640] ss:$16 sps:$4 sm:$0xff]  }
 0x791   :  { %7387 = vmatprep.subr.bf16.mxu1 %v10230_v23  ;;  %v10306_v23 = vld [vmem:[#allocation7 + $0x1648] ss:$16 sps:$4 sm:$0xff]  }
 0x793   :  { %7224 = vmatpush1.bf16.msra.mxu0 %v10225_v41  ;;  %v10311_v41 = vld [vmem:[#allocation7 + $0x1664] ss:$16 sps:$4 sm:$0xff]  }
 0x794   :  { %7388 = vmatpush1.bf16.msra.mxu1 %v10228_v25  ;;  %7225 = vmatprep.subr.bf16.mxu0 %v10233_v31  ;;  %v10314_v25 = vld [vmem:[#allocation7 + $0x166c] ss:$16 sps:$4 sm:$0xff]   ;;  %v10309_v31 = vld [vmem:[#allocation7 + $0x1660] ss:$16 sps:$4 sm:$0xff]  }
 0x795   :  { %7389 = vmatprep.subr.bf16.mxu1 %v10236_v34  ;;  %v10312_v34 = vld [vmem:[#allocation7 + $0x1668] ss:$16 sps:$4 sm:$0xff]  }
 0x797   :  { %7226 = vmatpush1.bf16.msra.mxu0 %v10231_v6  ;;  %v10317_v6 = vld [vmem:[#allocation7 + $0x1684] ss:$16 sps:$4 sm:$0xff]  }
 0x798   :  { %7390 = vmatpush1.bf16.msra.mxu1 %v10234_v24  ;;  %7227 = vmatprep.subr.bf16.mxu0 %v10239_v33  ;;  %v10320_v24 = vld [vmem:[#allocation7 + $0x168c] ss:$16 sps:$4 sm:$0xff]   ;;  %v10315_v33 = vld [vmem:[#allocation7 + $0x1680] ss:$16 sps:$4 sm:$0xff]  }
 0x799   :  { %7391 = vmatprep.subr.bf16.mxu1 %v10242_v26  ;;  %v10318_v26 = vld [vmem:[#allocation7 + $0x1688] ss:$16 sps:$4 sm:$0xff]  }
 0x79b   :  { %7228 = vmatpush1.bf16.msra.mxu0 %v10237_v0  ;;  %v10323_v0 = vld [vmem:[#allocation7 + $0x16a4] ss:$16 sps:$4 sm:$0xff]  }
 0x79c   :  { %7392 = vmatpush1.bf16.msra.mxu1 %v10240_v28  ;;  %7229 = vmatprep.subr.bf16.mxu0 %v10245_v44  ;;  %v10326_v28 = vld [vmem:[#allocation7 + $0x16ac] ss:$16 sps:$4 sm:$0xff]   ;;  %v10321_v44 = vld [vmem:[#allocation7 + $0x16a0] ss:$16 sps:$4 sm:$0xff]  }
 0x79d   :  { %7393 = vmatprep.subr.bf16.mxu1 %v10248_v37  ;;  %v10324_v37 = vld [vmem:[#allocation7 + $0x16a8] ss:$16 sps:$4 sm:$0xff]  }
 0x79f   :  { %7230 = vmatpush1.bf16.msra.mxu0 %v10243_v45  ;;  %v10329_v45 = vld [vmem:[#allocation7 + $0x16c4] ss:$16 sps:$4 sm:$0xff]  }
 0x7a0   :  { %7394 = vmatpush1.bf16.msra.mxu1 %v10246_v46  ;;  %7231 = vmatprep.subr.bf16.mxu0 %v10251_v47  ;;  %v10332_v46 = vld [vmem:[#allocation7 + $0x16cc] ss:$16 sps:$4 sm:$0xff]   ;;  %v10327_v47 = vld [vmem:[#allocation7 + $0x16c0] ss:$16 sps:$4 sm:$0xff]  }
 0x7a1   :  { %7395 = vmatprep.subr.bf16.mxu1 %v10254_v53  ;;  %v10330_v53 = vld [vmem:[#allocation7 + $0x16c8] ss:$16 sps:$4 sm:$0xff]  }
 0x7a3   :  { %7232 = vmatpush1.bf16.msra.mxu0 %v10249_v48  ;;  %v10335_v48 = vld [vmem:[#allocation7 + $0x16e4] ss:$16 sps:$4 sm:$0xff]  }
 0x7a4   :  { %7396 = vmatpush1.bf16.msra.mxu1 %v10252_v29  ;;  %7233 = vmatprep.subr.bf16.mxu0 %v10257_v49  ;;  %v10338_v29 = vld [vmem:[#allocation7 + $0x16ec] ss:$16 sps:$4 sm:$0xff]   ;;  %v10333_v49 = vld [vmem:[#allocation7 + $0x16e0] ss:$16 sps:$4 sm:$0xff]  }
 0x7a5   :  { %7397 = vmatprep.subr.bf16.mxu1 %v10260_v9  ;;  %v10336_v9 = vld [vmem:[#allocation7 + $0x16e8] ss:$16 sps:$4 sm:$0xff]  }
 0x7a7   :  { %7234 = vmatpush1.bf16.msra.mxu0 %v10255_v35  ;;  %v10341_v35 = vld [vmem:[#allocation7 + $0x1704] ss:$16 sps:$4 sm:$0xff]  }
 0x7a8   :  { %7398 = vmatpush1.bf16.msra.mxu1 %v10258_v51  ;;  %7235 = vmatprep.subr.bf16.mxu0 %v10263_v5  ;;  %v10344_v51 = vld [vmem:[#allocation7 + $0x170c] ss:$16 sps:$4 sm:$0xff]   ;;  %v10339_v5 = vld [vmem:[#allocation7 + $0x1700] ss:$16 sps:$4 sm:$0xff]  }
 0x7a9   :  { %7399 = vmatprep.subr.bf16.mxu1 %v10266_v27  ;;  %v10342_v27 = vld [vmem:[#allocation7 + $0x1708] ss:$16 sps:$4 sm:$0xff]  }
 0x7ab   :  { %7236 = vmatpush1.bf16.msra.mxu0 %v10261_v54  ;;  %v10347_v54 = vld [vmem:[#allocation7 + $0x1724] ss:$16 sps:$4 sm:$0xff]  }
 0x7ac   :  { %7400 = vmatpush1.bf16.msra.mxu1 %v10264_v55  ;;  %7237 = vmatprep.subr.bf16.mxu0 %v10269_v56  ;;  %v10350_v55 = vld [vmem:[#allocation7 + $0x172c] ss:$16 sps:$4 sm:$0xff]   ;;  %v10345_v56 = vld [vmem:[#allocation7 + $0x1720] ss:$16 sps:$4 sm:$0xff]  }
 0x7ad   :  { %7401 = vmatprep.subr.bf16.mxu1 %v10272_v57  ;;  %v10348_v57 = vld [vmem:[#allocation7 + $0x1728] ss:$16 sps:$4 sm:$0xff]  }
 0x7af   :  { %7238 = vmatpush1.bf16.msra.mxu0 %v10267_v30  ;;  %v10353_v30 = vld [vmem:[#allocation7 + $0x1744] ss:$16 sps:$4 sm:$0xff]  }
 0x7b0   :  { %7402 = vmatpush1.bf16.msra.mxu1 %v10270_v58  ;;  %7239 = vmatprep.subr.bf16.mxu0 %v10275_v59  ;;  %v10356_v58 = vld [vmem:[#allocation7 + $0x174c] ss:$16 sps:$4 sm:$0xff]   ;;  %v10351_v59 = vld [vmem:[#allocation7 + $0x1740] ss:$16 sps:$4 sm:$0xff]  }
 0x7b1   :  { %7403 = vmatprep.subr.bf16.mxu1 %v10278_v60  ;;  %v10354_v60 = vld [vmem:[#allocation7 + $0x1748] ss:$16 sps:$4 sm:$0xff]  }
 0x7b3   :  { %7240 = vmatpush1.bf16.msra.mxu0 %v10273_v61  ;;  %v10359_v61 = vld [vmem:[#allocation7 + $0x1764] ss:$16 sps:$4 sm:$0xff]  }
 0x7b4   :  { %7404 = vmatpush1.bf16.msra.mxu1 %v10276_v2  ;;  %7241 = vmatprep.subr.bf16.mxu0 %v10281_v3  ;;  %v10362_v2 = vld [vmem:[#allocation7 + $0x176c] ss:$16 sps:$4 sm:$0xff]   ;;  %v10357_v3 = vld [vmem:[#allocation7 + $0x1760] ss:$16 sps:$4 sm:$0xff]  }
 0x7b5   :  { %7405 = vmatprep.subr.bf16.mxu1 %v10284_v62  ;;  %v10360_v62 = vld [vmem:[#allocation7 + $0x1768] ss:$16 sps:$4 sm:$0xff]  }
 0x7b7   :  { %7242 = vmatpush1.bf16.msra.mxu0 %v10279_v14  ;;  %v10365_v14 = vld [vmem:[#allocation7 + $0x1784] ss:$16 sps:$4 sm:$0xff]  }
 0x7b8   :  { %7406 = vmatpush1.bf16.msra.mxu1 %v10282_v4  ;;  %7243 = vmatprep.subr.bf16.mxu0 %v10287_v7  ;;  %v10368_v4 = vld [vmem:[#allocation7 + $0x178c] ss:$16 sps:$4 sm:$0xff]   ;;  %v10363_v7 = vld [vmem:[#allocation7 + $0x1780] ss:$16 sps:$4 sm:$0xff]  }
 0x7b9   :  { %7407 = vmatprep.subr.bf16.mxu1 %v10290_v10  ;;  %v10366_v10 = vld [vmem:[#allocation7 + $0x1788] ss:$16 sps:$4 sm:$0xff]  }
 0x7bb   :  { %7244 = vmatpush1.bf16.msra.mxu0 %v10285_v1  ;;  %v10371_v1 = vld [vmem:[#allocation7 + $0x17a4] ss:$16 sps:$4 sm:$0xff]  }
 0x7bc   :  { %7408 = vmatpush1.bf16.msra.mxu1 %v10288_v11  ;;  %7254 = vmatprep.subr.bf16.mxu0 %v10293_v8  ;;  %v10369_v11 = vld [vmem:[#allocation7 + $0x17a0] ss:$16 sps:$4 sm:$0xff]   ;;  %v10372_v8 = vld [vmem:[#allocation7 + $0x17a8] ss:$16 sps:$4 sm:$0xff]  }
 0x7bd   :  { %7418 = vmatprep.subr.bf16.mxu1 %v10296_v12  ;;  %v10377_v12 = vld [vmem:[#allocation7 + $0x17c4] ss:$16 sps:$4 sm:$0xff]  }
 0x7be   :  { %7246 = vmatmul.mubr.bf16.vlgmr.msra.gmra.mrb[40].mxu0 %v5567_v16 }
 0x7bf   :  { %7410 = vmatmul.mubr.bf16.vlgmr.msra.gmra.mrb[40].mxu1 %v5567_v16  ;;  %7255 = vmatpush1.bf16.msra.mxu0 %v10291_v15  ;;  %v10375_v15 = vld [vmem:[#allocation7 + $0x17c0] ss:$16 sps:$4 sm:$0xff]   ;;  %v10378_v16 = vld [vmem:[#allocation7 + $0x17c8] ss:$16 sps:$4 sm:$0xff]  }
 0x7c0   :  { %7286 = vmatprep.mubr.bf16.mxu0 %v5570_v19  ;;  %7419 = vmatpush1.bf16.msra.mxu1 %v10294_v17  ;;  %v10383_v17 = vld [vmem:[#allocation7 + $0x17e4] ss:$16 sps:$4 sm:$0xff]  }
 0x7c1   :  { %7450 = vmatprep.mubr.bf16.mxu1 %v5570_v19  ;;  %7256 = vmatprep.subr.bf16.mxu0 %v10299_v18  ;;  %v10386_v18 = vld [vmem:[#allocation7 + $0x17ec] ss:$16 sps:$4 sm:$0xff]   ;;  %v10381_v19 = vld [vmem:[#allocation7 + $0x17e0] ss:$16 sps:$4 sm:$0xff]  }
 0x7c2   :  { %7420 = vmatprep.subr.bf16.mxu1 %v10302_v20  ;;  %v5561_v20 = vmax.f32 %v11139_v36, 0.0  ;;  %v10390_v36 = vld [vmem:[%s11285_s3 + $0x280] sm:$0xff]  }
 0x7c3   :  { %7257 = vmatpush1.bf16.msra.mxu0 %v10297_v32  ;;  %v10384_v32 = vld [vmem:[#allocation7 + $0x17e8] ss:$16 sps:$4 sm:$0xff]  }
 0x7c4   :  { %7421 = vmatpush1.bf16.msra.mxu1 %v10300_v21  ;;  %7258 = vmatprep.subr.bf16.mxu0 %v10305_v52  ;;  %v10387_v21 = vld [vmem:[%s11285_s3 + $0x240] sm:$0xff]  }
 0x7c5   :  { %7422 = vmatprep.subr.bf16.mxu1 %v10308_v39  ;;  %v10388_v52 = vld [vmem:[%s11285_s3 + $0x2c0] sm:$0xff]  }
 0x7c6   :  { %v10389_v39 = vld [vmem:[%s11285_s3 + $0x200] sm:$0xff]  }
 0x7c7   :  { %7259 = vmatpush1.bf16.msra.mxu0 %v10303_v22  ;;  %v5569_v22 = vpack.c.bf16 %v5561_v20, %v5561_v20 }
 0x7c8   :  { %7423 = vmatpush1.bf16.msra.mxu1 %v10306_v23  ;;  %7260 = vmatprep.subr.bf16.mxu0 %v10311_v41  ;;  %v10391_v23 = vld [vmem:[%s11285_s3 + $0x248] sm:$0xff]  }
 0x7c9   :  { %7424 = vmatprep.subr.bf16.mxu1 %v10314_v25  ;;  %v10392_v41 = vld [vmem:[%s11285_s3 + $0x2c8] sm:$0xff]  }
 0x7ca   :  { %v10393_v25 = vld [vmem:[%s11285_s3 + $0x208] sm:$0xff]  }
 0x7cb   :  { %7261 = vmatpush1.bf16.msra.mxu0 %v10309_v31  ;;  %v10394_v31 = vld [vmem:[%s11285_s3 + $0x288] sm:$0xff]  }
 0x7cc   :  { %7425 = vmatpush1.bf16.msra.mxu1 %v10312_v34  ;;  %7262 = vmatprep.subr.bf16.mxu0 %v10317_v6  ;;  %v10395_v34 = vld [vmem:[%s11285_s3 + $0x250] sm:$0xff]  }
 0x7cd   :  { %7426 = vmatprep.subr.bf16.mxu1 %v10320_v24  ;;  %v10396_v6 = vld [vmem:[%s11285_s3 + $0x2d0] sm:$0xff]  }
 0x7ce   :  { %v10397_v24 = vld [vmem:[%s11285_s3 + $0x210] sm:$0xff]  }
 0x7cf   :  { %7263 = vmatpush1.bf16.msra.mxu0 %v10315_v33  ;;  %v10398_v33 = vld [vmem:[%s11285_s3 + $0x290] sm:$0xff]  }
 0x7d0   :  { %7427 = vmatpush1.bf16.msra.mxu1 %v10318_v26  ;;  %7264 = vmatprep.subr.bf16.mxu0 %v10323_v0  ;;  %v10399_v26 = vld [vmem:[%s11285_s3 + $0x258] sm:$0xff]  }
 0x7d1   :  { %7428 = vmatprep.subr.bf16.mxu1 %v10326_v28  ;;  %v10400_v0 = vld [vmem:[%s11285_s3 + $0x2d8] sm:$0xff]  }
 0x7d2   :  { %v10401_v28 = vld [vmem:[%s11285_s3 + $0x218] sm:$0xff]  }
 0x7d3   :  { %7265 = vmatpush1.bf16.msra.mxu0 %v10321_v44  ;;  %v10402_v44 = vld [vmem:[%s11285_s3 + $0x298] sm:$0xff]  }
 0x7d4   :  { %7429 = vmatpush1.bf16.msra.mxu1 %v10324_v37  ;;  %7266 = vmatprep.subr.bf16.mxu0 %v10329_v45  ;;  %v10403_v37 = vld [vmem:[%s11285_s3 + $0x260] sm:$0xff]  }
 0x7d5   :  { %7430 = vmatprep.subr.bf16.mxu1 %v10332_v46  ;;  %v10404_v45 = vld [vmem:[%s11285_s3 + $0x2e0] sm:$0xff]  }
 0x7d6   :  { %v10405_v46 = vld [vmem:[%s11285_s3 + $0x220] sm:$0xff]  }
 0x7d7   :  { %7267 = vmatpush1.bf16.msra.mxu0 %v10327_v47  ;;  %v10406_v47 = vld [vmem:[%s11285_s3 + $0x2a0] sm:$0xff]  }
 0x7d8   :  { %7431 = vmatpush1.bf16.msra.mxu1 %v10330_v53  ;;  %7268 = vmatprep.subr.bf16.mxu0 %v10335_v48  ;;  %v10407_v53 = vld [vmem:[%s11285_s3 + $0x268] sm:$0xff]  }
 0x7d9   :  { %7432 = vmatprep.subr.bf16.mxu1 %v10338_v29  ;;  %v10408_v48 = vld [vmem:[%s11285_s3 + $0x2e8] sm:$0xff]  }
 0x7da   :  { %v10409_v29 = vld [vmem:[%s11285_s3 + $0x228] sm:$0xff]  }
 0x7db   :  { %7269 = vmatpush1.bf16.msra.mxu0 %v10333_v49  ;;  %v10410_v49 = vld [vmem:[%s11285_s3 + $0x2a8] sm:$0xff]  }
 0x7dc   :  { %7433 = vmatpush1.bf16.msra.mxu1 %v10336_v9  ;;  %7270 = vmatprep.subr.bf16.mxu0 %v10341_v35  ;;  %v10411_v9 = vld [vmem:[%s11285_s3 + $0x270] sm:$0xff]  }
 0x7dd   :  { %7434 = vmatprep.subr.bf16.mxu1 %v10344_v51  ;;  %v10412_v35 = vld [vmem:[%s11285_s3 + $0x2f0] sm:$0xff]  }
 0x7de   :  { %v10413_v51 = vld [vmem:[%s11285_s3 + $0x230] sm:$0xff]  }
 0x7df   :  { %7271 = vmatpush1.bf16.msra.mxu0 %v10339_v5  ;;  %v10414_v5 = vld [vmem:[%s11285_s3 + $0x2b0] sm:$0xff]  }
 0x7e0   :  { %7435 = vmatpush1.bf16.msra.mxu1 %v10342_v27  ;;  %7272 = vmatprep.subr.bf16.mxu0 %v10347_v54  ;;  %v10415_v27 = vld [vmem:[%s11285_s3 + $0x278] sm:$0xff]  }
 0x7e1   :  { %7436 = vmatprep.subr.bf16.mxu1 %v10350_v55  ;;  %v10416_v54 = vld [vmem:[%s11285_s3 + $0x2f8] sm:$0xff]  }
 0x7e2   :  { %v10417_v55 = vld [vmem:[%s11285_s3 + $0x238] sm:$0xff]  }
 0x7e3   :  { %7273 = vmatpush1.bf16.msra.mxu0 %v10345_v56  ;;  %v10418_v56 = vld [vmem:[%s11285_s3 + $0x2b8] sm:$0xff]   ;;  %s10655_s3 = smov [#allocation15]  }
 0x7e4   :  { %7437 = vmatpush1.bf16.msra.mxu1 %v10348_v57  ;;  %7274 = vmatprep.subr.bf16.mxu0 %v10353_v30  ;;  %v5829_v57 = vld [vmem:[#allocation10 + $0x8] sm:$0xf]  ;;  %s7864_s27 = sshll.u32 %s10655_s3, 4  ;;  %s7865_s27 = int_to_ptr.vmem [resolvable:$true] %s7864_s27 }
 0x7e5   :  { %7438 = vmatprep.subr.bf16.mxu1 %v10356_v58  ;;  %v5834_v30 = vrot.slane %v5829_v57, %v10806_v40  ;;  %v5842_v58 = vrot.slane %v5829_v57, %v10833_v63  ;;  %s10582_s0 = scalar_lea.vmem %s7865_s27, 128  ;;  %p10587_p1 = scmp.lt.s32.totalorder %s7865_s27, %s7865_s27 }
 0x7e6   :  { %p10583_p0 = scmp.ne.s32.totalorder %s7865_s27, %s10582_s0  ;;  %p10588_p2 = scmp.lt.s32.totalorder %s10582_s0, %s10582_s0 }
 0x7e7   :  { %7275 = vmatpush1.bf16.msra.mxu0 %v10351_v59  ;;  %v5838_v59 = vrot.slane %v5829_v57, %v10811_v42 }
 0x7e8   :  { %7439 = vmatpush1.bf16.msra.mxu1 %v10354_v60  ;;  %7276 = vmatprep.subr.bf16.mxu0 %v10359_v61  ;;  %v5846_v60 = vrot.slane %v5829_v57, %v10814_v43  ;;  %p10589_p3 = por %p10588_p2, %p10587_p1 }
 0x7e9   :  { %7440 = vmatprep.subr.bf16.mxu1 %v10362_v2 }
 0x7ea   :  { %p10590_p4 = pnand %p10589_p3, %p10583_p0 }
 0x7eb   :  { %7277 = vmatpush1.bf16.msra.mxu0 %v10357_v3 }
 0x7ec   :  { %7441 = vmatpush1.bf16.msra.mxu1 %v10360_v62  ;;  %7278 = vmatprep.subr.bf16.mxu0 %v10365_v14 }
 0x7ed   :  { %7442 = vmatprep.subr.bf16.mxu1 %v10368_v4 }
 0x7ef   :  { %7279 = vmatpush1.bf16.msra.mxu0 %v10363_v7 }
 0x7f0   :  { %7443 = vmatpush1.bf16.msra.mxu1 %v10366_v10  ;;  %7280 = vmatprep.subr.bf16.mxu0 %v10371_v1 }
 0x7f1   :  { %7444 = vmatprep.subr.bf16.mxu1 %v10374_v38 }
 0x7f3   :  { %7281 = vmatpush1.bf16.msra.mxu0 %v10369_v11 }
 0x7f4   :  { %7445 = vmatpush1.bf16.msra.mxu1 %v10372_v8  ;;  %7282 = vmatprep.subr.bf16.mxu0 %v10377_v12 }
 0x7f5   :  { %7446 = vmatprep.subr.bf16.mxu1 %v10380_v13 }
 0x7f7   :  { %7283 = vmatpush1.bf16.msra.mxu0 %v10375_v15 }
 0x7f8   :  { %7447 = vmatpush1.bf16.msra.mxu1 %v10378_v16  ;;  %7284 = vmatprep.subr.bf16.mxu0 %v10383_v17 }
 0x7f9   :  { %7448 = vmatprep.subr.bf16.mxu1 %v10386_v18 }
 0x7fb   :  { %7285 = vmatpush1.bf16.msra.mxu0 %v10381_v19  ;;  %v8902_v19 = vld [vmem:[#allocation11 + $0x2] ss:$0 sm:$0xff] }
 0x7fc   :  { %7449 = vmatpush1.bf16.msra.mxu1 %v10384_v32  ;;  %9023 = vmatprep.subr.bf16.mxu0 %v10387_v21 }
 0x7fd   :  { %9045 = vmatprep.subr.bf16.mxu1 %v10388_v52 }
 0x7fe   :  { %7287 = vmatmul.mubr.bf16.vlgmr.msra.gmra.mrb[40].mxu0 %v5569_v22 }
 0x7ff   :  { %7451 = vmatmul.mubr.bf16.vlgmr.msra.gmra.mrb[40].mxu1 %v5569_v22  ;;  %9024 = vmatpush3.bf16.msra.mxu0 %v10389_v39 }
 0x800   :  { %9046 = vmatpush3.bf16.msra.mxu1 %v10390_v36  ;;  %9025 = vmatprep.subr.bf16.mxu0 %v10391_v23 }
 0x801   :  { %9047 = vmatprep.subr.bf16.mxu1 %v10392_v41 }
 0x803   :  { %9026 = vmatpush3.bf16.msra.mxu0 %v10393_v25 }
 0x804   :  { %9048 = vmatpush3.bf16.msra.mxu1 %v10394_v31  ;;  %9027 = vmatprep.subr.bf16.mxu0 %v10395_v34 }
 0x805   :  { %9049 = vmatprep.subr.bf16.mxu1 %v10396_v6 }
 0x807   :  { %9028 = vmatpush3.bf16.msra.mxu0 %v10397_v24 }
 0x808   :  { %9050 = vmatpush3.bf16.msra.mxu1 %v10398_v33  ;;  %9029 = vmatprep.subr.bf16.mxu0 %v10399_v26 }
 0x809   :  { %9051 = vmatprep.subr.bf16.mxu1 %v10400_v0 }
 0x80b   :  { %9030 = vmatpush3.bf16.msra.mxu0 %v10401_v28 }
 0x80c   :  { %9052 = vmatpush3.bf16.msra.mxu1 %v10402_v44  ;;  %9031 = vmatprep.subr.bf16.mxu0 %v10403_v37 }
 0x80d   :  { %9053 = vmatprep.subr.bf16.mxu1 %v10404_v45 }
 0x80f   :  { %9032 = vmatpush3.bf16.msra.mxu0 %v10405_v46 }
 0x810   :  { %9054 = vmatpush3.bf16.msra.mxu1 %v10406_v47  ;;  %9033 = vmatprep.subr.bf16.mxu0 %v10407_v53 }
 0x811   :  { %9055 = vmatprep.subr.bf16.mxu1 %v10408_v48 }
 0x813   :  { %9034 = vmatpush3.bf16.msra.mxu0 %v10409_v29 }
 0x814   :  { %9056 = vmatpush3.bf16.msra.mxu1 %v10410_v49  ;;  %9035 = vmatprep.subr.bf16.mxu0 %v10411_v9 }
 0x815   :  { %9057 = vmatprep.subr.bf16.mxu1 %v10412_v35 }
 0x817   :  { %9036 = vmatpush3.bf16.msra.mxu0 %v10413_v51 }
 0x818   :  { %9058 = vmatpush3.bf16.msra.mxu1 %v10414_v5  ;;  %9037 = vmatprep.subr.bf16.mxu0 %v10415_v27 }
 0x819   :  { %9059 = vmatprep.subr.bf16.mxu1 %v10416_v54 }
 0x81b   :  { %9038 = vmatpush3.bf16.msra.mxu0 %v10417_v55 }
 0x81c   :  { %9060 = vmatpush3.bf16.msra.mxu1 %v10418_v56 }
 0x8d1   :  { %v7288_v61 = vpop.f32.mrb[40].mxu0 }
 0x8d2   :  { %v9075_v2 = vadd.f32 %v7288_v61, %v5834_v30  ;;  %v7452_v3 = vpop.f32.mrb[40].mxu1  ;;  %v7290_v62 = vpop.f32.mrb[41].mxu0 }
 0x8d3   :  { %v9077_v14 = vadd.f32 %v7452_v3, %v5842_v58  ;;  %v9076_v4 = vadd.f32 %v7290_v62, %v5838_v59  ;;  %v7454_v7 = vpop.f32.mrb[41].mxu1  ;;  %v7292_v10 = vpop.f32.mrb[42].mxu0 }
 0x8d4   :  { %v7459_v1 = vmax.f32 %v9075_v2, 0.0  ;;  %v9078_v38 = vadd.f32 %v7454_v7, %v5846_v60  ;;  %v7456_v11 = vpop.f32.mrb[42].mxu1  ;;  %v7293_v8 = vpop.f32.mrb[43].mxu0 }
 0x8d5   :  { %v7461_v12 = vmax.f32 %v9077_v14, 0.0  ;;  %v7460_v40 = vmax.f32 %v9076_v4, 0.0  ;;  %v7457_v13 = vpop.f32.mrb[43].mxu1 }
 0x8d6   :  { %v7462_v63 = vmax.f32 %v9078_v38, 0.0  ;;  %v7463_v42 = vpack.c.bf16 %v7459_v1, %v7459_v1 }
 0x8d7   :  { %v7464_v15 = vpack.c.bf16 %v7460_v40, %v7460_v40  ;;  %v7465_v43 = vpack.c.bf16 %v7461_v12, %v7461_v12 }
 0x8d8   :  { %v7466_v16 = vpack.c.bf16 %v7462_v63, %v7462_v63 }
 0x8d9   :  { %7764 = vmatprep.mubr.bf16.mxu0 %v7464_v15 }
 0x8da   :  { %7804 = vmatprep.mubr.bf16.mxu1 %v7466_v16  ;;  %7765 = vmatmul.mubr.bf16.vlgmr.msra.gmra.mrb[44].mxu0 %v7463_v42 }
 0x8db   :  { %7805 = vmatmul.mubr.bf16.vlgmr.msra.gmra.mrb[44].mxu1 %v7465_v43 }
 0x9ad   :  { %v9039_v17 = vpop.f32.mrb[44].mxu0 }
 0x9ae   :  { %v9061_v18 = vpop.f32.mrb[44].mxu1  ;;  %v9040_v20 = vpop.f32.mrb[45].mxu0 }
 0x9af   :  { %v9041_v32 = vadd.f32 %v9040_v20, %v9039_v17  ;;  %v9062_v21 = vpop.f32.mrb[45].mxu1  ;;  %v9042_v52 = vpop.f32.mrb[46].mxu0 }
 0x9b0   :  { %v9063_v39 = vadd.f32 %v9062_v21, %v9061_v18  ;;  %v9064_v22 = vpop.f32.mrb[46].mxu1  ;;  %v9043_v36 = vpop.f32.mrb[47].mxu0 }
 0x9b1   :  { %v7767_v23 = vadd.f32 %v9041_v32, %v8902_v19  ;;  %v9065_v41 = vpop.f32.mrb[47].mxu1 }
 0x9b3   :  { %v7807_v25 = vadd.f32 %v9063_v39, %v7767_v23 }
 0x9b5   :  { %v7835_v31 = vsub.f32 0.0, %v7807_v25 }
 0x9b7   :  { %v7836_v34 = vmul.f32 1.442695, %v7835_v31 }
 0x9b9   :  { %10423 = vpow2.f32 %v7836_v34 }
 0x9c3   :  { %v10424_v6 = vpop.eup %10423 }
 0x9c4   :  { %v7838_v24 = vadd.f32 1.0, %v10424_v6 }
 0x9c6   :  { %10425 = vrcp.f32 %v7838_v24 }
 0x9d0   :  { %v10426_v33 = vpop.eup %10425 }
 0x9d1   :  { %7842 = vperm.xlu0 %9170, %v10426_v33  }
 0x9d2   :  { %10593 = shalt.err (!%p10590_p4)
}
 0x9d3   :  { %s10594_s7 = scalar_lea.hbm %s11291_s9, 128 }
 0x9d4   :  { %p10595_p5 = scmp.ne.s32.totalorder %s11291_s9, %s10594_s7  ;;  %p10598_p6 = scmp.lt.u32.totalorder %s10594_s7, %s11291_s9 }
 0x9d6   :  { %p10600_p7 = pnand %p10598_p6, %p10595_p5 }
 0x9d8   :  { %10603 = shalt.err (!%p10600_p7)
}
 0x9d9   :  { %7867 = dma.vmem_to_hbm [thread:$0]  %s7865_s27, 128, %s11291_s9, [#allocation16]  }
 0x9da   :  { %s10656_s14 = smov [#allocation14]  }
 0x9db   :  { %s7854_s15 = sshll.u32 %s10656_s14, 4  ;;  %s7855_s15 = int_to_ptr.vmem [resolvable:$true] %s7854_s15 }
 0x9dc   :  { %s10604_s17 = scalar_lea.vmem %s7855_s15, 128  ;;  %p10609_p9 = scmp.lt.s32.totalorder %s7855_s15, %s7855_s15 }
 0x9dd   :  { %p10605_p8 = scmp.ne.s32.totalorder %s7855_s15, %s10604_s17  ;;  %p10610_p10 = scmp.lt.s32.totalorder %s10604_s17, %s10604_s17 }
 0x9df   :  { %p10611_p11 = por %p10610_p10, %p10609_p9 }
 0x9e1   :  { %p10612_p12 = pnand %p10611_p11, %p10605_p8 }
 0xa50   :  { %v7843_v26 = vpop.permute.xlu0 %7842 }
 0xa51   :  { %v7845_v0 = vmul.f32 %v7843_v26, %v11147_v50 }
 0xa53   :  { %7846 = vst.msk [vmem:[#allocation14] sm:$0xff] %vm7815_vm1, %v7845_v0 }
 0xa54   :  { %10615 = shalt.err (!%p10612_p12)
}
 0xa55   :  { %s10616_s2 = scalar_lea.hbm %s11290_s8, 128 }
 0xa56   :  { %p10617_p13 = scmp.ne.s32.totalorder %s11290_s8, %s10616_s2  ;;  %p10620_p0 = scmp.lt.u32.totalorder %s10616_s2, %s11290_s8 }
 0xa58   :  { %p10622_p1 = pnand %p10620_p0, %p10617_p13 }
 0xa5a   :  { %10625 = shalt.err (!%p10622_p1)
}
 0xa5b   :  { %7857 = dma.vmem_to_hbm [thread:$0]  %s7855_s15, 128, %s11290_s8, [#allocation4]  }
 0xa5c   :  { %10634 = dma.done.wait [#allocation4], 128  }
 0xa5d   :  { %10635 = vsyncadd [#allocation4], 4294967168 }
 0xa5e   :  { %10636 = dma.done.wait [#allocation16], 128  }
 0xa5f   :  { %10637 = vsyncadd [#allocation16], 4294967168 }
 0xa60   :  { %7874 = vsyncpa [#allocation3], 1 }
 0xa61   :  { %7875 = vsyncpa [#allocation6], 1 }
 0xa62   :  { %7876 = vsyncpa [#allocation9], 1 }
 0xa63   :  { %7877 = vsyncpa [#allocation12], 1 }
 0xa64   :  { %7878 = vsyncpa [#allocation4], 1 }
 0xa65   :  { %7879 = vsyncpa [#allocation16], 1 }

</bundles_post_ra>
